<compile_context>
chip_gen: v6e
topology: v6e:2x2x1
jax: 0.10.0
libtpu: 0.0.40
codegen_flags: <defaults>
</compile_context>

<pallas_src>
import functools

import jax
import jax.numpy as jnp
from jax.experimental import pallas as pl
from jax.experimental.pallas import tpu as pltpu

LN_EPS = 1e-5  # nn.LayerNorm default eps


def _layernorm(x, gamma, beta):
    mu = jnp.mean(x, axis=-1, keepdims=True)
    var = jnp.mean((x - mu) ** 2, axis=-1, keepdims=True)
    return (x - mu) * jax.lax.rsqrt(var + LN_EPS) * gamma + beta


def slot_attention_kernel(x_ref, slots_ref, w_ref, vec_ref, out_ref, *,
                          tb, n, s, d, heads, dh, iters, eps, hidden):
    di = heads * dh     # dim_inner
    hn = heads * n      # lanes of the block-diagonal attention layout

    # ---- unpack packed parameters (static slices, once per grid step) ----
    ln_in_g = vec_ref[0:1, 0:d]
    ln_in_b = vec_ref[1:2, 0:d]
    ln_sl_g = vec_ref[2:3, 0:d]
    ln_sl_b = vec_ref[3:4, 0:d]
    ln_ff_g = vec_ref[4:5, 0:d]
    ln_ff_b = vec_ref[5:6, 0:d]
    b_kv = vec_ref[6:7, 0:2 * di]
    b_q = vec_ref[7:8, 0:di]
    b_c = vec_ref[8:9, 0:d]
    b_gru = vec_ref[9:10, 0:4 * d]
    b_1 = vec_ref[10:11, 0:hidden]
    b_2 = vec_ref[11:12, 0:d]

    r0 = 0
    r1 = r0 + d           # end of w_kv rows
    r2 = r1 + d           # end of w_q rows
    r3 = r2 + di          # end of w_c rows
    r4 = r3 + 2 * d       # end of w_gru rows
    r5 = r4 + d           # end of w_1 rows
    r6 = r5 + hidden      # end of w_2 rows
    r7 = r6 + di          # end of kmask rows
    r8 = r7 + hn          # end of vmask rows
    r9 = r8 + hn          # end of ones_bd rows
    w_kv = w_ref[r0:r1, 0:2 * di]     # (d, 2*di)   fused K|V projection
    w_q = w_ref[r1:r2, 0:di]          # (d, di)     attention scale pre-folded
    w_c = w_ref[r2:r3, 0:d]           # (di, d)
    w_gru = w_ref[r3:r4, 0:4 * d]     # (2d, 4d)    fused GRU weight
    w_1 = w_ref[r4:r5, 0:hidden]      # (d, hidden)
    w_2 = w_ref[r5:r6, 0:d]           # (hidden, d)
    kmask = w_ref[r6:r7, 0:hn]        # (di, hn) head block-diagonal selector
    vmask = w_ref[r7:r8, 0:di]        # (hn, di)
    ones_bd = w_ref[r8:r9, 0:hn]      # (hn, hn) block-diag of ones (per-head L1 sums)

    x = x_ref[...].astype(jnp.float32)           # (tb*n, d)
    slots = slots_ref[...].astype(jnp.float32)   # (tb*s, d)

    # ---- loop-invariant: input LayerNorm + fused K|V projection for all TB elements ----
    x_ln = _layernorm(x, ln_in_g, ln_in_b)
    kv = jnp.dot(x_ln, w_kv, preferred_element_type=jnp.float32) + b_kv   # (tb*n, 2*di)

    # ---- loop-invariant block-diagonal K^T / V matrices (one transpose per element,
    #      built once, outside the iteration loop) ----
    kbd = []   # per batch element: (di, hn), block h = k_h^T
    vbd = []   # per batch element: (hn, di), block h = v_h
    for b in range(tb):
        kv_b = kv[b * n:(b + 1) * n, :]          # sublane slice: (n, 2*di)
        k_b = kv_b[:, 0:di]
        v_b = kv_b[:, di:2 * di]
        kT_b = k_b.T                             # (di, n)
        kbd.append(jnp.concatenate([kT_b] * heads, axis=1) * kmask)   # (di, hn)
        vbd.append(jnp.concatenate([v_b] * heads, axis=0) * vmask)    # (hn, di)

    for _ in range(iters):   # static, small trip count -> unrolled at trace time
        slots_prev = slots

        slots_n = _layernorm(slots, ln_sl_g, ln_sl_b)
        q = jnp.dot(slots_n, w_q, preferred_element_type=jnp.float32) + b_q   # (tb*s, di)

        upd = []
        for b in range(tb):
            q_b = q[b * s:(b + 1) * s, :]                         # (s, di) sublane slice
            # all heads at once via the block-diagonal K^T: (s, heads*n)
            dots = jnp.dot(q_b, kbd[b], preferred_element_type=jnp.float32)
            # softmax over the SLOT axis (torch dim=-2)
            dots = dots - jnp.max(dots, axis=0, keepdims=True)
            e = jnp.exp(dots)
            attn = e * pl.reciprocal(jnp.sum(e, axis=0, keepdims=True), approx=True)
            # F.normalize(attn + eps, p=1, dim=-1): L1 over the input axis, per head block
            attn = attn + eps
            denom = jnp.dot(attn, ones_bd, preferred_element_type=jnp.float32)
            attn = attn * pl.reciprocal(denom, approx=True)
            # merged-heads updates directly: (s, heads*dh)
            upd.append(jnp.dot(attn, vbd[b], preferred_element_type=jnp.float32))
        updates = upd[0] if tb == 1 else jnp.concatenate(upd, axis=0)          # (tb*s, di)
        updates = jnp.dot(updates, w_c, preferred_element_type=jnp.float32) + b_c  # (tb*s, d)

        # ---- fused GRUCell: one matmul -> [r_pre | z_pre | gi_n + b_in | gh_n + b_hn] ----
        gru_in = jnp.concatenate([updates, slots_prev], axis=-1)              # (tb*s, 2d)
        g = jnp.dot(gru_in, w_gru, preferred_element_type=jnp.float32) + b_gru  # (tb*s, 4d)
        r = jax.nn.sigmoid(g[:, 0:d])
        z = jax.nn.sigmoid(g[:, d:2 * d])
        ng = jnp.tanh(g[:, 2 * d:3 * d] + r * g[:, 3 * d:4 * d])
        slots = (1.0 - z) * ng + z * slots_prev

        # ---- residual MLP ----
        sf = _layernorm(slots, ln_ff_g, ln_ff_b)
        h1 = jnp.maximum(jnp.dot(sf, w_1, preferred_element_type=jnp.float32) + b_1, 0.0)
        slots = slots + jnp.dot(h1, w_2, preferred_element_type=jnp.float32) + b_2

    out_ref[...] = slots.astype(out_ref.dtype)


def _pack_params(params, *, d, n, heads, dim_head, hidden, scale):
    """Fuse + pack all parameters into one weight slab and one bias/LN slab."""
    f32 = jnp.float32
    di = heads * dim_head
    hn = heads * n
    widest = max(2 * di, 4 * d, hidden, hn, di, d)
    lane_w = ((widest + 127) // 128) * 128

    def padw(w):
        w = jnp.asarray(w, f32)
        return jnp.pad(w, ((0, 0), (0, lane_w - w.shape[1])))

    def padv(v):
        v = jnp.asarray(v, f32).reshape(1, -1)
        return jnp.pad(v, ((0, 0), (0, lane_w - v.shape[1])))

    # fused K|V projection
    w_kv = jnp.concatenate([jnp.asarray(params["wk"], f32),
                            jnp.asarray(params["wv"], f32)], axis=1)
    b_kv = jnp.concatenate([jnp.asarray(params["bk"], f32).reshape(1, -1),
                            jnp.asarray(params["bv"], f32).reshape(1, -1)], axis=1)
    # attention scale folded into Q
    w_q = jnp.asarray(params["wq"], f32) * scale
    b_q = jnp.asarray(params["bq"], f32).reshape(1, -1) * scale
    # fused GRU weight: [updates | slots_prev] @ W -> [r | z | gi_n | gh_n]
    w_ih = jnp.asarray(params["w_ih"], f32)   # (d, 3d), gate order [r|z|n]
    w_hh = jnp.asarray(params["w_hh"], f32)
    b_ih = jnp.asarray(params["b_ih"], f32).reshape(1, -1)
    b_hh = jnp.asarray(params["b_hh"], f32).reshape(1, -1)
    zero = jnp.zeros((d, d), f32)
    w_gru = jnp.concatenate([
        jnp.concatenate([w_ih, zero], axis=1),
        jnp.concatenate([w_hh[:, :2 * d], zero, w_hh[:, 2 * d:]], axis=1),
    ], axis=0)                                                     # (2d, 4d)
    b_gru = jnp.concatenate([b_ih[:, :2 * d] + b_hh[:, :2 * d],
                             b_ih[:, 2 * d:], b_hh[:, 2 * d:]], axis=1)  # (1, 4d)

    # static head-selection masks (built host-side, no in-kernel iota / int-div)
    ih = jnp.arange(di) // dim_head      # head owning each inner-dim index
    jh = jnp.arange(hn) // n             # head owning each (head, token) column
    kmask = (ih[:, None] == jh[None, :]).astype(f32)    # (di, hn)
    vmask = (jh[:, None] == ih[None, :]).astype(f32)    # (hn, di)
    ones_bd = (jh[:, None] == jh[None, :]).astype(f32)  # (hn, hn)

    w_pack = jnp.concatenate([
        padw(w_kv), padw(w_q), padw(jnp.asarray(params["wc"], f32)),
        padw(w_gru), padw(jnp.asarray(params["w1"], f32)),
        padw(jnp.asarray(params["w2"], f32)),
        padw(kmask), padw(vmask), padw(ones_bd),
    ], axis=0)
    vec_pack = jnp.concatenate([
        padv(params["ln_in_g"]), padv(params["ln_in_b"]),
        padv(params["ln_sl_g"]), padv(params["ln_sl_b"]),
        padv(params["ln_ff_g"]), padv(params["ln_ff_b"]),
        padv(b_kv), padv(b_q), padv(params["bc"]), padv(b_gru),
        padv(params["b1"]), padv(params["b2"]),
    ], axis=0)
    return w_pack, vec_pack


def multihead_slot_attention(x, slots_init, params, *, heads, dim_head, iters, eps, scale,
                             block_b=8):
    B, N, D = x.shape
    S = slots_init.shape[1]
    HID = params["w1"].shape[1]

    TB = max(1, min(block_b, B))         # batch elements per grid step (MXU row fill)
    G = -(-B // TB)                      # number of grid steps (>= 2 keeps v7x megacore busy)
    Bp = G * TB
    if Bp != B:                          # pad batch to a multiple of TB; padded rows discarded
        pad = Bp - B
        x = jnp.pad(x, ((0, pad), (0, 0), (0, 0)))
        slots_init = jnp.pad(slots_init, ((0, pad), (0, 0), (0, 0)))

    x2 = x.reshape(Bp * N, D)            # 2-D slabs: cheap leading-dim reshapes
    s2 = slots_init.reshape(Bp * S, D)
    w_pack, vec_pack = _pack_params(params, d=D, n=N, heads=heads, dim_head=dim_head,
                                    hidden=HID, scale=scale)

    kernel = functools.partial(
        slot_attention_kernel,
        tb=TB, n=N, s=S, d=D, heads=heads, dh=dim_head,
        iters=iters, eps=eps, hidden=HID)

    out2 = pl.pallas_call(
        kernel,
        out_shape=jax.ShapeDtypeStruct((Bp * S, D), x.dtype),
        grid=(G,),
        in_specs=[
            pl.BlockSpec((TB * N, D), lambda i: (i, 0)),       # TB batch elements of tokens
            pl.BlockSpec((TB * S, D), lambda i: (i, 0)),       # TB batch elements of slots
            pl.BlockSpec(w_pack.shape, lambda i: (0, 0)),      # packed weights (loop-invariant)
            pl.BlockSpec(vec_pack.shape, lambda i: (0, 0)),    # packed biases / LN params
        ],
        out_specs=pl.BlockSpec((TB * S, D), lambda i: (i, 0)),
        compiler_params=pltpu.CompilerParams(dimension_semantics=("parallel",)),
    )(x2, s2, w_pack, vec_pack)

    return out2.reshape(Bp, S, D)[:B]


def reference(x, slots_init, p, *, heads, dim_head, iters, eps, scale):
    """Pure-JAX mirror of the torch forward pass (for a correctness check)."""
    def ln(t, g, b):
        mu = t.mean(-1, keepdims=True)
        var = ((t - mu) ** 2).mean(-1, keepdims=True)
        return (t - mu) / jnp.sqrt(var + LN_EPS) * g + b

    B, N, D = x.shape
    outs = []
    for bi in range(B):
        xb = x[bi]
        slots = slots_init[bi]
        x_ln = ln(xb, p["ln_in_g"], p["ln_in_b"])
        k = x_ln @ p["wk"] + p["bk"]
        v = x_ln @ p["wv"] + p["bv"]
        for _ in range(iters):
            sp = slots
            sn = ln(slots, p["ln_sl_g"], p["ln_sl_b"])
            q = sn @ p["wq"] + p["bq"]
            ups = []
            for h in range(heads):
                sl = slice(h * dim_head, (h + 1) * dim_head)
                dots = (q[:, sl] @ k[:, sl].T) * scale
                attn = jax.nn.softmax(dots, axis=0)
                attn = attn + eps
                attn = attn / attn.sum(-1, keepdims=True)
                ups.append(attn @ v[:, sl])
            upd = jnp.concatenate(ups, -1) @ p["wc"] + p["bc"]
            gi = upd @ p["w_ih"] + p["b_ih"]
            gh = sp @ p["w_hh"] + p["b_hh"]
            r = jax.nn.sigmoid(gi[:, :D] + gh[:, :D])
            z = jax.nn.sigmoid(gi[:, D:2 * D] + gh[:, D:2 * D])
            ng = jnp.tanh(gi[:, 2 * D:] + r * gh[:, 2 * D:])
            slots = (1 - z) * ng + z * sp
            sf = ln(slots, p["ln_ff_g"], p["ln_ff_b"])
            slots = slots + jnp.maximum(sf @ p["w1"] + p["b1"], 0.0) @ p["w2"] + p["b2"]
        outs.append(slots)
    return jnp.stack(outs)


if __name__ == "__main__":
    # Small, module-consistent shapes
    B, N, D = 4, 16, 32               # batch, num input tokens, dim
    HEADS, DIM_HEAD = 4, 16           # dim_inner = 64
    NUM_SLOTS, ITERS = 8, 3
    EPS = 1e-8
    HIDDEN = max(D, 64)               # hidden_dim = max(dim, hidden_dim)
    DIM_INNER = HEADS * DIM_HEAD
    SCALE = D ** -0.5                 # module scales by dim**-0.5, not dim_head

    key = jax.random.PRNGKey(0)
    ks = jax.random.split(key, 20)

    def lin_w(k, fan_in, fan_out):
        return jax.random.normal(k, (fan_in, fan_out), jnp.float32) / jnp.sqrt(fan_in)

    params = {
        "ln_in_g": jnp.ones((1, D), jnp.float32),
        "ln_in_b": jnp.zeros((1, D), jnp.float32),
        "ln_sl_g": jnp.ones((1, D), jnp.float32),
        "ln_sl_b": jnp.zeros((1, D), jnp.float32),
        "wq": lin_w(ks[0], D, DIM_INNER), "bq": 0.01 * jnp.ones((1, DIM_INNER), jnp.float32),
        "wk": lin_w(ks[1], D, DIM_INNER), "bk": 0.01 * jnp.ones((1, DIM_INNER), jnp.float32),
        "wv": lin_w(ks[2], D, DIM_INNER), "bv": 0.01 * jnp.ones((1, DIM_INNER), jnp.float32),
        "wc": lin_w(ks[3], DIM_INNER, D), "bc": 0.01 * jnp.ones((1, D), jnp.float32),
        # GRUCell weights, gate order [r; z; n], stored transposed as (in, 3*hidden)
        "w_ih": lin_w(ks[4], D, 3 * D), "b_ih": 0.01 * jnp.ones((1, 3 * D), jnp.float32),
        "w_hh": lin_w(ks[5], D, 3 * D), "b_hh": 0.01 * jnp.ones((1, 3 * D), jnp.float32),
        "ln_ff_g": jnp.ones((1, D), jnp.float32),
        "ln_ff_b": jnp.zeros((1, D), jnp.float32),
        "w1": lin_w(ks[6], D, HIDDEN), "b1": 0.01 * jnp.ones((1, HIDDEN), jnp.float32),
        "w2": lin_w(ks[7], HIDDEN, D), "b2": 0.01 * jnp.ones((1, D), jnp.float32),
    }

    # slots_mu / slots_logsigma (the module samples slot noise with randn; done here in JAX)
    slots_mu = jax.random.normal(ks[8], (1, 1, D), jnp.float32)
    slots_logsigma = 0.3 * jax.random.uniform(ks[9], (1, 1, D), jnp.float32, -1.0, 1.0)
    noise = jax.random.normal(ks[10], (B, NUM_SLOTS, D), jnp.float32)
    slots_init = slots_mu + jnp.exp(slots_logsigma) * noise  # (B, S, D)

    x = jax.random.normal(ks[11], (B, N, D), jnp.float32)

    out = multihead_slot_attention(
        x, slots_init, params,
        heads=HEADS, dim_head=DIM_HEAD, iters=ITERS, eps=EPS, scale=SCALE,
        block_b=2)  # TB=2 -> grid of 2 steps (keeps 2 grid steps for v7x megacore)
    out = jax.block_until_ready(out)

    ref = reference(x, slots_init, params,
                    heads=HEADS, dim_head=DIM_HEAD, iters=ITERS, eps=EPS, scale=SCALE)
    assert out.shape == (B, NUM_SLOTS, D)
    assert jnp.all(jnp.isfinite(out))
    assert jnp.allclose(out, ref, atol=1e-2, rtol=1e-2), float(jnp.max(jnp.abs(out - ref)))

    print("KERNEL_OK")
</pallas_src>

<mosaic_0001>
module attributes {stable_mosaic.version = 11 : i64} {
  func.func @slot_attention_kernel(%arg0: i32, %arg1: memref<32x32xf32, #tpu.memory_space<vmem>>, %arg2: memref<16x32xf32, #tpu.memory_space<vmem>>, %arg3: memref<480x128xf32, #tpu.memory_space<vmem>>, %arg4: memref<12x128xf32, #tpu.memory_space<vmem>>, %arg5: memref<16x32xf32, #tpu.memory_space<vmem>>) attributes {dimension_semantics = [#tpu.dimension_semantics<parallel>], iteration_bounds = array<i64: 2>, scalar_prefetch = 0 : i64, scratch_operands = 0 : i64, tpu.core_type = #tpu.core_type<tc>, window_params = [{transform_indices = @transform_0, window_bounds = array<i64: 32, 32>}, {transform_indices = @transform_1, window_bounds = array<i64: 16, 32>}, {pipeline_mode = #tpu.pipeline_mode<synchronous>, transform_indices = @transform_2, window_bounds = array<i64: 480, 128>}, {pipeline_mode = #tpu.pipeline_mode<synchronous>, transform_indices = @transform_3, window_bounds = array<i64: 12, 128>}, {transform_indices = @transform_4, window_bounds = array<i64: 16, 32>}]} {
    %c0 = arith.constant 0 : index
    %c0_0 = arith.constant 0 : index
    %0 = vector.load %arg4[%c0, %c0_0] : memref<12x128xf32, #tpu.memory_space<vmem>>, vector<1x32xf32>
    %c1 = arith.constant 1 : index
    %c0_1 = arith.constant 0 : index
    %1 = vector.load %arg4[%c1, %c0_1] : memref<12x128xf32, #tpu.memory_space<vmem>>, vector<1x32xf32>
    %c2 = arith.constant 2 : index
    %c0_2 = arith.constant 0 : index
    %2 = vector.load %arg4[%c2, %c0_2] : memref<12x128xf32, #tpu.memory_space<vmem>>, vector<1x32xf32>
    %c3 = arith.constant 3 : index
    %c0_3 = arith.constant 0 : index
    %3 = vector.load %arg4[%c3, %c0_3] : memref<12x128xf32, #tpu.memory_space<vmem>>, vector<1x32xf32>
    %c4 = arith.constant 4 : index
    %c0_4 = arith.constant 0 : index
    %4 = vector.load %arg4[%c4, %c0_4] : memref<12x128xf32, #tpu.memory_space<vmem>>, vector<1x32xf32>
    %c5 = arith.constant 5 : index
    %c0_5 = arith.constant 0 : index
    %5 = vector.load %arg4[%c5, %c0_5] : memref<12x128xf32, #tpu.memory_space<vmem>>, vector<1x32xf32>
    %c6 = arith.constant 6 : index
    %c0_6 = arith.constant 0 : index
    %6 = vector.load %arg4[%c6, %c0_6] : memref<12x128xf32, #tpu.memory_space<vmem>>, vector<1x128xf32>
    %c7 = arith.constant 7 : index
    %c0_7 = arith.constant 0 : index
    %7 = vector.load %arg4[%c7, %c0_7] : memref<12x128xf32, #tpu.memory_space<vmem>>, vector<1x64xf32>
    %c8 = arith.constant 8 : index
    %c0_8 = arith.constant 0 : index
    %8 = vector.load %arg4[%c8, %c0_8] : memref<12x128xf32, #tpu.memory_space<vmem>>, vector<1x32xf32>
    %c9 = arith.constant 9 : index
    %c0_9 = arith.constant 0 : index
    %9 = vector.load %arg4[%c9, %c0_9] : memref<12x128xf32, #tpu.memory_space<vmem>>, vector<1x128xf32>
    %c10 = arith.constant 10 : index
    %c0_10 = arith.constant 0 : index
    %10 = vector.load %arg4[%c10, %c0_10] : memref<12x128xf32, #tpu.memory_space<vmem>>, vector<1x64xf32>
    %c11 = arith.constant 11 : index
    %c0_11 = arith.constant 0 : index
    %11 = vector.load %arg4[%c11, %c0_11] : memref<12x128xf32, #tpu.memory_space<vmem>>, vector<1x32xf32>
    %c0_12 = arith.constant 0 : index
    %c0_13 = arith.constant 0 : index
    %12 = vector.load %arg3[%c0_12, %c0_13] : memref<480x128xf32, #tpu.memory_space<vmem>>, vector<32x128xf32>
    %c32 = arith.constant 32 : index
    %c0_14 = arith.constant 0 : index
    %13 = vector.load %arg3[%c32, %c0_14] : memref<480x128xf32, #tpu.memory_space<vmem>>, vector<32x64xf32>
    %c64 = arith.constant 64 : index
    %c0_15 = arith.constant 0 : index
    %14 = vector.load %arg3[%c64, %c0_15] : memref<480x128xf32, #tpu.memory_space<vmem>>, vector<64x32xf32>
    %c128 = arith.constant 128 : index
    %c0_16 = arith.constant 0 : index
    %15 = vector.load %arg3[%c128, %c0_16] : memref<480x128xf32, #tpu.memory_space<vmem>>, vector<64x128xf32>
    %c192 = arith.constant 192 : index
    %c0_17 = arith.constant 0 : index
    %16 = vector.load %arg3[%c192, %c0_17] : memref<480x128xf32, #tpu.memory_space<vmem>>, vector<32x64xf32>
    %c224 = arith.constant 224 : index
    %c0_18 = arith.constant 0 : index
    %17 = vector.load %arg3[%c224, %c0_18] : memref<480x128xf32, #tpu.memory_space<vmem>>, vector<64x32xf32>
    %c288 = arith.constant 288 : index
    %c0_19 = arith.constant 0 : index
    %18 = vector.load %arg3[%c288, %c0_19] : memref<480x128xf32, #tpu.memory_space<vmem>>, vector<64x64xf32>
    %c352 = arith.constant 352 : index
    %c0_20 = arith.constant 0 : index
    %19 = vector.load %arg3[%c352, %c0_20] : memref<480x128xf32, #tpu.memory_space<vmem>>, vector<64x64xf32>
    %c416 = arith.constant 416 : index
    %c0_21 = arith.constant 0 : index
    %20 = vector.load %arg3[%c416, %c0_21] : memref<480x128xf32, #tpu.memory_space<vmem>>, vector<64x64xf32>
    %c0_22 = arith.constant 0 : index
    %c0_23 = arith.constant 0 : index
    %21 = vector.load %arg1[%c0_22, %c0_23] : memref<32x32xf32, #tpu.memory_space<vmem>>, vector<32x32xf32>
    %c0_24 = arith.constant 0 : index
    %c0_25 = arith.constant 0 : index
    %22 = vector.load %arg2[%c0_24, %c0_25] : memref<16x32xf32, #tpu.memory_space<vmem>>, vector<16x32xf32>
    %cst = arith.constant dense<0.000000e+00> : vector<32xf32>
    %23 = vector.multi_reduction <add>, %21, %cst [1] : vector<32x32xf32> to vector<32xf32>
    %24 = vector.shape_cast %23 : vector<32xf32> to vector<32x1xf32>
    %cst_26 = arith.constant 3.200000e+01 : f32
    %25 = vector.broadcast %cst_26 : f32 to vector<32x1xf32>
    %26 = arith.divf %24, %25 : vector<32x1xf32>
    %27 = vector.broadcast %26 : vector<32x1xf32> to vector<32x32xf32>
    %28 = arith.subf %21, %27 : vector<32x32xf32>
    %29 = arith.mulf %28, %28 : vector<32x32xf32>
    %cst_27 = arith.constant dense<0.000000e+00> : vector<32xf32>
    %30 = vector.multi_reduction <add>, %29, %cst_27 [1] : vector<32x32xf32> to vector<32xf32>
    %31 = vector.shape_cast %30 : vector<32xf32> to vector<32x1xf32>
    %cst_28 = arith.constant 3.200000e+01 : f32
    %32 = vector.broadcast %cst_28 : f32 to vector<32x1xf32>
    %33 = arith.divf %31, %32 : vector<32x1xf32>
    %34 = vector.broadcast %26 : vector<32x1xf32> to vector<32x32xf32>
    %35 = arith.subf %21, %34 : vector<32x32xf32>
    %cst_29 = arith.constant 9.99999974E-6 : f32
    %36 = vector.broadcast %cst_29 : f32 to vector<32x1xf32>
    %37 = arith.addf %33, %36 : vector<32x1xf32>
    %38 = math.rsqrt %37 : vector<32x1xf32>
    %39 = vector.broadcast %38 : vector<32x1xf32> to vector<32x32xf32>
    %40 = arith.mulf %35, %39 : vector<32x32xf32>
    %41 = vector.broadcast %0 : vector<1x32xf32> to vector<32x32xf32>
    %42 = arith.mulf %40, %41 : vector<32x32xf32>
    %43 = vector.broadcast %1 : vector<1x32xf32> to vector<32x32xf32>
    %44 = arith.addf %42, %43 : vector<32x32xf32>
    %cst_30 = arith.constant dense<0.000000e+00> : vector<32x128xf32>
    %45 = tpu.matmul %44, %12, %cst_30 {dimension_numbers = #tpu.dot_dimension_numbers<[1], [0], [0], [1], [0, 0, 1, 1], [], []>} : vector<32x32xf32>, vector<32x128xf32>, vector<32x128xf32> -> vector<32x128xf32>
    %46 = vector.broadcast %6 : vector<1x128xf32> to vector<32x128xf32>
    %47 = arith.addf %45, %46 : vector<32x128xf32>
    %48 = vector.extract_strided_slice %47 {offsets = [0, 0], sizes = [16, 128], strides = [1, 1]} : vector<32x128xf32> to vector<16x128xf32>
    %49 = vector.extract_strided_slice %48 {offsets = [0, 0], sizes = [16, 64], strides = [1, 1]} : vector<16x128xf32> to vector<16x64xf32>
    %50 = vector.extract_strided_slice %48 {offsets = [0, 64], sizes = [16, 64], strides = [1, 1]} : vector<16x128xf32> to vector<16x64xf32>
    %51 = tpu.transpose %49, [1, 0] : vector<16x64xf32> -> vector<64x16xf32>
    %52 = tpu.concatenate %51, %51, %51, %51 in 1 : vector<64x16xf32>, vector<64x16xf32>, vector<64x16xf32>, vector<64x16xf32> -> vector<64x64xf32>
    %53 = arith.mulf %52, %18 : vector<64x64xf32>
    %54 = tpu.concatenate %50, %50, %50, %50 in 0 : vector<16x64xf32>, vector<16x64xf32>, vector<16x64xf32>, vector<16x64xf32> -> vector<64x64xf32>
    %55 = arith.mulf %54, %19 : vector<64x64xf32>
    %56 = vector.extract_strided_slice %47 {offsets = [16, 0], sizes = [16, 128], strides = [1, 1]} : vector<32x128xf32> to vector<16x128xf32>
    %57 = vector.extract_strided_slice %56 {offsets = [0, 0], sizes = [16, 64], strides = [1, 1]} : vector<16x128xf32> to vector<16x64xf32>
    %58 = vector.extract_strided_slice %56 {offsets = [0, 64], sizes = [16, 64], strides = [1, 1]} : vector<16x128xf32> to vector<16x64xf32>
    %59 = tpu.transpose %57, [1, 0] : vector<16x64xf32> -> vector<64x16xf32>
    %60 = tpu.concatenate %59, %59, %59, %59 in 1 : vector<64x16xf32>, vector<64x16xf32>, vector<64x16xf32>, vector<64x16xf32> -> vector<64x64xf32>
    %61 = arith.mulf %60, %18 : vector<64x64xf32>
    %62 = tpu.concatenate %58, %58, %58, %58 in 0 : vector<16x64xf32>, vector<16x64xf32>, vector<16x64xf32>, vector<16x64xf32> -> vector<64x64xf32>
    %63 = arith.mulf %62, %19 : vector<64x64xf32>
    %cst_31 = arith.constant dense<0.000000e+00> : vector<16xf32>
    %64 = vector.multi_reduction <add>, %22, %cst_31 [1] : vector<16x32xf32> to vector<16xf32>
    %65 = vector.shape_cast %64 : vector<16xf32> to vector<16x1xf32>
    %cst_32 = arith.constant 3.200000e+01 : f32
    %66 = vector.broadcast %cst_32 : f32 to vector<16x1xf32>
    %67 = arith.divf %65, %66 : vector<16x1xf32>
    %68 = vector.broadcast %67 : vector<16x1xf32> to vector<16x32xf32>
    %69 = arith.subf %22, %68 : vector<16x32xf32>
    %70 = arith.mulf %69, %69 : vector<16x32xf32>
    %cst_33 = arith.constant dense<0.000000e+00> : vector<16xf32>
    %71 = vector.multi_reduction <add>, %70, %cst_33 [1] : vector<16x32xf32> to vector<16xf32>
    %72 = vector.shape_cast %71 : vector<16xf32> to vector<16x1xf32>
    %cst_34 = arith.constant 3.200000e+01 : f32
    %73 = vector.broadcast %cst_34 : f32 to vector<16x1xf32>
    %74 = arith.divf %72, %73 : vector<16x1xf32>
    %75 = vector.broadcast %67 : vector<16x1xf32> to vector<16x32xf32>
    %76 = arith.subf %22, %75 : vector<16x32xf32>
    %cst_35 = arith.constant 9.99999974E-6 : f32
    %77 = vector.broadcast %cst_35 : f32 to vector<16x1xf32>
    %78 = arith.addf %74, %77 : vector<16x1xf32>
    %79 = math.rsqrt %78 : vector<16x1xf32>
    %80 = vector.broadcast %79 : vector<16x1xf32> to vector<16x32xf32>
    %81 = arith.mulf %76, %80 : vector<16x32xf32>
    %82 = vector.broadcast %2 : vector<1x32xf32> to vector<16x32xf32>
    %83 = arith.mulf %81, %82 : vector<16x32xf32>
    %84 = vector.broadcast %3 : vector<1x32xf32> to vector<16x32xf32>
    %85 = arith.addf %83, %84 : vector<16x32xf32>
    %cst_36 = arith.constant dense<0.000000e+00> : vector<16x64xf32>
    %86 = tpu.matmul %85, %13, %cst_36 {dimension_numbers = #tpu.dot_dimension_numbers<[1], [0], [0], [1], [0, 0, 1, 1], [], []>} : vector<16x32xf32>, vector<32x64xf32>, vector<16x64xf32> -> vector<16x64xf32>
    %87 = vector.broadcast %7 : vector<1x64xf32> to vector<16x64xf32>
    %88 = arith.addf %86, %87 : vector<16x64xf32>
    %89 = vector.extract_strided_slice %88 {offsets = [0, 0], sizes = [8, 64], strides = [1, 1]} : vector<16x64xf32> to vector<8x64xf32>
    %cst_37 = arith.constant dense<0.000000e+00> : vector<8x64xf32>
    %90 = tpu.matmul %89, %53, %cst_37 {dimension_numbers = #tpu.dot_dimension_numbers<[1], [0], [0], [1], [0, 0, 1, 1], [], []>} : vector<8x64xf32>, vector<64x64xf32>, vector<8x64xf32> -> vector<8x64xf32>
    %cst_38 = arith.constant dense<0xFF800000> : vector<64xf32>
    %91 = vector.multi_reduction <maximumf>, %90, %cst_38 [0] : vector<8x64xf32> to vector<64xf32>
    %92 = vector.shape_cast %91 : vector<64xf32> to vector<1x64xf32>
    %93 = vector.broadcast %92 : vector<1x64xf32> to vector<8x64xf32>
    %94 = arith.subf %90, %93 : vector<8x64xf32>
    %95 = math.exp %94 : vector<8x64xf32>
    %cst_39 = arith.constant dense<0.000000e+00> : vector<64xf32>
    %96 = vector.multi_reduction <add>, %95, %cst_39 [0] : vector<8x64xf32> to vector<64xf32>
    %97 = vector.shape_cast %96 : vector<64xf32> to vector<1x64xf32>
    %98 = tpu.reciprocal %97 {approx = true} : vector<1x64xf32> -> vector<1x64xf32>
    %99 = vector.broadcast %98 : vector<1x64xf32> to vector<8x64xf32>
    %100 = arith.mulf %95, %99 : vector<8x64xf32>
    %cst_40 = arith.constant 9.99999993E-9 : f32
    %101 = vector.broadcast %cst_40 : f32 to vector<8x64xf32>
    %102 = arith.addf %100, %101 : vector<8x64xf32>
    %cst_41 = arith.constant dense<0.000000e+00> : vector<8x64xf32>
    %103 = tpu.matmul %102, %20, %cst_41 {dimension_numbers = #tpu.dot_dimension_numbers<[1], [0], [0], [1], [0, 0, 1, 1], [], []>} : vector<8x64xf32>, vector<64x64xf32>, vector<8x64xf32> -> vector<8x64xf32>
    %104 = tpu.reciprocal %103 {approx = true} : vector<8x64xf32> -> vector<8x64xf32>
    %105 = arith.mulf %102, %104 : vector<8x64xf32>
    %cst_42 = arith.constant dense<0.000000e+00> : vector<8x64xf32>
    %106 = tpu.matmul %105, %55, %cst_42 {dimension_numbers = #tpu.dot_dimension_numbers<[1], [0], [0], [1], [0, 0, 1, 1], [], []>} : vector<8x64xf32>, vector<64x64xf32>, vector<8x64xf32> -> vector<8x64xf32>
    %107 = vector.extract_strided_slice %88 {offsets = [8, 0], sizes = [8, 64], strides = [1, 1]} : vector<16x64xf32> to vector<8x64xf32>
    %cst_43 = arith.constant dense<0.000000e+00> : vector<8x64xf32>
    %108 = tpu.matmul %107, %61, %cst_43 {dimension_numbers = #tpu.dot_dimension_numbers<[1], [0], [0], [1], [0, 0, 1, 1], [], []>} : vector<8x64xf32>, vector<64x64xf32>, vector<8x64xf32> -> vector<8x64xf32>
    %cst_44 = arith.constant dense<0xFF800000> : vector<64xf32>
    %109 = vector.multi_reduction <maximumf>, %108, %cst_44 [0] : vector<8x64xf32> to vector<64xf32>
    %110 = vector.shape_cast %109 : vector<64xf32> to vector<1x64xf32>
    %111 = vector.broadcast %110 : vector<1x64xf32> to vector<8x64xf32>
    %112 = arith.subf %108, %111 : vector<8x64xf32>
    %113 = math.exp %112 : vector<8x64xf32>
    %cst_45 = arith.constant dense<0.000000e+00> : vector<64xf32>
    %114 = vector.multi_reduction <add>, %113, %cst_45 [0] : vector<8x64xf32> to vector<64xf32>
    %115 = vector.shape_cast %114 : vector<64xf32> to vector<1x64xf32>
    %116 = tpu.reciprocal %115 {approx = true} : vector<1x64xf32> -> vector<1x64xf32>
    %117 = vector.broadcast %116 : vector<1x64xf32> to vector<8x64xf32>
    %118 = arith.mulf %113, %117 : vector<8x64xf32>
    %cst_46 = arith.constant 9.99999993E-9 : f32
    %119 = vector.broadcast %cst_46 : f32 to vector<8x64xf32>
    %120 = arith.addf %118, %119 : vector<8x64xf32>
    %cst_47 = arith.constant dense<0.000000e+00> : vector<8x64xf32>
    %121 = tpu.matmul %120, %20, %cst_47 {dimension_numbers = #tpu.dot_dimension_numbers<[1], [0], [0], [1], [0, 0, 1, 1], [], []>} : vector<8x64xf32>, vector<64x64xf32>, vector<8x64xf32> -> vector<8x64xf32>
    %122 = tpu.reciprocal %121 {approx = true} : vector<8x64xf32> -> vector<8x64xf32>
    %123 = arith.mulf %120, %122 : vector<8x64xf32>
    %cst_48 = arith.constant dense<0.000000e+00> : vector<8x64xf32>
    %124 = tpu.matmul %123, %63, %cst_48 {dimension_numbers = #tpu.dot_dimension_numbers<[1], [0], [0], [1], [0, 0, 1, 1], [], []>} : vector<8x64xf32>, vector<64x64xf32>, vector<8x64xf32> -> vector<8x64xf32>
    %125 = tpu.concatenate %106, %124 in 0 : vector<8x64xf32>, vector<8x64xf32> -> vector<16x64xf32>
    %cst_49 = arith.constant dense<0.000000e+00> : vector<16x32xf32>
    %126 = tpu.matmul %125, %14, %cst_49 {dimension_numbers = #tpu.dot_dimension_numbers<[1], [0], [0], [1], [0, 0, 1, 1], [], []>} : vector<16x64xf32>, vector<64x32xf32>, vector<16x32xf32> -> vector<16x32xf32>
    %127 = vector.broadcast %8 : vector<1x32xf32> to vector<16x32xf32>
    %128 = arith.addf %126, %127 : vector<16x32xf32>
    %129 = tpu.concatenate %128, %22 in 1 : vector<16x32xf32>, vector<16x32xf32> -> vector<16x64xf32>
    %cst_50 = arith.constant dense<0.000000e+00> : vector<16x128xf32>
    %130 = tpu.matmul %129, %15, %cst_50 {dimension_numbers = #tpu.dot_dimension_numbers<[1], [0], [0], [1], [0, 0, 1, 1], [], []>} : vector<16x64xf32>, vector<64x128xf32>, vector<16x128xf32> -> vector<16x128xf32>
    %131 = vector.broadcast %9 : vector<1x128xf32> to vector<16x128xf32>
    %132 = arith.addf %130, %131 : vector<16x128xf32>
    %133 = vector.extract_strided_slice %132 {offsets = [0, 0], sizes = [16, 32], strides = [1, 1]} : vector<16x128xf32> to vector<16x32xf32>
    %134 = arith.negf %133 : vector<16x32xf32>
    %135 = math.exp %134 : vector<16x32xf32>
    %cst_51 = arith.constant 1.000000e+00 : f32
    %136 = vector.broadcast %cst_51 : f32 to vector<16x32xf32>
    %137 = arith.addf %136, %135 : vector<16x32xf32>
    %138 = arith.divf %136, %137 : vector<16x32xf32>
    %139 = vector.extract_strided_slice %132 {offsets = [0, 32], sizes = [16, 32], strides = [1, 1]} : vector<16x128xf32> to vector<16x32xf32>
    %140 = arith.negf %139 : vector<16x32xf32>
    %141 = math.exp %140 : vector<16x32xf32>
    %cst_52 = arith.constant 1.000000e+00 : f32
    %142 = vector.broadcast %cst_52 : f32 to vector<16x32xf32>
    %143 = arith.addf %142, %141 : vector<16x32xf32>
    %144 = arith.divf %142, %143 : vector<16x32xf32>
    %145 = vector.extract_strided_slice %132 {offsets = [0, 64], sizes = [16, 32], strides = [1, 1]} : vector<16x128xf32> to vector<16x32xf32>
    %146 = vector.extract_strided_slice %132 {offsets = [0, 96], sizes = [16, 32], strides = [1, 1]} : vector<16x128xf32> to vector<16x32xf32>
    %147 = arith.mulf %138, %146 : vector<16x32xf32>
    %148 = arith.addf %145, %147 : vector<16x32xf32>
    %149 = math.tanh %148 : vector<16x32xf32>
    %cst_53 = arith.constant 1.000000e+00 : f32
    %150 = vector.broadcast %cst_53 : f32 to vector<16x32xf32>
    %151 = arith.subf %150, %144 : vector<16x32xf32>
    %152 = arith.mulf %151, %149 : vector<16x32xf32>
    %153 = arith.mulf %144, %22 : vector<16x32xf32>
    %154 = arith.addf %152, %153 : vector<16x32xf32>
    %cst_54 = arith.constant dense<0.000000e+00> : vector<16xf32>
    %155 = vector.multi_reduction <add>, %154, %cst_54 [1] : vector<16x32xf32> to vector<16xf32>
    %156 = vector.shape_cast %155 : vector<16xf32> to vector<16x1xf32>
    %cst_55 = arith.constant 3.200000e+01 : f32
    %157 = vector.broadcast %cst_55 : f32 to vector<16x1xf32>
    %158 = arith.divf %156, %157 : vector<16x1xf32>
    %159 = vector.broadcast %158 : vector<16x1xf32> to vector<16x32xf32>
    %160 = arith.subf %154, %159 : vector<16x32xf32>
    %161 = arith.mulf %160, %160 : vector<16x32xf32>
    %cst_56 = arith.constant dense<0.000000e+00> : vector<16xf32>
    %162 = vector.multi_reduction <add>, %161, %cst_56 [1] : vector<16x32xf32> to vector<16xf32>
    %163 = vector.shape_cast %162 : vector<16xf32> to vector<16x1xf32>
    %cst_57 = arith.constant 3.200000e+01 : f32
    %164 = vector.broadcast %cst_57 : f32 to vector<16x1xf32>
    %165 = arith.divf %163, %164 : vector<16x1xf32>
    %166 = vector.broadcast %158 : vector<16x1xf32> to vector<16x32xf32>
    %167 = arith.subf %154, %166 : vector<16x32xf32>
    %cst_58 = arith.constant 9.99999974E-6 : f32
    %168 = vector.broadcast %cst_58 : f32 to vector<16x1xf32>
    %169 = arith.addf %165, %168 : vector<16x1xf32>
    %170 = math.rsqrt %169 : vector<16x1xf32>
    %171 = vector.broadcast %170 : vector<16x1xf32> to vector<16x32xf32>
    %172 = arith.mulf %167, %171 : vector<16x32xf32>
    %173 = vector.broadcast %4 : vector<1x32xf32> to vector<16x32xf32>
    %174 = arith.mulf %172, %173 : vector<16x32xf32>
    %175 = vector.broadcast %5 : vector<1x32xf32> to vector<16x32xf32>
    %176 = arith.addf %174, %175 : vector<16x32xf32>
    %cst_59 = arith.constant dense<0.000000e+00> : vector<16x64xf32>
    %177 = tpu.matmul %176, %16, %cst_59 {dimension_numbers = #tpu.dot_dimension_numbers<[1], [0], [0], [1], [0, 0, 1, 1], [], []>} : vector<16x32xf32>, vector<32x64xf32>, vector<16x64xf32> -> vector<16x64xf32>
    %178 = vector.broadcast %10 : vector<1x64xf32> to vector<16x64xf32>
    %179 = arith.addf %177, %178 : vector<16x64xf32>
    %cst_60 = arith.constant 0.000000e+00 : f32
    %180 = vector.broadcast %cst_60 : f32 to vector<16x64xf32>
    %181 = arith.maximumf %179, %180 : vector<16x64xf32>
    %cst_61 = arith.constant dense<0.000000e+00> : vector<16x32xf32>
    %182 = tpu.matmul %181, %17, %cst_61 {dimension_numbers = #tpu.dot_dimension_numbers<[1], [0], [0], [1], [0, 0, 1, 1], [], []>} : vector<16x64xf32>, vector<64x32xf32>, vector<16x32xf32> -> vector<16x32xf32>
    %183 = arith.addf %154, %182 : vector<16x32xf32>
    %184 = vector.broadcast %11 : vector<1x32xf32> to vector<16x32xf32>
    %185 = arith.addf %183, %184 : vector<16x32xf32>
    %cst_62 = arith.constant dense<0.000000e+00> : vector<16xf32>
    %186 = vector.multi_reduction <add>, %185, %cst_62 [1] : vector<16x32xf32> to vector<16xf32>
    %187 = vector.shape_cast %186 : vector<16xf32> to vector<16x1xf32>
    %cst_63 = arith.constant 3.200000e+01 : f32
    %188 = vector.broadcast %cst_63 : f32 to vector<16x1xf32>
    %189 = arith.divf %187, %188 : vector<16x1xf32>
    %190 = vector.broadcast %189 : vector<16x1xf32> to vector<16x32xf32>
    %191 = arith.subf %185, %190 : vector<16x32xf32>
    %192 = arith.mulf %191, %191 : vector<16x32xf32>
    %cst_64 = arith.constant dense<0.000000e+00> : vector<16xf32>
    %193 = vector.multi_reduction <add>, %192, %cst_64 [1] : vector<16x32xf32> to vector<16xf32>
    %194 = vector.shape_cast %193 : vector<16xf32> to vector<16x1xf32>
    %cst_65 = arith.constant 3.200000e+01 : f32
    %195 = vector.broadcast %cst_65 : f32 to vector<16x1xf32>
    %196 = arith.divf %194, %195 : vector<16x1xf32>
    %197 = vector.broadcast %189 : vector<16x1xf32> to vector<16x32xf32>
    %198 = arith.subf %185, %197 : vector<16x32xf32>
    %cst_66 = arith.constant 9.99999974E-6 : f32
    %199 = vector.broadcast %cst_66 : f32 to vector<16x1xf32>
    %200 = arith.addf %196, %199 : vector<16x1xf32>
    %201 = math.rsqrt %200 : vector<16x1xf32>
    %202 = vector.broadcast %201 : vector<16x1xf32> to vector<16x32xf32>
    %203 = arith.mulf %198, %202 : vector<16x32xf32>
    %204 = vector.broadcast %2 : vector<1x32xf32> to vector<16x32xf32>
    %205 = arith.mulf %203, %204 : vector<16x32xf32>
    %206 = vector.broadcast %3 : vector<1x32xf32> to vector<16x32xf32>
    %207 = arith.addf %205, %206 : vector<16x32xf32>
    %cst_67 = arith.constant dense<0.000000e+00> : vector<16x64xf32>
    %208 = tpu.matmul %207, %13, %cst_67 {dimension_numbers = #tpu.dot_dimension_numbers<[1], [0], [0], [1], [0, 0, 1, 1], [], []>} : vector<16x32xf32>, vector<32x64xf32>, vector<16x64xf32> -> vector<16x64xf32>
    %209 = vector.broadcast %7 : vector<1x64xf32> to vector<16x64xf32>
    %210 = arith.addf %208, %209 : vector<16x64xf32>
    %211 = vector.extract_strided_slice %210 {offsets = [0, 0], sizes = [8, 64], strides = [1, 1]} : vector<16x64xf32> to vector<8x64xf32>
    %cst_68 = arith.constant dense<0.000000e+00> : vector<8x64xf32>
    %212 = tpu.matmul %211, %53, %cst_68 {dimension_numbers = #tpu.dot_dimension_numbers<[1], [0], [0], [1], [0, 0, 1, 1], [], []>} : vector<8x64xf32>, vector<64x64xf32>, vector<8x64xf32> -> vector<8x64xf32>
    %cst_69 = arith.constant dense<0xFF800000> : vector<64xf32>
    %213 = vector.multi_reduction <maximumf>, %212, %cst_69 [0] : vector<8x64xf32> to vector<64xf32>
    %214 = vector.shape_cast %213 : vector<64xf32> to vector<1x64xf32>
    %215 = vector.broadcast %214 : vector<1x64xf32> to vector<8x64xf32>
    %216 = arith.subf %212, %215 : vector<8x64xf32>
    %217 = math.exp %216 : vector<8x64xf32>
    %cst_70 = arith.constant dense<0.000000e+00> : vector<64xf32>
    %218 = vector.multi_reduction <add>, %217, %cst_70 [0] : vector<8x64xf32> to vector<64xf32>
    %219 = vector.shape_cast %218 : vector<64xf32> to vector<1x64xf32>
    %220 = tpu.reciprocal %219 {approx = true} : vector<1x64xf32> -> vector<1x64xf32>
    %221 = vector.broadcast %220 : vector<1x64xf32> to vector<8x64xf32>
    %222 = arith.mulf %217, %221 : vector<8x64xf32>
    %cst_71 = arith.constant 9.99999993E-9 : f32
    %223 = vector.broadcast %cst_71 : f32 to vector<8x64xf32>
    %224 = arith.addf %222, %223 : vector<8x64xf32>
    %cst_72 = arith.constant dense<0.000000e+00> : vector<8x64xf32>
    %225 = tpu.matmul %224, %20, %cst_72 {dimension_numbers = #tpu.dot_dimension_numbers<[1], [0], [0], [1], [0, 0, 1, 1], [], []>} : vector<8x64xf32>, vector<64x64xf32>, vector<8x64xf32> -> vector<8x64xf32>
    %226 = tpu.reciprocal %225 {approx = true} : vector<8x64xf32> -> vector<8x64xf32>
    %227 = arith.mulf %224, %226 : vector<8x64xf32>
    %cst_73 = arith.constant dense<0.000000e+00> : vector<8x64xf32>
    %228 = tpu.matmul %227, %55, %cst_73 {dimension_numbers = #tpu.dot_dimension_numbers<[1], [0], [0], [1], [0, 0, 1, 1], [], []>} : vector<8x64xf32>, vector<64x64xf32>, vector<8x64xf32> -> vector<8x64xf32>
    %229 = vector.extract_strided_slice %210 {offsets = [8, 0], sizes = [8, 64], strides = [1, 1]} : vector<16x64xf32> to vector<8x64xf32>
    %cst_74 = arith.constant dense<0.000000e+00> : vector<8x64xf32>
    %230 = tpu.matmul %229, %61, %cst_74 {dimension_numbers = #tpu.dot_dimension_numbers<[1], [0], [0], [1], [0, 0, 1, 1], [], []>} : vector<8x64xf32>, vector<64x64xf32>, vector<8x64xf32> -> vector<8x64xf32>
    %cst_75 = arith.constant dense<0xFF800000> : vector<64xf32>
    %231 = vector.multi_reduction <maximumf>, %230, %cst_75 [0] : vector<8x64xf32> to vector<64xf32>
    %232 = vector.shape_cast %231 : vector<64xf32> to vector<1x64xf32>
    %233 = vector.broadcast %232 : vector<1x64xf32> to vector<8x64xf32>
    %234 = arith.subf %230, %233 : vector<8x64xf32>
    %235 = math.exp %234 : vector<8x64xf32>
    %cst_76 = arith.constant dense<0.000000e+00> : vector<64xf32>
    %236 = vector.multi_reduction <add>, %235, %cst_76 [0] : vector<8x64xf32> to vector<64xf32>
    %237 = vector.shape_cast %236 : vector<64xf32> to vector<1x64xf32>
    %238 = tpu.reciprocal %237 {approx = true} : vector<1x64xf32> -> vector<1x64xf32>
    %239 = vector.broadcast %238 : vector<1x64xf32> to vector<8x64xf32>
    %240 = arith.mulf %235, %239 : vector<8x64xf32>
    %cst_77 = arith.constant 9.99999993E-9 : f32
    %241 = vector.broadcast %cst_77 : f32 to vector<8x64xf32>
    %242 = arith.addf %240, %241 : vector<8x64xf32>
    %cst_78 = arith.constant dense<0.000000e+00> : vector<8x64xf32>
    %243 = tpu.matmul %242, %20, %cst_78 {dimension_numbers = #tpu.dot_dimension_numbers<[1], [0], [0], [1], [0, 0, 1, 1], [], []>} : vector<8x64xf32>, vector<64x64xf32>, vector<8x64xf32> -> vector<8x64xf32>
    %244 = tpu.reciprocal %243 {approx = true} : vector<8x64xf32> -> vector<8x64xf32>
    %245 = arith.mulf %242, %244 : vector<8x64xf32>
    %cst_79 = arith.constant dense<0.000000e+00> : vector<8x64xf32>
    %246 = tpu.matmul %245, %63, %cst_79 {dimension_numbers = #tpu.dot_dimension_numbers<[1], [0], [0], [1], [0, 0, 1, 1], [], []>} : vector<8x64xf32>, vector<64x64xf32>, vector<8x64xf32> -> vector<8x64xf32>
    %247 = tpu.concatenate %228, %246 in 0 : vector<8x64xf32>, vector<8x64xf32> -> vector<16x64xf32>
    %cst_80 = arith.constant dense<0.000000e+00> : vector<16x32xf32>
    %248 = tpu.matmul %247, %14, %cst_80 {dimension_numbers = #tpu.dot_dimension_numbers<[1], [0], [0], [1], [0, 0, 1, 1], [], []>} : vector<16x64xf32>, vector<64x32xf32>, vector<16x32xf32> -> vector<16x32xf32>
    %249 = vector.broadcast %8 : vector<1x32xf32> to vector<16x32xf32>
    %250 = arith.addf %248, %249 : vector<16x32xf32>
    %251 = tpu.concatenate %250, %185 in 1 : vector<16x32xf32>, vector<16x32xf32> -> vector<16x64xf32>
    %cst_81 = arith.constant dense<0.000000e+00> : vector<16x128xf32>
    %252 = tpu.matmul %251, %15, %cst_81 {dimension_numbers = #tpu.dot_dimension_numbers<[1], [0], [0], [1], [0, 0, 1, 1], [], []>} : vector<16x64xf32>, vector<64x128xf32>, vector<16x128xf32> -> vector<16x128xf32>
    %253 = vector.broadcast %9 : vector<1x128xf32> to vector<16x128xf32>
    %254 = arith.addf %252, %253 : vector<16x128xf32>
    %255 = vector.extract_strided_slice %254 {offsets = [0, 0], sizes = [16, 32], strides = [1, 1]} : vector<16x128xf32> to vector<16x32xf32>
    %256 = arith.negf %255 : vector<16x32xf32>
    %257 = math.exp %256 : vector<16x32xf32>
    %cst_82 = arith.constant 1.000000e+00 : f32
    %258 = vector.broadcast %cst_82 : f32 to vector<16x32xf32>
    %259 = arith.addf %258, %257 : vector<16x32xf32>
    %260 = arith.divf %258, %259 : vector<16x32xf32>
    %261 = vector.extract_strided_slice %254 {offsets = [0, 32], sizes = [16, 32], strides = [1, 1]} : vector<16x128xf32> to vector<16x32xf32>
    %262 = arith.negf %261 : vector<16x32xf32>
    %263 = math.exp %262 : vector<16x32xf32>
    %cst_83 = arith.constant 1.000000e+00 : f32
    %264 = vector.broadcast %cst_83 : f32 to vector<16x32xf32>
    %265 = arith.addf %264, %263 : vector<16x32xf32>
    %266 = arith.divf %264, %265 : vector<16x32xf32>
    %267 = vector.extract_strided_slice %254 {offsets = [0, 64], sizes = [16, 32], strides = [1, 1]} : vector<16x128xf32> to vector<16x32xf32>
    %268 = vector.extract_strided_slice %254 {offsets = [0, 96], sizes = [16, 32], strides = [1, 1]} : vector<16x128xf32> to vector<16x32xf32>
    %269 = arith.mulf %260, %268 : vector<16x32xf32>
    %270 = arith.addf %267, %269 : vector<16x32xf32>
    %271 = math.tanh %270 : vector<16x32xf32>
    %cst_84 = arith.constant 1.000000e+00 : f32
    %272 = vector.broadcast %cst_84 : f32 to vector<16x32xf32>
    %273 = arith.subf %272, %266 : vector<16x32xf32>
    %274 = arith.mulf %273, %271 : vector<16x32xf32>
    %275 = arith.mulf %266, %185 : vector<16x32xf32>
    %276 = arith.addf %274, %275 : vector<16x32xf32>
    %cst_85 = arith.constant dense<0.000000e+00> : vector<16xf32>
    %277 = vector.multi_reduction <add>, %276, %cst_85 [1] : vector<16x32xf32> to vector<16xf32>
    %278 = vector.shape_cast %277 : vector<16xf32> to vector<16x1xf32>
    %cst_86 = arith.constant 3.200000e+01 : f32
    %279 = vector.broadcast %cst_86 : f32 to vector<16x1xf32>
    %280 = arith.divf %278, %279 : vector<16x1xf32>
    %281 = vector.broadcast %280 : vector<16x1xf32> to vector<16x32xf32>
    %282 = arith.subf %276, %281 : vector<16x32xf32>
    %283 = arith.mulf %282, %282 : vector<16x32xf32>
    %cst_87 = arith.constant dense<0.000000e+00> : vector<16xf32>
    %284 = vector.multi_reduction <add>, %283, %cst_87 [1] : vector<16x32xf32> to vector<16xf32>
    %285 = vector.shape_cast %284 : vector<16xf32> to vector<16x1xf32>
    %cst_88 = arith.constant 3.200000e+01 : f32
    %286 = vector.broadcast %cst_88 : f32 to vector<16x1xf32>
    %287 = arith.divf %285, %286 : vector<16x1xf32>
    %288 = vector.broadcast %280 : vector<16x1xf32> to vector<16x32xf32>
    %289 = arith.subf %276, %288 : vector<16x32xf32>
    %cst_89 = arith.constant 9.99999974E-6 : f32
    %290 = vector.broadcast %cst_89 : f32 to vector<16x1xf32>
    %291 = arith.addf %287, %290 : vector<16x1xf32>
    %292 = math.rsqrt %291 : vector<16x1xf32>
    %293 = vector.broadcast %292 : vector<16x1xf32> to vector<16x32xf32>
    %294 = arith.mulf %289, %293 : vector<16x32xf32>
    %295 = vector.broadcast %4 : vector<1x32xf32> to vector<16x32xf32>
    %296 = arith.mulf %294, %295 : vector<16x32xf32>
    %297 = vector.broadcast %5 : vector<1x32xf32> to vector<16x32xf32>
    %298 = arith.addf %296, %297 : vector<16x32xf32>
    %cst_90 = arith.constant dense<0.000000e+00> : vector<16x64xf32>
    %299 = tpu.matmul %298, %16, %cst_90 {dimension_numbers = #tpu.dot_dimension_numbers<[1], [0], [0], [1], [0, 0, 1, 1], [], []>} : vector<16x32xf32>, vector<32x64xf32>, vector<16x64xf32> -> vector<16x64xf32>
    %300 = vector.broadcast %10 : vector<1x64xf32> to vector<16x64xf32>
    %301 = arith.addf %299, %300 : vector<16x64xf32>
    %cst_91 = arith.constant 0.000000e+00 : f32
    %302 = vector.broadcast %cst_91 : f32 to vector<16x64xf32>
    %303 = arith.maximumf %301, %302 : vector<16x64xf32>
    %cst_92 = arith.constant dense<0.000000e+00> : vector<16x32xf32>
    %304 = tpu.matmul %303, %17, %cst_92 {dimension_numbers = #tpu.dot_dimension_numbers<[1], [0], [0], [1], [0, 0, 1, 1], [], []>} : vector<16x64xf32>, vector<64x32xf32>, vector<16x32xf32> -> vector<16x32xf32>
    %305 = arith.addf %276, %304 : vector<16x32xf32>
    %306 = vector.broadcast %11 : vector<1x32xf32> to vector<16x32xf32>
    %307 = arith.addf %305, %306 : vector<16x32xf32>
    %cst_93 = arith.constant dense<0.000000e+00> : vector<16xf32>
    %308 = vector.multi_reduction <add>, %307, %cst_93 [1] : vector<16x32xf32> to vector<16xf32>
    %309 = vector.shape_cast %308 : vector<16xf32> to vector<16x1xf32>
    %cst_94 = arith.constant 3.200000e+01 : f32
    %310 = vector.broadcast %cst_94 : f32 to vector<16x1xf32>
    %311 = arith.divf %309, %310 : vector<16x1xf32>
    %312 = vector.broadcast %311 : vector<16x1xf32> to vector<16x32xf32>
    %313 = arith.subf %307, %312 : vector<16x32xf32>
    %314 = arith.mulf %313, %313 : vector<16x32xf32>
    %cst_95 = arith.constant dense<0.000000e+00> : vector<16xf32>
    %315 = vector.multi_reduction <add>, %314, %cst_95 [1] : vector<16x32xf32> to vector<16xf32>
    %316 = vector.shape_cast %315 : vector<16xf32> to vector<16x1xf32>
    %cst_96 = arith.constant 3.200000e+01 : f32
    %317 = vector.broadcast %cst_96 : f32 to vector<16x1xf32>
    %318 = arith.divf %316, %317 : vector<16x1xf32>
    %319 = vector.broadcast %311 : vector<16x1xf32> to vector<16x32xf32>
    %320 = arith.subf %307, %319 : vector<16x32xf32>
    %cst_97 = arith.constant 9.99999974E-6 : f32
    %321 = vector.broadcast %cst_97 : f32 to vector<16x1xf32>
    %322 = arith.addf %318, %321 : vector<16x1xf32>
    %323 = math.rsqrt %322 : vector<16x1xf32>
    %324 = vector.broadcast %323 : vector<16x1xf32> to vector<16x32xf32>
    %325 = arith.mulf %320, %324 : vector<16x32xf32>
    %326 = vector.broadcast %2 : vector<1x32xf32> to vector<16x32xf32>
    %327 = arith.mulf %325, %326 : vector<16x32xf32>
    %328 = vector.broadcast %3 : vector<1x32xf32> to vector<16x32xf32>
    %329 = arith.addf %327, %328 : vector<16x32xf32>
    %cst_98 = arith.constant dense<0.000000e+00> : vector<16x64xf32>
    %330 = tpu.matmul %329, %13, %cst_98 {dimension_numbers = #tpu.dot_dimension_numbers<[1], [0], [0], [1], [0, 0, 1, 1], [], []>} : vector<16x32xf32>, vector<32x64xf32>, vector<16x64xf32> -> vector<16x64xf32>
    %331 = vector.broadcast %7 : vector<1x64xf32> to vector<16x64xf32>
    %332 = arith.addf %330, %331 : vector<16x64xf32>
    %333 = vector.extract_strided_slice %332 {offsets = [0, 0], sizes = [8, 64], strides = [1, 1]} : vector<16x64xf32> to vector<8x64xf32>
    %cst_99 = arith.constant dense<0.000000e+00> : vector<8x64xf32>
    %334 = tpu.matmul %333, %53, %cst_99 {dimension_numbers = #tpu.dot_dimension_numbers<[1], [0], [0], [1], [0, 0, 1, 1], [], []>} : vector<8x64xf32>, vector<64x64xf32>, vector<8x64xf32> -> vector<8x64xf32>
    %cst_100 = arith.constant dense<0xFF800000> : vector<64xf32>
    %335 = vector.multi_reduction <maximumf>, %334, %cst_100 [0] : vector<8x64xf32> to vector<64xf32>
    %336 = vector.shape_cast %335 : vector<64xf32> to vector<1x64xf32>
    %337 = vector.broadcast %336 : vector<1x64xf32> to vector<8x64xf32>
    %338 = arith.subf %334, %337 : vector<8x64xf32>
    %339 = math.exp %338 : vector<8x64xf32>
    %cst_101 = arith.constant dense<0.000000e+00> : vector<64xf32>
    %340 = vector.multi_reduction <add>, %339, %cst_101 [0] : vector<8x64xf32> to vector<64xf32>
    %341 = vector.shape_cast %340 : vector<64xf32> to vector<1x64xf32>
    %342 = tpu.reciprocal %341 {approx = true} : vector<1x64xf32> -> vector<1x64xf32>
    %343 = vector.broadcast %342 : vector<1x64xf32> to vector<8x64xf32>
    %344 = arith.mulf %339, %343 : vector<8x64xf32>
    %cst_102 = arith.constant 9.99999993E-9 : f32
    %345 = vector.broadcast %cst_102 : f32 to vector<8x64xf32>
    %346 = arith.addf %344, %345 : vector<8x64xf32>
    %cst_103 = arith.constant dense<0.000000e+00> : vector<8x64xf32>
    %347 = tpu.matmul %346, %20, %cst_103 {dimension_numbers = #tpu.dot_dimension_numbers<[1], [0], [0], [1], [0, 0, 1, 1], [], []>} : vector<8x64xf32>, vector<64x64xf32>, vector<8x64xf32> -> vector<8x64xf32>
    %348 = tpu.reciprocal %347 {approx = true} : vector<8x64xf32> -> vector<8x64xf32>
    %349 = arith.mulf %346, %348 : vector<8x64xf32>
    %cst_104 = arith.constant dense<0.000000e+00> : vector<8x64xf32>
    %350 = tpu.matmul %349, %55, %cst_104 {dimension_numbers = #tpu.dot_dimension_numbers<[1], [0], [0], [1], [0, 0, 1, 1], [], []>} : vector<8x64xf32>, vector<64x64xf32>, vector<8x64xf32> -> vector<8x64xf32>
    %351 = vector.extract_strided_slice %332 {offsets = [8, 0], sizes = [8, 64], strides = [1, 1]} : vector<16x64xf32> to vector<8x64xf32>
    %cst_105 = arith.constant dense<0.000000e+00> : vector<8x64xf32>
    %352 = tpu.matmul %351, %61, %cst_105 {dimension_numbers = #tpu.dot_dimension_numbers<[1], [0], [0], [1], [0, 0, 1, 1], [], []>} : vector<8x64xf32>, vector<64x64xf32>, vector<8x64xf32> -> vector<8x64xf32>
    %cst_106 = arith.constant dense<0xFF800000> : vector<64xf32>
    %353 = vector.multi_reduction <maximumf>, %352, %cst_106 [0] : vector<8x64xf32> to vector<64xf32>
    %354 = vector.shape_cast %353 : vector<64xf32> to vector<1x64xf32>
    %355 = vector.broadcast %354 : vector<1x64xf32> to vector<8x64xf32>
    %356 = arith.subf %352, %355 : vector<8x64xf32>
    %357 = math.exp %356 : vector<8x64xf32>
    %cst_107 = arith.constant dense<0.000000e+00> : vector<64xf32>
    %358 = vector.multi_reduction <add>, %357, %cst_107 [0] : vector<8x64xf32> to vector<64xf32>
    %359 = vector.shape_cast %358 : vector<64xf32> to vector<1x64xf32>
    %360 = tpu.reciprocal %359 {approx = true} : vector<1x64xf32> -> vector<1x64xf32>
    %361 = vector.broadcast %360 : vector<1x64xf32> to vector<8x64xf32>
    %362 = arith.mulf %357, %361 : vector<8x64xf32>
    %cst_108 = arith.constant 9.99999993E-9 : f32
    %363 = vector.broadcast %cst_108 : f32 to vector<8x64xf32>
    %364 = arith.addf %362, %363 : vector<8x64xf32>
    %cst_109 = arith.constant dense<0.000000e+00> : vector<8x64xf32>
    %365 = tpu.matmul %364, %20, %cst_109 {dimension_numbers = #tpu.dot_dimension_numbers<[1], [0], [0], [1], [0, 0, 1, 1], [], []>} : vector<8x64xf32>, vector<64x64xf32>, vector<8x64xf32> -> vector<8x64xf32>
    %366 = tpu.reciprocal %365 {approx = true} : vector<8x64xf32> -> vector<8x64xf32>
    %367 = arith.mulf %364, %366 : vector<8x64xf32>
    %cst_110 = arith.constant dense<0.000000e+00> : vector<8x64xf32>
    %368 = tpu.matmul %367, %63, %cst_110 {dimension_numbers = #tpu.dot_dimension_numbers<[1], [0], [0], [1], [0, 0, 1, 1], [], []>} : vector<8x64xf32>, vector<64x64xf32>, vector<8x64xf32> -> vector<8x64xf32>
    %369 = tpu.concatenate %350, %368 in 0 : vector<8x64xf32>, vector<8x64xf32> -> vector<16x64xf32>
    %cst_111 = arith.constant dense<0.000000e+00> : vector<16x32xf32>
    %370 = tpu.matmul %369, %14, %cst_111 {dimension_numbers = #tpu.dot_dimension_numbers<[1], [0], [0], [1], [0, 0, 1, 1], [], []>} : vector<16x64xf32>, vector<64x32xf32>, vector<16x32xf32> -> vector<16x32xf32>
    %371 = vector.broadcast %8 : vector<1x32xf32> to vector<16x32xf32>
    %372 = arith.addf %370, %371 : vector<16x32xf32>
    %373 = tpu.concatenate %372, %307 in 1 : vector<16x32xf32>, vector<16x32xf32> -> vector<16x64xf32>
    %cst_112 = arith.constant dense<0.000000e+00> : vector<16x128xf32>
    %374 = tpu.matmul %373, %15, %cst_112 {dimension_numbers = #tpu.dot_dimension_numbers<[1], [0], [0], [1], [0, 0, 1, 1], [], []>} : vector<16x64xf32>, vector<64x128xf32>, vector<16x128xf32> -> vector<16x128xf32>
    %375 = vector.broadcast %9 : vector<1x128xf32> to vector<16x128xf32>
    %376 = arith.addf %374, %375 : vector<16x128xf32>
    %377 = vector.extract_strided_slice %376 {offsets = [0, 0], sizes = [16, 32], strides = [1, 1]} : vector<16x128xf32> to vector<16x32xf32>
    %378 = arith.negf %377 : vector<16x32xf32>
    %379 = math.exp %378 : vector<16x32xf32>
    %cst_113 = arith.constant 1.000000e+00 : f32
    %380 = vector.broadcast %cst_113 : f32 to vector<16x32xf32>
    %381 = arith.addf %380, %379 : vector<16x32xf32>
    %382 = arith.divf %380, %381 : vector<16x32xf32>
    %383 = vector.extract_strided_slice %376 {offsets = [0, 32], sizes = [16, 32], strides = [1, 1]} : vector<16x128xf32> to vector<16x32xf32>
    %384 = arith.negf %383 : vector<16x32xf32>
    %385 = math.exp %384 : vector<16x32xf32>
    %cst_114 = arith.constant 1.000000e+00 : f32
    %386 = vector.broadcast %cst_114 : f32 to vector<16x32xf32>
    %387 = arith.addf %386, %385 : vector<16x32xf32>
    %388 = arith.divf %386, %387 : vector<16x32xf32>
    %389 = vector.extract_strided_slice %376 {offsets = [0, 64], sizes = [16, 32], strides = [1, 1]} : vector<16x128xf32> to vector<16x32xf32>
    %390 = vector.extract_strided_slice %376 {offsets = [0, 96], sizes = [16, 32], strides = [1, 1]} : vector<16x128xf32> to vector<16x32xf32>
    %391 = arith.mulf %382, %390 : vector<16x32xf32>
    %392 = arith.addf %389, %391 : vector<16x32xf32>
    %393 = math.tanh %392 : vector<16x32xf32>
    %cst_115 = arith.constant 1.000000e+00 : f32
    %394 = vector.broadcast %cst_115 : f32 to vector<16x32xf32>
    %395 = arith.subf %394, %388 : vector<16x32xf32>
    %396 = arith.mulf %395, %393 : vector<16x32xf32>
    %397 = arith.mulf %388, %307 : vector<16x32xf32>
    %398 = arith.addf %396, %397 : vector<16x32xf32>
    %cst_116 = arith.constant dense<0.000000e+00> : vector<16xf32>
    %399 = vector.multi_reduction <add>, %398, %cst_116 [1] : vector<16x32xf32> to vector<16xf32>
    %400 = vector.shape_cast %399 : vector<16xf32> to vector<16x1xf32>
    %cst_117 = arith.constant 3.200000e+01 : f32
    %401 = vector.broadcast %cst_117 : f32 to vector<16x1xf32>
    %402 = arith.divf %400, %401 : vector<16x1xf32>
    %403 = vector.broadcast %402 : vector<16x1xf32> to vector<16x32xf32>
    %404 = arith.subf %398, %403 : vector<16x32xf32>
    %405 = arith.mulf %404, %404 : vector<16x32xf32>
    %cst_118 = arith.constant dense<0.000000e+00> : vector<16xf32>
    %406 = vector.multi_reduction <add>, %405, %cst_118 [1] : vector<16x32xf32> to vector<16xf32>
    %407 = vector.shape_cast %406 : vector<16xf32> to vector<16x1xf32>
    %cst_119 = arith.constant 3.200000e+01 : f32
    %408 = vector.broadcast %cst_119 : f32 to vector<16x1xf32>
    %409 = arith.divf %407, %408 : vector<16x1xf32>
    %410 = vector.broadcast %402 : vector<16x1xf32> to vector<16x32xf32>
    %411 = arith.subf %398, %410 : vector<16x32xf32>
    %cst_120 = arith.constant 9.99999974E-6 : f32
    %412 = vector.broadcast %cst_120 : f32 to vector<16x1xf32>
    %413 = arith.addf %409, %412 : vector<16x1xf32>
    %414 = math.rsqrt %413 : vector<16x1xf32>
    %415 = vector.broadcast %414 : vector<16x1xf32> to vector<16x32xf32>
    %416 = arith.mulf %411, %415 : vector<16x32xf32>
    %417 = vector.broadcast %4 : vector<1x32xf32> to vector<16x32xf32>
    %418 = arith.mulf %416, %417 : vector<16x32xf32>
    %419 = vector.broadcast %5 : vector<1x32xf32> to vector<16x32xf32>
    %420 = arith.addf %418, %419 : vector<16x32xf32>
    %cst_121 = arith.constant dense<0.000000e+00> : vector<16x64xf32>
    %421 = tpu.matmul %420, %16, %cst_121 {dimension_numbers = #tpu.dot_dimension_numbers<[1], [0], [0], [1], [0, 0, 1, 1], [], []>} : vector<16x32xf32>, vector<32x64xf32>, vector<16x64xf32> -> vector<16x64xf32>
    %422 = vector.broadcast %10 : vector<1x64xf32> to vector<16x64xf32>
    %423 = arith.addf %421, %422 : vector<16x64xf32>
    %cst_122 = arith.constant 0.000000e+00 : f32
    %424 = vector.broadcast %cst_122 : f32 to vector<16x64xf32>
    %425 = arith.maximumf %423, %424 : vector<16x64xf32>
    %cst_123 = arith.constant dense<0.000000e+00> : vector<16x32xf32>
    %426 = tpu.matmul %425, %17, %cst_123 {dimension_numbers = #tpu.dot_dimension_numbers<[1], [0], [0], [1], [0, 0, 1, 1], [], []>} : vector<16x64xf32>, vector<64x32xf32>, vector<16x32xf32> -> vector<16x32xf32>
    %427 = arith.addf %398, %426 : vector<16x32xf32>
    %428 = vector.broadcast %11 : vector<1x32xf32> to vector<16x32xf32>
    %429 = arith.addf %427, %428 : vector<16x32xf32>
    %c0_124 = arith.constant 0 : index
    %c0_125 = arith.constant 0 : index
    %430 = vector.load %arg5[%c0_124, %c0_125] : memref<16x32xf32, #tpu.memory_space<vmem>>, vector<16x32xf32>
    tpu.vector_store %arg5[%c0_124, %c0_125], %429 {strides = array<i32>} : memref<16x32xf32, #tpu.memory_space<vmem>>, vector<16x32xf32>,
    return
  }
  func.func @transform_0(%arg0: i32) -> (i32, i32) {
    %c0_i32 = arith.constant 0 : i32
    %c0_i32_0 = arith.constant 0 : i32
    return %arg0, %c0_i32 : i32, i32
  }
  func.func @transform_1(%arg0: i32) -> (i32, i32) {
    %c0_i32 = arith.constant 0 : i32
    %c0_i32_0 = arith.constant 0 : i32
    return %arg0, %c0_i32 : i32, i32
  }
  func.func @transform_2(%arg0: i32) -> (i32, i32) {
    %c0_i32 = arith.constant 0 : i32
    %c0_i32_0 = arith.constant 0 : i32
    %c0_i32_1 = arith.constant 0 : i32
    return %c0_i32, %c0_i32_0 : i32, i32
  }
  func.func @transform_3(%arg0: i32) -> (i32, i32) {
    %c0_i32 = arith.constant 0 : i32
    %c0_i32_0 = arith.constant 0 : i32
    %c0_i32_1 = arith.constant 0 : i32
    return %c0_i32, %c0_i32_0 : i32, i32
  }
  func.func @transform_4(%arg0: i32) -> (i32, i32) {
    %c0_i32 = arith.constant 0 : i32
    %c0_i32_0 = arith.constant 0 : i32
    return %arg0, %c0_i32 : i32, i32
  }
}

</mosaic_0001>

<bundles_post_ra>
// kernel: tpu_custom_call.1
= control target key start
LH: loop header
LB: loop body
LE: loop exit
PB: predicated region body
PF: predicated region fallthrough
CT: control target
= control target key end

     0   :  { %9 = vsyncpa [#allocation3], 0  ;;  %s6908_s0 = inlined_call_operand.vmem [shape: f32[64,32], index: 0, kind: input, shape index: {}]   ;;  %s6909_s1 = inlined_call_operand.vmem [shape: f32[32,32], index: 1, kind: input, shape index: {}]   ;;  %s6910_s2 = inlined_call_operand.hbm [shape: f32[480,128], index: 2, kind: input, shape index: {}]   ;;  %s6911_s3 = inlined_call_operand.vmem [shape: f32[12,128], index: 3, kind: input, shape index: {}]   ;;  %s6912_s4 = inlined_call_operand.hbm [shape: f32[32,32], index: 4, kind: output, shape index: {}]  }
   0x1   :  { %10 = vsyncpa [#allocation4], 0 }
   0x2   :  { %12 = vsyncpa [#allocation4 + $0x1], 0  ;;  %s5520_s15 = smov 0   ;;  %s5522_s16 = smov 0  }
   0x3   :  { %s5524_s17 = smov 0   ;;  %s5526_s18 = smov 0  }
   0x4 LB: > { %s5541_s19 = sadd.s32 4294967295, %s5480_s18   ;;  %s4201_s20 = sadd.s32 4294967294, %s5480_s18   ;;  %s5480_s18 = sphi %s5526_s18, %s7060_s18   ;;  %s5476_s17 = sphi %s5524_s17, %s7059_s17   ;;  %s5472_s16 = sphi %s5522_s16, %s7058_s16   ;;  %s5468_s15 = sphi %s5520_s15, %s7057_s15  }
   0x5   : > { %s5545_s21 = sadd.s32 1, %s5480_s18   ;;  %s119_s22 = sadd.s32 1, %s5476_s17 }
   0x6   : > { %s116_s23 = ssub.s32 %s5480_s18, %s5545_s21  ;;  %p129_p0 = scmp.ne.s32.totalorder %s5476_s17, %s5472_s16 }
   0x7   : > { %p117_p1 = scmp.eq.s32.totalorder %s116_s23, 0  ;;  %p130_p2 = scmp.eq.s32.totalorder %s5541_s19, 1 }
   0x8   : > { %p135_p3 = scmp.ne.s32.totalorder %s5472_s16, %s5468_s15  ;;  %p136_p4 = scmp.eq.s32.totalorder %s4201_s20, 1 }
   0x9   : > { %s5556_s24 = scalar_select %p117_p1, %s5476_s17, %s119_s22  }
   0xa   : > { %p5558_p5 = por %p130_p2, %p129_p0  ;;  %p5562_p6 = por %p136_p4, %p135_p3 }
   0xb   : > { %p4202_p7 = scmp.ge.s32.totalorder %s5480_s18, 1  ;;  %p143_p8 = scmp.lt.s32.totalorder %s5480_s18, 3 }
   0xc   : > { %s6980_s26 = scalar_select %p5562_p6, 1, 0 }
   0xd   : > { %p5191_p9 = scmp.eq.s32.totalorder %s5541_s19, 0  ;;  %p5569_p10 = pnand %p4202_p7, %p143_p8 }
   0xe   : > { %s5482_s28 = smov [#allocation2]  }
   0xf   : > { %s155_s29 = sshll.u32 %s5482_s28, 4  ;;  %p5183_p11 = pneg %p5569_p10  ;;  %s156_s29 = int_to_ptr.vmem [resolvable:$true] %s155_s29 }
  0x10   : > { %s5401_s30 = scalar_lea.vmem %s156_s29, 7680  ;;  %p5409_p3 = scmp.lt.s32.totalorder %s156_s29, %s156_s29 }
  0x11   : > { %p5184_p12 = pnand %p5191_p9, %p5183_p11  ;;  %p5402_p0 = scmp.ne.s32.totalorder %s156_s29, %s5401_s30 }
  0x12   : > { %p5410_p4 = scmp.lt.s32.totalorder %s5401_s30, %s5401_s30 }
  0x13   : > { %p5392_p13 = pneg %p5184_p12 }
  0x14   : > { %p5411_p6 = por %p5410_p4, %p5409_p3 }
  0x15   : > { %p5404_p1 = pnand %p5402_p0, %p5392_p13 }
  0x17   : > { %p5405_p2 = pneg %p5404_p1 }
  0x19   : > { %p5412_p7 = pnand %p5411_p6, %p5405_p2 }
  0x1b   : > { %5415 = shalt.err (!%p5412_p7)
}
  0x1c   : > { %s5483_s5 = smov 128   ;;  %s5484_s6 = smov 8  }
  0x1d   : > { %5186 = dma.hbm_to_vmem [thread:$0]  (!%p5184_p12), %s6910_s2, 7680, %s156_s29, [#allocation3], %s5483_s5, %s5483_s5, %s5484_s6  }
  0x1e   : > { %192 = sbr.rel (%p5569_p10) target bundleno = 11342 (0x2c4e), region = 36 }
  0x23   : > { %5459 = dma.done.wait (%p5191_p9), [#allocation3], 7680  }
  0x24   : > { %5461 = vsyncadd (%p5191_p9), [#allocation3], 4294959616  ;;  %s4208_s9 = sshll.u32 %s5541_s19, 2  ;;  %s4210_s10 = sshll.u32 %s5541_s19, 1  ;;  %vm314_vm0 = vcmask 261120   ;;  %v251_v25 = vld [vmem:[#allocation2 + $0x18] sm:$0xff] }
  0x25   : > { %p224_p6 = scmp.lt.s32.totalorder %s4208_s9, 7  ;;  %p230_p8 = scmp.lt.s32.totalorder %s4210_s10, 3  ;;  %v250_v26 = vld [vmem:[#allocation2 + $0x10] sm:$0xff]  ;;  %4584 = vmatprep.subr.mxu0 %v251_v25  ;;  %v249_v27 = vld [vmem:[#allocation2 + $0x8] sm:$0xff]  ;;  %v248_v28 = vld [vmem:[#allocation2] sm:$0xff]  ;;  %vm5489_vm1 = vmmov 0  }
  0x26   : > { %4585 = vmatpush3.msra.mxu0 %v251_v25  ;;  %v5629_v50 = vld [vmem:[%s6911_s3] ss:$0 sm:$0xff]  ;;  %v5635_v53 = vld [vmem:[%s6911_s3 + $0x1] ss:$0 sm:$0xff]  ;;  %v4219_v60 = vld [vmem:[%s6911_s3 + $0x2] ss:$0 sm:$0xff] }
  0x27   : > { %s7062_s9 = smov (!%p224_p6, %s4208_s9), 7  ;;  %s7064_s10 = smov (!%p230_p8, %s4210_s10), 3  ;;  %4586 = vmatprep.subr.mxu0 %v250_v26  ;;  %v4220_v63 = vld [vmem:[%s6911_s3 + $0x3] ss:$0 sm:$0xff]  ;;  %vm597_vm2 = vcmask 130048   ;;  %vm614_vm3 = vcmask 392192  }
  0x28   : > { %s4209_s11 = sshll.u32 %s7062_s9, 3  ;;  %s4211_s20 = sshll.u32 %s7064_s10, 3  ;;  %4587 = vmatpush3.msra.mxu0 %v250_v26  ;;  %vm946_vm4 = vcmask 523264  }
  0x29   : > { %s5591_s14 = scalar_lea.vmem %s6908_s0, %s4209_s11  ;;  %s233_s27 = scalar_lea.vmem %s6909_s1, %s4211_s20  ;;  %4588 = vmatprep.subr.mxu0 %v249_v27 }
  0x2a   : > { %v308_v0 = vld [vmem:[%s5591_s14] sm:$0xff]  ;;  %v309_v1 = vld [vmem:[%s5591_s14 + $0x8] sm:$0xff]  ;;  %v310_v22 = vld [vmem:[%s5591_s14 + $0x10] sm:$0xff]  ;;  %4589 = vmatpush3.msra.mxu0 %v249_v27  ;;  %s5485_s12 = smov 16   ;;  %s5486_s13 = smov 48  }
  0x2b   : > { %v315_v2 = vsel %vm314_vm0, %v308_v0, 0.0  ;;  %v318_v3 = vsel %vm314_vm0, %v309_v1, 0.0  ;;  %v5600_v4 = vld [vmem:[%s233_s27] sm:$0xff]  ;;  %v5609_v17 = vld [vmem:[%s233_s27 + $0x8] sm:$0xff]  ;;  %v321_v24 = vsel %vm314_vm0, %v310_v22, 0.0  ;;  %4590 = vmatprep.subr.mxu0 %v248_v28  ;;  %v311_v44 = vld [vmem:[%s5591_s14 + $0x18] sm:$0xff] }
  0x2c   : > { %316 = vadd.xlane.f32.xlu0 %v315_v2  ;;  %v823_v5 = vsel %vm314_vm0, %v5600_v4, 0.0  ;;  %v826_v20 = vsel %vm314_vm0, %v5609_v17, 0.0  ;;  %4591 = vmatpush3.msra.mxu0 %v248_v28  ;;  %v324_v47 = vsel %vm314_vm0, %v311_v44, 0.0  ;;  %v255_v2 = vld [vmem:[#allocation2 + $0x38] sm:$0xff]  ;;  %v5660_v28 = vld [vmem:[%s6911_s3 + $0x6] ss:$0 sm:$0xff] }
  0x2d   : > { %4598 = vmatprep.subr.mxu1 %v255_v2  ;;  %s5487_s14 = smov 32   ;;  %s5490_s23 = smov 64  }
  0x2e   : > { %4599 = vmatpush3.msra.mxu1 %v255_v2  ;;  %s5491_s5 = smov 96   ;;  %s220_s11 = sand.u32 1, %s5472_s16  }
  0x30   : > { %319 = vadd.xlane.f32.xlu0 %v318_v3  ;;  %v254_v3 = vld [vmem:[#allocation2 + $0x30] sm:$0xff] }
  0x31   : > { %4600 = vmatprep.subr.mxu1 %v254_v3 }
  0x32   : > { %4601 = vmatpush3.msra.mxu1 %v254_v3 }
  0x34   : > { %824 = vadd.xlane.f32.xlu0 %v823_v5  ;;  %v253_v5 = vld [vmem:[#allocation2 + $0x28] sm:$0xff] }
  0x35   : > { %4602 = vmatprep.subr.mxu1 %v253_v5 }
  0x36   : > { %4603 = vmatpush3.msra.mxu1 %v253_v5 }
  0xb5   : > { %v317_v6 = vpop.xlane.xlu0 %316 }
  0xb6   : > { %v328_v7 = vmul.f32 0.03125, %v317_v6  ;;  %v252_v6 = vld [vmem:[#allocation2 + $0x20] sm:$0xff] }
  0xb7   : > { %4604 = vmatprep.subr.mxu1 %v252_v6 }
  0xb8   : > { %v332_v8 = vsub.f32 %v308_v0, %v328_v7  ;;  %4605 = vmatpush3.msra.mxu1 %v252_v6 }
  0xb9   : > { %v320_v9 = vpop.xlane.xlu0 %319 }
  0xba   : > { %v329_v10 = vmul.f32 0.03125, %v320_v9  ;;  %v336_v11 = vmul.f32 %v332_v8, %v332_v8 }
  0xbc   : > { %v5604_v12 = vsub.f32 %v309_v1, %v329_v10  ;;  %v340_v13 = vsel %vm314_vm0, %v336_v11, 0.0 }
  0xbd   : > { %341 = vadd.xlane.f32.xlu1 %v340_v13  ;;  %v825_v14 = vpop.xlane.xlu0 %824 }
  0xbe   : > { %v829_v15 = vmul.f32 0.03125, %v825_v14  ;;  %v337_v16 = vmul.f32 %v5604_v12, %v5604_v12 }
  0xc0   : > { %v5612_v18 = vsub.f32 %v5600_v4, %v829_v15  ;;  %v343_v19 = vsel %vm314_vm0, %v337_v16, 0.0 }
  0xc1   : > { %344 = vadd.xlane.f32.xlu1 %v343_v19 }
  0xc2   : > { %v833_v21 = vmul.f32 %v5612_v18, %v5612_v18 }
  0xc4   : > { %v835_v23 = vsel %vm314_vm0, %v833_v21, 0.0 }
  0xc5   : > { %827 = vadd.xlane.f32.xlu1 %v826_v20  ;;  %836 = vadd.xlane.f32.xlu0 %v835_v23 }
  0xc9   : > { %322 = vadd.xlane.f32.xlu0 %v321_v24 }
 0x146   : > { %v342_v29 = vpop.xlane.xlu1 %341 }
 0x147   : > { %v352_v30 = vmul.f32 0.03125, %v342_v29 }
 0x149   : > { %v356_v31 = vadd.f32 1e-05, %v352_v30 }
 0x14a   : > { %v345_v32 = vpop.xlane.xlu1 %344 }
 0x14b   : > { %5238 = vrsqrt.f32 %v356_v31  ;;  %v353_v33 = vmul.f32 0.03125, %v345_v32 }
 0x14d   : > { %v357_v34 = vadd.f32 1e-05, %v353_v33 }
 0x14e   : > { %v828_v35 = vpop.xlane.xlu1 %827  ;;  %v837_v36 = vpop.xlane.xlu0 %836 }
 0x14f   : > { %5240 = vrsqrt.f32 %v357_v34  ;;  %v830_v37 = vmul.f32 0.03125, %v828_v35  ;;  %v841_v38 = vmul.f32 0.03125, %v837_v36 }
 0x151   : > { %v832_v39 = vsub.f32 %v5609_v17, %v830_v37  ;;  %v843_v40 = vadd.f32 1e-05, %v841_v38 }
 0x152   : > { %v323_v41 = vpop.xlane.xlu0 %322 }
 0x153   : > { %5242 = vrsqrt.f32 %v843_v40  ;;  %v330_v42 = vmul.f32 0.03125, %v323_v41  ;;  %v834_v43 = vmul.f32 %v832_v39, %v832_v39 }
 0x155   : > { %v334_v45 = vsub.f32 %v310_v22, %v330_v42  ;;  %v838_v46 = vsel %vm314_vm0, %v834_v43, 0.0 }
 0x156   : > { %839 = vadd.xlane.f32.xlu1 %v838_v46 }
 0x157   : > { %v338_v48 = vmul.f32 %v334_v45, %v334_v45 }
 0x158   : > { %v5239_v49 = vpop.eup %5238 }
 0x159   : > { %v346_v51 = vsel %vm314_vm0, %v338_v48, 0.0  ;;  %v364_v52 = vmul.f32 %v5239_v49, %v332_v8 }
 0x15a   : > { %325 = vadd.xlane.f32.xlu1 %v324_v47  ;;  %347 = vadd.xlane.f32.xlu0 %v346_v51  ;;  %v6913_v47 = vmov 0.0  }
 0x15b   : > { %v372_v54 = vmul.f32 %v5629_v50, %v364_v52  ;;  %4609 = vmatprep.subr.mxu0 %v6913_v47  ;;  %4628 = vmatprep.subr.mxu1 %v6913_v47 }
 0x15c   : > { %v5241_v55 = vpop.eup %5240 }
 0x15d   : > { %v380_v56 = vadd.f32 %v5635_v53, %v372_v54  ;;  %v365_v57 = vmul.f32 %v5241_v55, %v5604_v12 }
 0x15f   : > { %4592 = vmatprep.mubr.msk.f32.mxu0 %vm314_vm0, %v380_v56  ;;  %v373_v58 = vmul.f32 %v5629_v50, %v365_v57 }
 0x160   : > { %v5243_v59 = vpop.eup %5242 }
 0x161   : > { %v381_v61 = vadd.f32 %v5635_v53, %v373_v58  ;;  %v847_v62 = vmul.f32 %v5243_v59, %v5612_v18 }
 0x163   : > { %4593 = vmatmul.mubr.msk.f32.vlgmr.msra.gmra.mxu0 %vm314_vm0, %v381_v61  ;;  %v853_v0 = vmul.f32 %v4219_v60, %v847_v62 }
 0x165   : > { %v859_v1 = vadd.f32 %v4220_v63, %v853_v0 }
 0x167   : > { %4606 = vmatprep.mubr.msk.f32.mxu1 %vm314_vm0, %v859_v1 }
 0x1df   : > { %v840_v7 = vpop.xlane.xlu1 %839 }
 0x1e0   : > { %v842_v8 = vmul.f32 0.03125, %v840_v7 }
 0x1e2   : > { %v844_v9 = vadd.f32 1e-05, %v842_v8 }
 0x1e3   : > { %v326_v10 = vpop.xlane.xlu1 %325  ;;  %v348_v11 = vpop.xlane.xlu0 %347 }
 0x1e4   : > { %5244 = vrsqrt.f32 %v844_v9  ;;  %v331_v12 = vmul.f32 0.03125, %v326_v10  ;;  %v354_v13 = vmul.f32 0.03125, %v348_v11  ;;  %v5739_v10 = vld [vmem:[#allocation2 + $0x158] sm:$0xff] }
 0x1e6   : > { %v335_v14 = vsub.f32 %v311_v44, %v331_v12  ;;  %v358_v15 = vadd.f32 1e-05, %v354_v13 }
 0x1e8   : > { %5246 = vrsqrt.f32 %v358_v15  ;;  %v339_v16 = vmul.f32 %v335_v14, %v335_v14 }
 0x1ea   : > { %v349_v18 = vsel %vm314_vm0, %v339_v16, 0.0  ;;  %v5744_v16 = vld [vmem:[#allocation2 + $0x150] sm:$0xff] }
 0x1eb   : > { %350 = vadd.xlane.f32.xlu1 %v349_v18 }
 0x1f1   : > { %v5245_v19 = vpop.eup %5244 }
 0x1f2   : > { %v848_v20 = vmul.f32 %v5245_v19, %v832_v39 }
 0x1f4   : > { %v854_v21 = vmul.f32 %v4219_v60, %v848_v20 }
 0x1f5   : > { %v5247_v22 = vpop.eup %5246 }
 0x1f6   : > { %v860_v23 = vadd.f32 %v4220_v63, %v854_v21  ;;  %v366_v24 = vmul.f32 %v5247_v22, %v334_v45  ;;  %v5753_v22 = vld [vmem:[#allocation2 + $0x148] sm:$0xff] }
 0x1f8   : > { %4607 = vmatmul.mubr.msk.f32.vlgmr.msra.gmra.mxu1 %vm314_vm0, %v860_v23  ;;  %v374_v25 = vmul.f32 %v5629_v50, %v366_v24 }
 0x1f9   : > { %4644 = vmatprep.mubr.msk.f32.mxu1 %vm5489_vm1, %v6913_v47 }
 0x1fa   : > { %v382_v26 = vadd.f32 %v5635_v53, %v374_v25 }
 0x1fc   : > { %4595 = vmatprep.mubr.msk.f32.mxu0 %vm314_vm0, %v382_v26 }
 0x223   : > { %v4594_v27 = vpop.f32.mrf.mxu0 }
 0x224   : > { %v5667_v31 = vadd.f32 %v4594_v27, %v5660_v28 }
 0x225   : > { %v466_v29 = vpop.f32.mrf.mxu0 }
 0x226   : > { %v5663_v30 = vadd.f32 %v5660_v28, %v466_v29 }
 0x228   : > { %485 = vxpose.xlu0.b32.start [1/2] (short) (narrow) %v5663_v30, 64 }
 0x22c   : > { %486 = vxpose.xlu0.b32.end [2/2] (short) (narrow) %v5667_v31, 64 }
 0x274   : > { %v351_v32 = vpop.xlane.xlu1 %350 }
 0x275   : > { %v355_v33 = vmul.f32 0.03125, %v351_v32 }
 0x277   : > { %v359_v34 = vadd.f32 1e-05, %v355_v33 }
 0x279   : > { %5248 = vrsqrt.f32 %v359_v34 }
 0x286   : > { %v5249_v35 = vpop.eup %5248 }
 0x287   : > { %v367_v36 = vmul.f32 %v5249_v35, %v335_v14  ;;  %v5774_v35 = vld [vmem:[#allocation2 + $0x138] sm:$0xff] }
 0x289   : > { %v375_v37 = vmul.f32 %v5629_v50, %v367_v36 }
 0x28b   : > { %v383_v38 = vadd.f32 %v5635_v53, %v375_v37 }
 0x28d   : > { %4596 = vmatmul.mubr.msk.f32.gmra.mxu0 %vm314_vm0, %v383_v38 }
 0x28e   : > { %4625 = vmatprep.mubr.msk.f32.mxu0 %vm5489_vm1, %v6913_v47 }
 0x2a4   : > { %v5673_v39 = vpop.trf.xlu0 }
 0x2a8   : > { %v5675_v40 = vpop.trf.xlu0 }
 0x2ac   : > { %v5677_v41 = vpop.trf.xlu0 }
 0x2b0   : > { %v5679_v42 = vpop.trf.xlu0 }
 0x2b4   : > { %v5681_v43 = vpop.trf.xlu0 }
 0x2b5   : > { %533 = vrot.lane.b32.xlu1 %v5681_v43, %s5485_s12 }
 0x2b8   : > { %v506_v44 = vpop.trf.xlu0 }
 0x2b9   : > { %535 = vrot.lane.b32.xlu1 %v506_v44, %s5485_s12  ;;  %583 = vrot.lane.b32.xlu0 %v506_v44, %s5486_s13 }
 0x2bc   : > { %v507_v45 = vpop.trf.xlu0 }
 0x2bd   : > { %559 = vrot.lane.b32.xlu1 %v506_v44, %s5487_s14 }
 0x2c0   : > { %v508_v46 = vpop.trf.xlu0 }
 0x2c1   : > { %557 = vrot.lane.b32.xlu1 %v5681_v43, %s5487_s14 }
 0x2c5   : > { %531 = vrot.lane.b32.xlu1 %v5679_v42, %s5485_s12 }
 0x2c9   : > { %581 = vrot.lane.b32.xlu1 %v5681_v43, %s5486_s13 }
 0x2cd   : > { %555 = vrot.lane.b32.xlu1 %v5679_v42, %s5487_s14 }
 0x2d1   : > { %529 = vrot.lane.b32.xlu1 %v5677_v41, %s5485_s12 }
 0x2d5   : > { %579 = vrot.lane.b32.xlu1 %v5679_v42, %s5486_s13 }
 0x2d9   : > { %553 = vrot.lane.b32.xlu1 %v5677_v41, %s5487_s14 }
 0x2dd   : > { %527 = vrot.lane.b32.xlu1 %v5675_v40, %s5485_s12 }
 0x2e1   : > { %577 = vrot.lane.b32.xlu1 %v5677_v41, %s5486_s13 }
 0x2e5   : > { %551 = vrot.lane.b32.xlu1 %v5675_v40, %s5487_s14 }
 0x2e9   : > { %537 = vrot.lane.b32.xlu1 %v507_v45, %s5485_s12 }
 0x2ed   : > { %561 = vrot.lane.b32.xlu1 %v507_v45, %s5487_s14 }
 0x2f1   : > { %585 = vrot.lane.b32.xlu1 %v507_v45, %s5486_s13 }
 0x2f5   : > { %539 = vrot.lane.b32.xlu1 %v508_v46, %s5485_s12 }
 0x2f9   : > { %563 = vrot.lane.b32.xlu1 %v508_v46, %s5487_s14 }
 0x2fd   : > { %587 = vrot.lane.b32.xlu1 %v508_v46, %s5486_s13 }
 0x301   : > { %525 = vrot.lane.b32.xlu1 %v5673_v39, %s5485_s12 }
 0x305   : > { %575 = vrot.lane.b32.xlu1 %v5675_v40, %s5486_s13 }
 0x309   : > { %549 = vrot.lane.b32.xlu1 %v5673_v39, %s5487_s14 }
 0x30d   : > { %573 = vrot.lane.b32.xlu1 %v5673_v39, %s5486_s13 }
 0x327   : > { %v534_v48 = vpop.permute.xlu1 %533 }
 0x328   : > { %v602_v21 = vsel %vm597_vm2, %v5681_v43, %v534_v48  ;;  %v5794_v48 = vld [vmem:[#allocation2 + $0x128] sm:$0xff] }
 0x32b   : > { %v536_v49 = vpop.permute.xlu1 %535  ;;  %v584_v12 = vpop.permute.xlu0 %583 }
 0x32c   : > { %v603_v7 = vsel %vm597_vm2, %v506_v44, %v536_v49  ;;  %v5785_v44 = vld [vmem:[#allocation2 + $0x130] sm:$0xff] }
 0x32f   : > { %v560_v50 = vpop.permute.xlu1 %559 }
 0x330   : > { %v611_v11 = vsel %vm314_vm0, %v603_v7, %v560_v50  ;;  %v297_v7 = vld [vmem:[#allocation2 + $0x188] sm:$0xff] }
 0x331   : > { %v620_v23 = vsel %vm614_vm3, %v611_v11, %v584_v12  ;;  %v5858_v11 = vld [vmem:[#allocation2 + $0x1d8] sm:$0xff]  ;;  %v5864_v12 = vld [vmem:[#allocation2 + $0x1d0] sm:$0xff] }
 0x332   : > { %v5768_v32 = vmul.f32 %v620_v23, %v5753_v22  ;;  %4629 = vmatpush3.msra.mxu1 %v5858_v11 }
 0x333   : > { %v558_v51 = vpop.permute.xlu1 %557  ;;  %4630 = vmatprep.subr.mxu1 %v6913_v47 }
 0x334   : > { %v610_v24 = vsel %vm314_vm0, %v602_v21, %v558_v51  ;;  %4631 = vmatpush3.msra.mxu1 %v5864_v12  ;;  %v5894_v21 = vld [vmem:[#allocation2 + $0x1a0] sm:$0xff] }
 0x335   : > { %4632 = vmatprep.subr.mxu1 %v6913_v47 }
 0x337   : > { %v532_v52 = vpop.permute.xlu1 %531 }
 0x338   : > { %v601_v27 = vsel %vm597_vm2, %v5679_v42, %v532_v52 }
 0x33b   : > { %v582_v53 = vpop.permute.xlu1 %581 }
 0x33c   : > { %v619_v29 = vsel %vm614_vm3, %v610_v24, %v582_v53 }
 0x33f   : > { %v556_v54 = vpop.permute.xlu1 %555 }
 0x340   : > { %v609_v33 = vsel %vm314_vm0, %v601_v27, %v556_v54  ;;  %v5812_v54 = vld [vmem:[#allocation2 + $0x120] sm:$0xff] }
 0x341   : > { %v296_v27 = vld [vmem:[#allocation2 + $0x180] sm:$0xff] }
 0x343   : > { %v530_v55 = vpop.permute.xlu1 %529 }
 0x344   : > { %v600_v34 = vsel %vm597_vm2, %v5677_v41, %v530_v55 }
 0x347   : > { %v580_v56 = vpop.permute.xlu1 %579 }
 0x348   : > { %v618_v36 = vsel %vm614_vm3, %v609_v33, %v580_v56  ;;  %v294_v33 = vld [vmem:[#allocation2 + $0x170] sm:$0xff] }
 0x34b   : > { %v554_v57 = vpop.permute.xlu1 %553 }
 0x34c   : > { %v608_v38 = vsel %vm314_vm0, %v600_v34, %v554_v57 }
 0x34d   : > { %v4597_v58 = vpop.f32.mrf.mxu0 }
 0x34e   : > { %v5733_v63 = vadd.f32 %v4597_v58, %v5660_v28 }
 0x34f   : > { %v476_v59 = vpop.f32.mrf.mxu0  ;;  %v528_v60 = vpop.permute.xlu1 %527 }
 0x350   : > { %v5729_v61 = vadd.f32 %v5660_v28, %v476_v59  ;;  %v5763_v28 = vld [vmem:[#allocation2 + $0x140] sm:$0xff]  ;;  %v599_v43 = vsel %vm597_vm2, %v5675_v40, %v528_v60  ;;  %v5798_v40 = vpop.f32.mrf.mxu1 }
 0x351   : > { %v5779_v37 = vmul.f32 %v619_v29, %v5763_v28  ;;  %v5821_v59 = vld [vmem:[%s6911_s3 + $0x7] ss:$0 sm:$0xff] }
 0x352   : > { %671 = vxpose.xlu1.b32.start [1/2] (short) (narrow) %v5729_v61, 64  ;;  %v937_v55 = vpop.f32.mrf.mxu1 }
 0x353   : > { %v578_v62 = vpop.permute.xlu1 %577  ;;  %v938_v60 = vadd.f32 %v5821_v59, %v937_v55 }
 0x354   : > { %v617_v41 = vsel %vm614_vm3, %v608_v38, %v578_v62 }
 0x355   : > { %v5801_v50 = vmul.f32 %v617_v41, %v5785_v44 }
 0x356   : > { %672 = vxpose.xlu1.b32.end [2/2] (short) (narrow) %v5733_v63, 64 }
 0x357   : > { %v552_v0 = vpop.permute.xlu1 %551 }
 0x35b   : > { %v538_v1 = vpop.permute.xlu1 %537 }
 0x35c   : > { %v604_v8 = vsel %vm597_vm2, %v507_v45, %v538_v1  ;;  %v5790_v45 = vmul.f32 %v618_v36, %v5774_v35 }
 0x35f   : > { %v562_v2 = vpop.permute.xlu1 %561 }
 0x360   : > { %v612_v13 = vsel %vm314_vm0, %v604_v8, %v562_v2  ;;  %v295_v8 = vld [vmem:[#allocation2 + $0x178] sm:$0xff] }
 0x363   : > { %v586_v3 = vpop.permute.xlu1 %585 }
 0x364   : > { %v621_v18 = vsel %vm614_vm3, %v612_v13, %v586_v3  ;;  %v5870_v13 = vld [vmem:[#allocation2 + $0x1c8] sm:$0xff] }
 0x365   : > { %v5758_v25 = vmul.f32 %v621_v18, %v5744_v16  ;;  %4633 = vmatpush3.msra.mxu1 %v5870_v13  ;;  %v5884_v18 = vld [vmem:[#allocation2 + $0x1b0] sm:$0xff] }
 0x366   : > { %4634 = vmatprep.subr.mxu1 %v6913_v47 }
 0x367   : > { %v540_v5 = vpop.permute.xlu1 %539 }
 0x368   : > { %v605_v9 = vsel %vm597_vm2, %v508_v46, %v540_v5  ;;  %v607_v46 = vsel %vm314_vm0, %v599_v43, %v552_v0  ;;  %v299_v5 = vld [vmem:[#allocation2 + $0x198] sm:$0xff]  ;;  %v292_v43 = vld [vmem:[#allocation2 + $0x160] sm:$0xff] }
 0x36b   : > { %v564_v6 = vpop.permute.xlu1 %563 }
 0x36c   : > { %v613_v14 = vsel %vm314_vm0, %v605_v9, %v564_v6  ;;  %v293_v9 = vld [vmem:[#allocation2 + $0x168] sm:$0xff] }
 0x36f   : > { %v588_v15 = vpop.permute.xlu1 %587 }
 0x370   : > { %v622_v19 = vsel %vm614_vm3, %v613_v14, %v588_v15  ;;  %v5874_v14 = vld [vmem:[#allocation2 + $0x1c0] sm:$0xff]  ;;  %v5877_v15 = vld [vmem:[#allocation2 + $0x1b8] sm:$0xff] }
 0x371   : > { %v5749_v20 = vmul.f32 %v622_v19, %v5739_v10  ;;  %4635 = vmatpush3.msra.mxu1 %v5874_v14  ;;  %v5887_v19 = vld [vmem:[#allocation2 + $0x1a8] sm:$0xff] }
 0x372   : > { %4636 = vmatprep.subr.mxu1 %v6913_v47 }
 0x373   : > { %4610 = vmatpush3.msra.mxu0 %v5749_v20  ;;  %v526_v26 = vpop.permute.xlu1 %525  ;;  %4637 = vmatpush3.msra.mxu1 %v5877_v15 }
 0x374   : > { %4611 = vmatprep.subr.mxu0 %v6913_v47  ;;  %v598_v53 = vsel %vm597_vm2, %v5673_v39, %v526_v26  ;;  %4638 = vmatprep.subr.mxu1 %v6913_v47  ;;  %v298_v26 = vld [vmem:[#allocation2 + $0x190] sm:$0xff] }
 0x375   : > { %4612 = vmatpush3.msra.mxu0 %v5758_v25  ;;  %4639 = vmatpush3.msra.mxu1 %v5884_v18 }
 0x376   : > { %4613 = vmatprep.subr.mxu0 %v6913_v47  ;;  %4640 = vmatprep.subr.mxu1 %v6913_v47 }
 0x377   : > { %v576_v42 = vpop.permute.xlu1 %575  ;;  %4614 = vmatpush3.msra.mxu0 %v5768_v32  ;;  %4641 = vmatpush3.msra.mxu1 %v5887_v19 }
 0x378   : > { %4615 = vmatprep.subr.mxu0 %v6913_v47  ;;  %v616_v49 = vsel %vm614_vm3, %v607_v46, %v576_v42  ;;  %4642 = vmatprep.subr.mxu1 %v6913_v47 }
 0x379   : > { %4616 = vmatpush3.msra.mxu0 %v5779_v37  ;;  %v5806_v52 = vmul.f32 %v616_v49, %v5794_v48  ;;  %4643 = vmatpush3.msra.mxu1 %v5894_v21 }
 0x37a   : > { %4617 = vmatprep.subr.mxu0 %v6913_v47  ;;  %4666 = vmatprep.subr.mxu1 %v6913_v47 }
 0x37b   : > { %v550_v51 = vpop.permute.xlu1 %549  ;;  %4618 = vmatpush3.msra.mxu0 %v5790_v45  ;;  %6982 = vst [vmem:[#allocation8_spill] sm:$0xff] %v5806_v52 }
 0x37c   : > { %4619 = vmatprep.subr.mxu0 %v6913_v47  ;;  %v606_v56 = vsel %vm314_vm0, %v598_v53, %v550_v51 }
 0x37d   : > { %4620 = vmatpush3.msra.mxu0 %v5801_v50 }
 0x37e   : > { %4621 = vmatprep.subr.mxu0 %v6913_v47 }
 0x37f   : > { %v574_v57 = vpop.permute.xlu1 %573  ;;  %4622 = vmatpush3.msra.mxu0 %v5806_v52 }
 0x380   : > { %v615_v58 = vsel %vm614_vm3, %v606_v56, %v574_v57  ;;  %4623 = vmatprep.subr.mxu0 %v6913_v47 }
 0x381   : > { %v5824_v39 = vmul.f32 %v615_v58, %v5812_v54 }
 0x383   : > { %6983 = vst [vmem:[#allocation9_spill] sm:$0xff] %v5824_v39  ;;  %4624 = vmatpush3.msra.mxu0 %v5824_v39 }
 0x384   : > { %4626 = vmatmul.mubr.msk.f32.vlgmr.msra.gmra.mxu0 %vm946_vm4, %v938_v60  ;;  %4647 = vmatprep.subr.mxu0 %v6913_v47 }
 0x385   : > { %4663 = vmatprep.mubr.msk.f32.mxu0 %vm5489_vm1, %v6913_v47 }
 0x3ce   : > { %v5832_v62 = vpop.trf.xlu1 }
 0x3d2   : > { %v5834_v0 = vpop.trf.xlu1 }
 0x3d6   : > { %v5836_v1 = vpop.trf.xlu1 }
 0x3da   : > { %v5838_v2 = vpop.trf.xlu1 }
 0x3de   : > { %v5840_v3 = vpop.trf.xlu1 }
 0x3df   : > { %743 = vrot.lane.b32.xlu1 %v5840_v3, %s5487_s14 }
 0x3e2   : > { %v5844_v6 = vpop.trf.xlu1 }
 0x3e3   : > { %653 = vrot.lane.b32.xlu1 %v299_v5, %s5490_s23  ;;  %721 = vrot.lane.b32.xlu0 %v5844_v6, %s5485_s12 }
 0x3e6   : > { %v5908_v23 = vpop.trf.xlu1 }
 0x3e7   : > { %649 = vrot.lane.b32.xlu1 %v297_v7, %s5490_s23  ;;  %745 = vrot.lane.b32.xlu0 %v5844_v6, %s5487_s14 }
 0x3ea   : > { %v5916_v24 = vpop.trf.xlu1 }
 0x3eb   : > { %645 = vrot.lane.b32.xlu1 %v295_v8, %s5490_s23  ;;  %719 = vrot.lane.b32.xlu0 %v5840_v3, %s5485_s12 }
 0x3ef   : > { %641 = vrot.lane.b32.xlu1 %v293_v9, %s5490_s23  ;;  %769 = vrot.lane.b32.xlu0 %v5844_v6, %s5486_s13 }
 0x3f3   : > { %717 = vrot.lane.b32.xlu0 %v5838_v2, %s5485_s12 }
 0x3f7   : > { %767 = vrot.lane.b32.xlu0 %v5840_v3, %s5486_s13 }
 0x3fb   : > { %741 = vrot.lane.b32.xlu0 %v5838_v2, %s5487_s14 }
 0x3ff   : > { %715 = vrot.lane.b32.xlu0 %v5836_v1, %s5485_s12 }
 0x403   : > { %765 = vrot.lane.b32.xlu0 %v5838_v2, %s5486_s13 }
 0x407   : > { %739 = vrot.lane.b32.xlu0 %v5836_v1, %s5487_s14 }
 0x40b   : > { %713 = vrot.lane.b32.xlu0 %v5834_v0, %s5485_s12 }
 0x40f   : > { %763 = vrot.lane.b32.xlu0 %v5836_v1, %s5486_s13 }
 0x413   : > { %737 = vrot.lane.b32.xlu0 %v5834_v0, %s5487_s14 }
 0x417   : > { %723 = vrot.lane.b32.xlu0 %v5908_v23, %s5485_s12 }
 0x41b   : > { %747 = vrot.lane.b32.xlu0 %v5908_v23, %s5487_s14 }
 0x41f   : > { %771 = vrot.lane.b32.xlu0 %v5908_v23, %s5486_s13 }
 0x423   : > { %725 = vrot.lane.b32.xlu0 %v5916_v24, %s5485_s12 }
 0x427   : > { %749 = vrot.lane.b32.xlu0 %v5916_v24, %s5487_s14 }
 0x42b   : > { %773 = vrot.lane.b32.xlu0 %v5916_v24, %s5486_s13 }
 0x42f   : > { %711 = vrot.lane.b32.xlu0 %v5832_v62, %s5485_s12  ;;  %s4207_s12 = sshll.u32 %s220_s11, 4 }
 0x433   : > { %761 = vrot.lane.b32.xlu0 %v5834_v0, %s5486_s13 }
 0x437   : > { %735 = vrot.lane.b32.xlu0 %v5832_v62, %s5487_s14 }
 0x43b   : > { %759 = vrot.lane.b32.xlu0 %v5832_v62, %s5486_s13  ;;  %s222_s13 = scalar_lea.vmem [#allocation5], %s4207_s12 }
 0x43c   : > { %s4115_s20 = sshll.u32 %s222_s13, 4  ;;  %s6859_s20 = int_to_ptr.vmem [resolvable:$true] %s4115_s20 }
 0x43d   : > { %s5416_s29 = scalar_lea.vmem %s6859_s20, 256 }
 0x43e   : > { %p5417_p9 = scmp.ne.s32.totalorder %s6859_s20, %s5416_s29 }
 0x43f   : > { %651 = vrot.lane.b32.xlu0 %v298_v26, %s5490_s23 }
 0x440   : > { %p5418_p10 = pnand %p5417_p9, %p5558_p5 }
 0x442   : > { %p5419_p11 = pneg %p5418_p10 }
 0x443   : > { %647 = vrot.lane.b32.xlu0 %v296_v27, %s5490_s23 }
 0x444   : > { %v1016_v29 = vpop.f32.mrf.mxu0 }
 0x445   : > { %v1020_v34 = vsel %vm946_vm4, %v1016_v29, -inf }
 0x446   : > { %v1021_v36 = vrot.slane %v1020_v34, 4  ;;  %v4627_v38 = vpop.f32.mrf.mxu0 }
 0x447   : > { %643 = vrot.lane.b32.xlu0 %v294_v33, %s5490_s23 }
 0x448   : > { %v1022_v42 = vmax.f32 %v1020_v34, %v1021_v36 }
 0x44a   : > { %v1023_v41 = vrot.slane %v1022_v42, 2 }
 0x44b   : > { %639 = vrot.lane.b32.xlu0 %v292_v43, %s5490_s23 }
 0x44c   : > { %v1024_v46 = vmax.f32 %v1022_v42, %v1023_v41 }
 0x44e   : > { %v1025_v49 = vrot.slane %v1024_v46, 1 }
 0x450   : > { %v1026_v51 = vmax.f32 %v1024_v46, %v1025_v49 }
 0x451   : > { %v5937_v53 = vpop.permute.xlu1 %743 }
 0x452   : > { %v1027_v55 = vsub.f32 %v1016_v29, %v1026_v51 }
 0x454   : > { %v1028_v56 = vmul.f32 1.442695, %v1027_v55 }
 0x455   : > { %v654_v57 = vpop.permute.xlu1 %653  ;;  %v722_v58 = vpop.permute.xlu0 %721 }
 0x456   : > { %5250 = vpow2.f32 %v1028_v56  ;;  %v670_v60 = vmul.f32 %v654_v57, %v5667_v31  ;;  %v822_v41 = vmul.f32 %v654_v57, %v5733_v63 }
 0x458   : > { %1137 = vrot.lane.b32.xlu1 %v670_v60, %s5490_s23 }
 0x459   : > { %v650_v5 = vpop.permute.xlu1 %649  ;;  %v746_v7 = vpop.permute.xlu0 %745 }
 0x45a   : > { %v668_v8 = vmul.f32 %v650_v5, %v5667_v31  ;;  %v820_v55 = vmul.f32 %v650_v5, %v5733_v63 }
 0x45c   : > { %1133 = vrot.lane.b32.xlu1 %v668_v8, %s5490_s23 }
 0x45d   : > { %v646_v9 = vpop.permute.xlu1 %645  ;;  %v720_v26 = vpop.permute.xlu0 %719 }
 0x45e   : > { %v666_v27 = vmul.f32 %v646_v9, %v5667_v31  ;;  %v818_v8 = vmul.f32 %v646_v9, %v5733_v63 }
 0x460   : > { %1129 = vrot.lane.b32.xlu1 %v666_v27, %s5490_s23 }
 0x461   : > { %v642_v29 = vpop.permute.xlu1 %641  ;;  %v770_v33 = vpop.permute.xlu0 %769 }
 0x462   : > { %v664_v34 = vmul.f32 %v642_v29, %v5667_v31  ;;  %v816_v57 = vmul.f32 %v642_v29, %v5733_v63 }
 0x463   : > { %v5251_v36 = vpop.eup %5250 }
 0x464   : > { %v1030_v38 = vsel %vm946_vm4, %v5251_v36, 0.0  ;;  %1125 = vrot.lane.b32.xlu1 %v664_v34, %s5490_s23 }
 0x465   : > { %v1031_v42 = vrot.slane %v1030_v38, 4  ;;  %v718_v43 = vpop.permute.xlu0 %717 }
 0x467   : > { %v1032_v46 = vadd.f32 %v1031_v42, %v1030_v38 }
 0x468   : > { %1410 = vrot.lane.b32.xlu1 %v822_v41, %s5490_s23 }
 0x469   : > { %v1033_v49 = vrot.slane %v1032_v46, 2  ;;  %v768_v51 = vpop.permute.xlu0 %767 }
 0x46b   : > { %v1034_v56 = vadd.f32 %v1033_v49, %v1032_v46 }
 0x46c   : > { %1406 = vrot.lane.b32.xlu1 %v820_v55, %s5490_s23 }
 0x46d   : > { %v1035_v31 = vrot.slane %v1034_v56, 1  ;;  %v742_v60 = vpop.permute.xlu0 %741 }
 0x46f   : > { %v1036_v27 = vadd.f32 %v1035_v31, %v1034_v56 }
 0x470   : > { %1402 = vrot.lane.b32.xlu1 %v818_v8, %s5490_s23 }
 0x471   : > { %5252 = vrcp.f32 %v1036_v27  ;;  %v716_v34 = vpop.permute.xlu0 %715 }
 0x474   : > { %1398 = vrot.lane.b32.xlu1 %v816_v57, %s5490_s23 }
 0x475   : > { %v766_v38 = vpop.permute.xlu0 %765 }
 0x478   : > { %1580 = vrot.lane.b32.xlu1 %v5600_v4, %s5487_s14 }
 0x479   : > { %v740_v5 = vpop.permute.xlu0 %739 }
 0x47d   : > { %v714_v42 = vpop.permute.xlu0 %713 }
 0x47e   : > { %v5253_v41 = vpop.eup %5252 }
 0x47f   : > { %v1038_v46 = vmul.f32 %v5253_v41, %v5251_v36 }
 0x481   : > { %v764_v49 = vpop.permute.xlu0 %763  ;;  %v5958_v55 = vadd.f32 1e-08, %v1038_v46  ;;  %v788_v46 = vsel %vm597_vm2, %v5844_v6, %v722_v58  ;;  %v786_v6 = vsel %vm597_vm2, %v5838_v2, %v718_v43 }
 0x483   : > { %4645 = vmatmul.mubr.msk.f32.vlgmr.msra.gmra.mxu1 %vm946_vm4, %v5958_v55 }
 0x484   : > { %4682 = vmatprep.mubr.msk.f32.mxu1 %vm5489_vm1, %v6913_v47  ;;  %v787_v47 = vsel %vm597_vm2, %v5840_v3, %v720_v26 }
 0x485   : > { %v738_v63 = vpop.permute.xlu0 %737 }
 0x489   : > { %v724_v9 = vpop.permute.xlu0 %723 }
 0x48a   : > { %v789_v4 = vsel %vm597_vm2, %v5908_v23, %v724_v9  ;;  %v796_v23 = vsel %vm314_vm0, %v788_v46, %v746_v7  ;;  %v6984_v7 = vmov 0.0  }
 0x48d   : > { %v748_v29 = vpop.permute.xlu0 %747 }
 0x48e   : > { %v797_v27 = vsel %vm314_vm0, %v789_v4, %v748_v29  ;;  %v795_v29 = vsel %vm314_vm0, %v787_v47, %v5937_v53  ;;  %v785_v47 = vsel %vm597_vm2, %v5836_v1, %v716_v34  ;;  %v784_v53 = vsel %vm597_vm2, %v5834_v0, %v714_v42 }
 0x48f   : > { %v803_v58 = vsel %vm614_vm3, %v795_v29, %v768_v51  ;;  %v793_v2 = vsel %vm314_vm0, %v785_v47, %v740_v5 }
 0x490   : > { %v801_v26 = vsel %vm614_vm3, %v793_v2, %v764_v49 }
 0x491   : > { %v772_v56 = vpop.permute.xlu0 %771  ;;  %v6017_v43 = vmul.f32 %v801_v26, %v5785_v44 }
 0x492   : > { %v805_v39 = vsel %vm614_vm3, %v797_v27, %v772_v56 }
 0x495   : > { %v726_v31 = vpop.permute.xlu0 %725 }
 0x496   : > { %v790_v36 = vsel %vm597_vm2, %v5916_v24, %v726_v31  ;;  %v804_v24 = vsel %vm614_vm3, %v796_v23, %v770_v33  ;;  %v5984_v31 = vmul.f32 %v805_v39, %v5744_v16  ;;  %v6001_v39 = vmul.f32 %v803_v58, %v5763_v28 }
 0x497   : > { %v792_v33 = vsel %vm314_vm0, %v784_v53, %v738_v63 }
 0x499   : > { %v750_v8 = vpop.permute.xlu0 %749 }
 0x49a   : > { %v798_v57 = vsel %vm314_vm0, %v790_v36, %v750_v8 }
 0x49d   : > { %v774_v41 = vpop.permute.xlu0 %773 }
 0x49e   : > { %v806_v52 = vsel %vm614_vm3, %v798_v57, %v774_v41 }
 0x49f   : > { %v5978_v9 = vmul.f32 %v806_v52, %v5739_v10  ;;  %v5992_v10 = vmul.f32 %v804_v24, %v5753_v22  ;;  %v794_v52 = vsel %vm314_vm0, %v786_v6, %v742_v60 }
 0x4a0   : > { %v802_v16 = vsel %vm614_vm3, %v794_v52, %v766_v38 }
 0x4a1   : > { %4667 = vmatpush3.msra.mxu1 %v5978_v9  ;;  %v712_v3 = vpop.permute.xlu0 %711  ;;  %v6010_v1 = vmul.f32 %v802_v16, %v5774_v35 }
 0x4a2   : > { %4668 = vmatprep.subr.mxu1 %v6984_v7  ;;  %v783_v35 = vsel %vm597_vm2, %v5832_v62, %v712_v3 }
 0x4a3   : > { %4669 = vmatpush3.msra.mxu1 %v5984_v31 }
 0x4a4   : > { %4670 = vmatprep.subr.mxu1 %v6984_v7 }
 0x4a5   : > { %4671 = vmatpush3.msra.mxu1 %v5992_v10  ;;  %v762_v22 = vpop.permute.xlu0 %761 }
 0x4a6   : > { %4672 = vmatprep.subr.mxu1 %v6984_v7  ;;  %v800_v28 = vsel %vm614_vm3, %v792_v33, %v762_v22 }
 0x4a7   : > { %4673 = vmatpush3.msra.mxu1 %v6001_v39  ;;  %v6022_v51 = vmul.f32 %v800_v28, %v5794_v48  ;;  %v943_v48 = vadd.f32 %v5798_v40, %v5821_v59 }
 0x4a8   : > { %4674 = vmatprep.subr.mxu1 %v6984_v7 }
 0x4a9   : > { %4675 = vmatpush3.msra.mxu1 %v6010_v1  ;;  %v736_v0 = vpop.permute.xlu0 %735 }
 0x4aa   : > { %4676 = vmatprep.subr.mxu1 %v6984_v7  ;;  %v791_v60 = vsel %vm314_vm0, %v783_v35, %v736_v0 }
 0x4ab   : > { %4677 = vmatpush3.msra.mxu1 %v6017_v43 }
 0x4ac   : > { %4678 = vmatprep.subr.mxu1 %v6984_v7 }
 0x4ad   : > { %4679 = vmatpush3.msra.mxu1 %v6022_v51  ;;  %v760_v44 = vpop.permute.xlu0 %759 }
 0x4ae   : > { %v799_v34 = vsel %vm614_vm3, %v791_v60, %v760_v44  ;;  %4680 = vmatprep.subr.mxu1 %v6984_v7 }
 0x4af   : > { %v6033_v38 = vmul.f32 %v799_v34, %v5812_v54 }
 0x4b1   : > { %4681 = vmatpush3.msra.mxu1 %v6033_v38  ;;  %v652_v62 = vpop.permute.xlu0 %651 }
 0x4b2   : > { %v669_v5 = vmul.f32 %v652_v62, %v5663_v30  ;;  %4683 = vmatmul.mubr.msk.f32.vlgmr.msra.gmra.mxu1 %vm946_vm4, %v943_v48  ;;  %4704 = vmatprep.subr.mxu1 %v6984_v7  ;;  %v821_v56 = vmul.f32 %v652_v62, %v5729_v61 }
 0x4b3   : > { %4720 = vmatprep.mubr.msk.f32.mxu1 %vm5489_vm1, %v6984_v7 }
 0x4b4   : > { %1135 = vrot.lane.b32.xlu0 %v669_v5, %s5490_s23 }
 0x4b5   : > { %v648_v42 = vpop.permute.xlu0 %647 }
 0x4b6   : > { %v667_v54 = vmul.f32 %v648_v42, %v5663_v30  ;;  %v819_v8 = vmul.f32 %v648_v42, %v5729_v61 }
 0x4b8   : > { %1131 = vrot.lane.b32.xlu0 %v667_v54, %s5490_s23 }
 0x4b9   : > { %v644_v40 = vpop.permute.xlu0 %643 }
 0x4ba   : > { %v665_v59 = vmul.f32 %v644_v40, %v5663_v30  ;;  %v817_v4 = vmul.f32 %v644_v40, %v5729_v61 }
 0x4bc   : > { %1127 = vrot.lane.b32.xlu0 %v665_v59, %s5490_s23 }
 0x4bd   : > { %v640_v49 = vpop.permute.xlu0 %639 }
 0x4be   : > { %v663_v63 = vmul.f32 %v640_v49, %v5663_v30  ;;  %v815_v30 = vmul.f32 %v640_v49, %v5729_v61 }
 0x4c0   : > { %1123 = vrot.lane.b32.xlu0 %v663_v63, %s5490_s23 }
 0x4c4   : > { %1408 = vrot.lane.b32.xlu0 %v821_v56, %s5490_s23 }
 0x4c8   : > { %1404 = vrot.lane.b32.xlu0 %v819_v8, %s5490_s23 }
 0x4ca   : > { %v6055_v36 = vpop.permute.xlu1 %1137 }
 0x4cb   : > { %6985 = vst [vmem:[#allocation10_spill] sm:$0xff] %v6055_v36  ;;  %4648 = vmatpush3.msra.mxu0 %v6055_v36 }
 0x4cc   : > { %1400 = vrot.lane.b32.xlu0 %v817_v4, %s5490_s23  ;;  %4649 = vmatprep.subr.mxu0 %v6984_v7 }
 0x4ce   : > { %v6061_v27 = vpop.permute.xlu1 %1133 }
 0x4cf   : > { %6986 = vst [vmem:[#allocation11_spill] sm:$0xff] %v6061_v27 }
 0x4d0   : > { %1396 = vrot.lane.b32.xlu0 %v815_v30, %s5490_s23  ;;  %v6145_v30 = vld [vmem:[#allocation2 + $0x78] sm:$0xff] }
 0x4d2   : > { %v6064_v57 = vpop.permute.xlu1 %1129 }
 0x4d3   : > { %6987 = vst [vmem:[#allocation12_spill] sm:$0xff] %v6064_v57 }
 0x4d4   : > { %1582 = vrot.lane.b32.xlu0 %v5609_v17, %s5487_s14 }
 0x4d6   : > { %v6068_v41 = vpop.permute.xlu1 %1125 }
 0x4d7   : > { %6988 = vst [vmem:[#allocation13_spill] sm:$0xff] %v6068_v41 }
 0x4da   : > { %v6070_v46 = vpop.permute.xlu1 %1410 }
 0x4db   : > { %4705 = vmatpush3.msra.mxu1 %v6070_v46 }
 0x4dc   : > { %4706 = vmatprep.subr.mxu1 %v6984_v7 }
 0x4de   : > { %v6095_v29 = vpop.permute.xlu1 %1406 }
 0x4e2   : > { %v6103_v6 = vpop.permute.xlu1 %1402 }
 0x4e6   : > { %v6115_v47 = vpop.permute.xlu1 %1398 }
 0x526   : > { %v6074_v23 = vpop.permute.xlu0 %1135 }
 0x527   : > { %6989 = vst [vmem:[#allocation14_spill] sm:$0xff] %v6074_v23  ;;  %4650 = vmatpush3.msra.mxu0 %v6074_v23 }
 0x528   : > { %4651 = vmatprep.subr.mxu0 %v6984_v7 }
 0x529   : > { %4652 = vmatpush3.msra.mxu0 %v6061_v27 }
 0x52a   : > { %4653 = vmatprep.subr.mxu0 %v6984_v7  ;;  %v6080_v61 = vpop.permute.xlu0 %1131 }
 0x52b   : > { %6990 = vst [vmem:[#allocation15_spill] sm:$0xff] %v6080_v61  ;;  %4654 = vmatpush3.msra.mxu0 %v6080_v61 }
 0x52c   : > { %4655 = vmatprep.subr.mxu0 %v6984_v7 }
 0x52d   : > { %4656 = vmatpush3.msra.mxu0 %v6064_v57 }
 0x52e   : > { %4657 = vmatprep.subr.mxu0 %v6984_v7  ;;  %v6086_v17 = vpop.permute.xlu0 %1127 }
 0x52f   : > { %6991 = vst [vmem:[#allocation16_spill] sm:$0xff] %v6086_v17  ;;  %4658 = vmatpush3.msra.mxu0 %v6086_v17 }
 0x530   : > { %4659 = vmatprep.subr.mxu0 %v6984_v7 }
 0x531   : > { %4660 = vmatpush3.msra.mxu0 %v6068_v41 }
 0x532   : > { %4661 = vmatprep.subr.mxu0 %v6984_v7  ;;  %v6092_v24 = vpop.permute.xlu0 %1123 }
 0x533   : > { %6992 = vst [vmem:[#allocation17_spill] sm:$0xff] %v6092_v24  ;;  %4662 = vmatpush3.msra.mxu0 %v6092_v24 }
 0x534   : > { %4685 = vmatprep.subr.mxu0 %v6984_v7 }
 0x536   : > { %v6098_v3 = vpop.permute.xlu0 %1408 }
 0x537   : > { %4707 = vmatpush3.msra.mxu1 %v6098_v3 }
 0x538   : > { %4708 = vmatprep.subr.mxu1 %v6984_v7 }
 0x539   : > { %4709 = vmatpush3.msra.mxu1 %v6095_v29 }
 0x53a   : > { %4710 = vmatprep.subr.mxu1 %v6984_v7  ;;  %v6106_v58 = vpop.permute.xlu0 %1404 }
 0x53b   : > { %4711 = vmatpush3.msra.mxu1 %v6106_v58 }
 0x53c   : > { %4712 = vmatprep.subr.mxu1 %v6984_v7 }
 0x53d   : > { %4713 = vmatpush3.msra.mxu1 %v6103_v6 }
 0x53e   : > { %4714 = vmatprep.subr.mxu1 %v6984_v7  ;;  %v6112_v52 = vpop.permute.xlu0 %1400 }
 0x53f   : > { %4715 = vmatpush3.msra.mxu1 %v6112_v52 }
 0x540   : > { %4716 = vmatprep.subr.mxu1 %v6984_v7 }
 0x541   : > { %4717 = vmatpush3.msra.mxu1 %v6115_v47 }
 0x542   : > { %4718 = vmatprep.subr.mxu1 %v6984_v7  ;;  %v6120_v16 = vpop.permute.xlu0 %1396 }
 0x543   : > { %v1109_v2 = vpop.f32.mrf.mxu1  ;;  %4719 = vmatpush3.msra.mxu1 %v6120_v16 }
 0x544   : > { %5254 = vrcp.f32 %v1109_v2  ;;  %v6147_v2 = vld [vmem:[#allocation2 + $0x70] sm:$0xff] }
 0x545   : > { %v4646_v22 = vpop.f32.mrf.mxu1 }
 0x546   : > { %v6151_v22 = vld [vmem:[#allocation2 + $0x68] sm:$0xff] }
 0x551   : > { %v5255_v53 = vpop.eup %5254 }
 0x552   : > { %v1114_v26 = vmul.f32 %v5255_v53, %v5958_v55  ;;  %v6155_v53 = vld [vmem:[#allocation2 + $0x60] sm:$0xff] }
 0x554   : > { %4664 = vmatmul.mubr.msk.f32.vlgmr.msra.gmra.mxu0 %vm946_vm4, %v1114_v26  ;;  %v6159_v26 = vld [vmem:[#allocation2 + $0x58] sm:$0xff] }
 0x555   : > { %4686 = vmatpush3.msra.mxu0 %v5858_v11  ;;  %4701 = vmatprep.mubr.msk.f32.mxu0 %vm5489_vm1, %v6984_v7 }
 0x556   : > { %4687 = vmatprep.subr.mxu0 %v6984_v7 }
 0x557   : > { %4688 = vmatpush3.msra.mxu0 %v5864_v12 }
 0x558   : > { %4689 = vmatprep.subr.mxu0 %v6984_v7 }
 0x559   : > { %4690 = vmatpush3.msra.mxu0 %v5870_v13 }
 0x55a   : > { %4691 = vmatprep.subr.mxu0 %v6984_v7 }
 0x55b   : > { %4692 = vmatpush3.msra.mxu0 %v5874_v14 }
 0x55c   : > { %4693 = vmatprep.subr.mxu0 %v6984_v7 }
 0x55d   : > { %4694 = vmatpush3.msra.mxu0 %v5877_v15 }
 0x55e   : > { %4695 = vmatprep.subr.mxu0 %v6984_v7 }
 0x55f   : > { %4696 = vmatpush3.msra.mxu0 %v5884_v18 }
 0x560   : > { %4697 = vmatprep.subr.mxu0 %v6984_v7 }
 0x561   : > { %4698 = vmatpush3.msra.mxu0 %v5887_v19 }
 0x562   : > { %4699 = vmatprep.subr.mxu0 %v6984_v7 }
 0x563   : > { %4700 = vmatpush3.msra.mxu0 %v5894_v21 }
 0x564   : > { %4723 = vmatprep.subr.mxu0 %v6145_v30 }
 0x572   : > { %v1289_v11 = vpop.f32.mrf.mxu1 }
 0x573   : > { %v1293_v12 = vsel %vm946_vm4, %v1289_v11, -inf }
 0x574   : > { %v1294_v55 = vrot.slane %v1293_v12, 4  ;;  %v4684_v33 = vpop.f32.mrf.mxu1 }
 0x576   : > { %v1295_v28 = vmax.f32 %v1293_v12, %v1294_v55  ;;  %v6167_v12 = vld [vmem:[#allocation2 + $0x48] sm:$0xff]  ;;  %v6171_v55 = vld [vmem:[#allocation2 + $0x40] sm:$0xff] }
 0x577   : > { %6993 = vst [vmem:[#allocation18_spill] sm:$0xff] %v6171_v55 }
 0x578   : > { %v1296_v0 = vrot.slane %v1295_v28, 2 }
 0x57a   : > { %v1297_v35 = vmax.f32 %v1295_v28, %v1296_v0 }
 0x57c   : > { %v1298_v60 = vrot.slane %v1297_v35, 1 }
 0x57e   : > { %v1299_v44 = vmax.f32 %v1297_v35, %v1298_v60 }
 0x580   : > { %v1300_v34 = vsub.f32 %v1289_v11, %v1299_v44  ;;  %v6163_v11 = vld [vmem:[#allocation2 + $0x50] sm:$0xff] }
 0x582   : > { %v1301_v48 = vmul.f32 1.442695, %v1300_v34  ;;  %v6179_v34 = vld [vmem:[#allocation2 + $0xb8] sm:$0xff] }
 0x583   : > { %4742 = vmatprep.subr.mxu1 %v6179_v34 }
 0x584   : > { %5256 = vpow2.f32 %v1301_v48  ;;  %v6181_v48 = vld [vmem:[#allocation2 + $0xb0] sm:$0xff] }
 0x585   : > { %6994 = vst [vmem:[#allocation19_spill] sm:$0xff] %v6181_v48 }
 0x591   : > { %v5257_v62 = vpop.eup %5256 }
 0x592   : > { %v1303_v5 = vsel %vm946_vm4, %v5257_v62, 0.0 }
 0x593   : > { %v1304_v42 = vrot.slane %v1303_v5, 4 }
 0x595   : > { %v1305_v54 = vadd.f32 %v1304_v42, %v1303_v5  ;;  %v6189_v5 = vld [vmem:[#allocation2 + $0xa0] sm:$0xff]  ;;  %v6193_v42 = vld [vmem:[#allocation2 + $0x98] sm:$0xff] }
 0x596   : > { %6996 = vst [vmem:[#allocation21_spill] sm:$0xff] %v6189_v5  ;;  %6997 = vst [vmem:[#allocation22_spill] sm:$0xff] %v6193_v42 }
 0x597   : > { %v1306_v40 = vrot.slane %v1305_v54, 2 }
 0x599   : > { %v1307_v59 = vadd.f32 %v1306_v40, %v1305_v54 }
 0x59b   : > { %v1308_v49 = vrot.slane %v1307_v59, 1 }
 0x59d   : > { %v1309_v63 = vadd.f32 %v1308_v49, %v1307_v59  ;;  %v6200_v59 = vld [vmem:[#allocation2 + $0x90] sm:$0xff]  ;;  %v6204_v49 = vld [vmem:[#allocation2 + $0x88] sm:$0xff] }
 0x59e   : > { %6998 = vst [vmem:[#allocation23_spill] sm:$0xff] %v6200_v59  ;;  %6999 = vst [vmem:[#allocation24_spill] sm:$0xff] %v6204_v49 }
 0x59f   : > { %5258 = vrcp.f32 %v1309_v63  ;;  %v6208_v63 = vld [vmem:[#allocation2 + $0x80] sm:$0xff] }
 0x5a0   : > { %7000 = vst [vmem:[#allocation25_spill] sm:$0xff] %v6208_v63 }
 0x5ac   : > { %v5259_v56 = vpop.eup %5258 }
 0x5ad   : > { %v1311_v8 = vmul.f32 %v5259_v56, %v5257_v62  ;;  %v6185_v62 = vld [vmem:[#allocation2 + $0xa8] sm:$0xff] }
 0x5ae   : > { %6995 = vst [vmem:[#allocation20_spill] sm:$0xff] %v6185_v62  ;;  %v6215_v56 = vld [vmem:[%s6911_s3 + $0x8] ss:$0 sm:$0xff] }
 0x5af   : > { %v1312_v4 = vadd.f32 1e-08, %v1311_v8  ;;  %7001 = vst [vmem:[#allocation26_spill] sm:$0xff] %v6215_v56 }
 0x5b1   : > { %4702 = vmatmul.mubr.msk.f32.vlgmr.msra.gmra.mxu0 %vm946_vm4, %v1312_v4 }
 0x5b2   : > { %4724 = vmatpush3.msra.mxu0 %v6145_v30 }
 0x5b3   : > { %4725 = vmatprep.subr.mxu0 %v6147_v2 }
 0x5b4   : > { %4726 = vmatpush3.msra.mxu0 %v6147_v2 }
 0x5b5   : > { %4727 = vmatprep.subr.mxu0 %v6151_v22 }
 0x5b6   : > { %4728 = vmatpush3.msra.mxu0 %v6151_v22 }
 0x5b7   : > { %4729 = vmatprep.subr.mxu0 %v6155_v53 }
 0x5b8   : > { %4730 = vmatpush3.msra.mxu0 %v6155_v53 }
 0x5b9   : > { %4731 = vmatprep.subr.mxu0 %v6159_v26 }
 0x5ba   : > { %4732 = vmatpush3.msra.mxu0 %v6159_v26 }
 0x5bb   : > { %4733 = vmatprep.subr.mxu0 %v6163_v11 }
 0x5bc   : > { %4734 = vmatpush3.msra.mxu0 %v6163_v11 }
 0x5bd   : > { %4735 = vmatprep.subr.mxu0 %v6167_v12 }
 0x5be   : > { %4736 = vmatpush3.msra.mxu0 %v6167_v12 }
 0x5bf   : > { %4737 = vmatprep.subr.mxu0 %v6171_v55 }
 0x5c0   : > { %4738 = vmatpush3.msra.mxu0 %v6171_v55 }
 0x614   : > { %v1216_v33 = vpop.f32.mrf.mxu0 }
 0x615   : > { %4739 = vmatprep.mubr.msk.f32.mxu0 %vm946_vm4, %v1216_v33 }
 0x616   : > { %v4665_v28 = vpop.f32.mrf.mxu0 }
 0x617   : > { %v1581_v28 = vpop.permute.xlu1 %1580 }
 0x671   : > { %v1382_v0 = vpop.f32.mrf.mxu0 }
 0x672   : > { %5260 = vrcp.f32 %v1382_v0 }
 0x673   : > { %v4703_v35 = vpop.f32.mrf.mxu0 }
 0x674   : > { %v1583_v35 = vpop.permute.xlu0 %1582 }
 0x67f   : > { %v5261_v60 = vpop.eup %5260 }
 0x680   : > { %v1387_v44 = vmul.f32 %v5261_v60, %v1312_v4 }
 0x682   : > { %4721 = vmatmul.mubr.msk.f32.vlgmr.msra.gmra.mxu1 %vm946_vm4, %v1387_v44 }
 0x683   : > { %4743 = vmatpush3.msra.mxu1 %v6179_v34 }
 0x684   : > { %4744 = vmatprep.subr.mxu1 %v6181_v48 }
 0x685   : > { %4745 = vmatpush3.msra.mxu1 %v6181_v48 }
 0x686   : > { %4746 = vmatprep.subr.mxu1 %v6185_v62 }
 0x687   : > { %4747 = vmatpush3.msra.mxu1 %v6185_v62 }
 0x688   : > { %4748 = vmatprep.subr.mxu1 %v6189_v5 }
 0x689   : > { %4749 = vmatpush3.msra.mxu1 %v6189_v5 }
 0x68a   : > { %4750 = vmatprep.subr.mxu1 %v6193_v42 }
 0x68b   : > { %4751 = vmatpush3.msra.mxu1 %v6193_v42 }
 0x68c   : > { %4752 = vmatprep.subr.mxu1 %v6200_v59 }
 0x68d   : > { %4753 = vmatpush3.msra.mxu1 %v6200_v59 }
 0x68e   : > { %4754 = vmatprep.subr.mxu1 %v6204_v49 }
 0x68f   : > { %4755 = vmatpush3.msra.mxu1 %v6204_v49 }
 0x690   : > { %4756 = vmatprep.subr.mxu1 %v6208_v63 }
 0x691   : > { %4757 = vmatpush3.msra.mxu1 %v6208_v63 }
 0x742   : > { %v1489_v54 = vpop.f32.mrf.mxu1 }
 0x743   : > { %4740 = vmatmul.mubr.msk.f32.vlgmr.msra.gmra.mxu0 %vm946_vm4, %v1489_v54  ;;  %v6226_v54 = vld [vmem:[%s6911_s3 + $0x9] ss:$0 sm:$0xff] }
 0x744   : > { %v4722_v40 = vpop.f32.mrf.mxu1  ;;  %7002 = vst [vmem:[#allocation27_spill] sm:$0xff] %v6226_v54 }
 0x803   : > { %v4741_v8 = vpop.f32.mrf.mxu0 }
 0x804   : > { %v1575_v4 = vadd.f32 %v4741_v8, %v6215_v56 }
 0x805   : > { %v1569_v33 = vpop.f32.mrf.mxu0 }
 0x806   : > { %v1570_v0 = vadd.f32 %v6215_v56, %v1569_v33  ;;  %v1587_v44 = vsel %vm314_vm0, %v1575_v4, %v1583_v35 }
 0x808   : > { %v1586_v60 = vsel %vm314_vm0, %v1570_v0, %v1581_v28 }
 0x809   : > { %4758 = vmatprep.mubr.msk.f32.mxu1 %vm946_vm4, %v1586_v60 }
 0x80a   : > { %4759 = vmatmul.mubr.msk.f32.vlgmr.msra.gmra.mxu1 %vm946_vm4, %v1587_v44 }
 0x8ca   : > { %v4760_v40 = vpop.f32.mrf.mxu1 }
 0x8cb   : > { %v1670_v8 = vadd.f32 %v4760_v40, %v6226_v54 }
 0x8cc   : > { %v1664_v63 = vpop.f32.mrf.mxu1 }
 0x8cd   : > { %v1665_v33 = vadd.f32 %v6226_v54, %v1664_v63  ;;  %1689 = vrot.lane.b32.xlu0 %v1670_v8, %s5487_s14  ;;  %v4237_v4 = vmul.f32 -1.442695, %v1670_v8 }
 0x8cf   : > { %1687 = vrot.lane.b32.xlu1 %v1665_v33, %s5487_s14  ;;  %v4236_v0 = vmul.f32 -1.442695, %v1665_v33  ;;  %5262 = vpow2.f32 %v4237_v4 }
 0x8d1   : > { %5264 = vpow2.f32 %v4236_v0 }
 0x8dc   : > { %v5263_v60 = vpop.eup %5262 }
 0x8dd   : > { %v1680_v56 = vadd.f32 1.0, %v5263_v60 }
 0x8de   : > { %v5265_v44 = vpop.eup %5264 }
 0x8df   : > { %v1679_v49 = vadd.f32 1.0, %v5265_v44  ;;  %5266 = vrcp.f32 %v1680_v56 }
 0x8e1   : > { %5268 = vrcp.f32 %v1679_v49 }
 0x8ec   : > { %v5267_v59 = vpop.eup %5266 }
 0x8ee   : > { %v5269_v5 = vpop.eup %5268 }
 0x93f   : > { %v1690_v42 = vpop.permute.xlu0 %1689 }
 0x940   : > { %v1694_v40 = vmul.f32 %v5267_v59, %v1690_v42  ;;  %v1708_v42 = vsub.f32 1.0, %v5267_v59 }
 0x941   : > { %v1688_v62 = vpop.permute.xlu1 %1687 }
 0x942   : > { %v1693_v63 = vmul.f32 %v5269_v5, %v1688_v62  ;;  %1699 = vrot.lane.b32.xlu0 %v1694_v40, %s5490_s23  ;;  %v1720_v62 = vmul.f32 %v5267_v59, %v1583_v35  ;;  %v1707_v40 = vsub.f32 1.0, %v5269_v5 }
 0x944   : > { %1697 = vrot.lane.b32.xlu1 %v1693_v63, %s5490_s23 }
 0x9b4   : > { %v1700_v54 = vpop.permute.xlu0 %1699 }
 0x9b5   : > { %v1704_v48 = vadd.f32 %v1700_v54, %v1670_v8  ;;  %v1719_v54 = vmul.f32 %v5269_v5, %v1581_v28 }
 0x9b6   : > { %v1698_v4 = vpop.permute.xlu1 %1697 }
 0x9b7   : > { %5270 = vtanh.f32 %v1704_v48  ;;  %v1703_v0 = vadd.f32 %v1698_v4, %v1665_v33 }
 0x9b9   : > { %5272 = vtanh.f32 %v1703_v0 }
 0x9c4   : > { %v5271_v60 = vpop.eup %5270 }
 0x9c5   : > { %1713 = vrot.lane.b32.xlu0 %v5271_v60, %s5491_s5 }
 0x9c6   : > { %v5273_v49 = vpop.eup %5272 }
 0x9c7   : > { %1711 = vrot.lane.b32.xlu1 %v5273_v49, %s5491_s5 }
 0xa37   : > { %v1714_v56 = vpop.permute.xlu0 %1713 }
 0xa38   : > { %v1718_v44 = vmul.f32 %v1714_v56, %v1708_v42 }
 0xa39   : > { %v1712_v55 = vpop.permute.xlu1 %1711 }
 0xa3a   : > { %v6236_v63 = vadd.f32 %v1720_v62, %v1718_v44  ;;  %v1717_v8 = vmul.f32 %v1712_v55, %v1707_v40 }
 0xa3c   : > { %v6238_v48 = vadd.f32 %v1719_v54, %v1717_v8  ;;  %1727 = vrot.lane.b32.xlu0 %v6236_v63, %s5491_s5  ;;  %v4239_v8 = vld [vmem:[%s6911_s3 + $0x5] ss:$0 sm:$0xff] }
 0xa3e   : > { %1725 = vrot.lane.b32.xlu1 %v6238_v48, %s5491_s5 }
 0xaae   : > { %v1728_v33 = vpop.permute.xlu0 %1727 }
 0xaaf   : > { %v1734_v4 = vsel %vm314_vm0, %v1728_v33, 0.0  ;;  %v4238_v33 = vld [vmem:[%s6911_s3 + $0x4] ss:$0 sm:$0xff] }
 0xab0   : > { %1735 = vadd.xlane.f32.xlu0 %v1734_v4  ;;  %v1726_v59 = vpop.permute.xlu1 %1725  ;;  %v6260_v4 = vld [vmem:[#allocation2 + $0xd8] sm:$0xff] }
 0xab1   : > { %v1731_v35 = vsel %vm314_vm0, %v1726_v59, 0.0  ;;  %v6262_v59 = vld [vmem:[#allocation2 + $0xd0] sm:$0xff]  ;;  %4761 = vmatprep.subr.mxu0 %v6260_v4 }
 0xab2   : > { %1732 = vadd.xlane.f32.xlu1 %v1731_v35  ;;  %7003 = vst [vmem:[#allocation28_spill] sm:$0xff] %v6262_v59  ;;  %4762 = vmatpush3.msra.mxu0 %v6260_v4  ;;  %v6266_v35 = vld [vmem:[#allocation2 + $0xc8] sm:$0xff] }
 0xab3   : > { %7004 = vst [vmem:[#allocation29_spill] sm:$0xff] %v6266_v35  ;;  %4763 = vmatprep.subr.mxu0 %v6262_v59 }
 0xab4   : > { %4764 = vmatpush3.msra.mxu0 %v6262_v59 }
 0xab5   : > { %4765 = vmatprep.subr.mxu0 %v6266_v35 }
 0xab6   : > { %4766 = vmatpush3.msra.mxu0 %v6266_v35 }
 0xb39   : > { %v1736_v0 = vpop.xlane.xlu0 %1735 }
 0xb3a   : > { %v1738_v60 = vmul.f32 0.03125, %v1736_v0 }
 0xb3b   : > { %v1733_v5 = vpop.xlane.xlu1 %1732 }
 0xb3c   : > { %v1740_v55 = vsub.f32 %v6236_v63, %v1738_v60  ;;  %v1737_v28 = vmul.f32 0.03125, %v1733_v5 }
 0xb3e   : > { %v1742_v49 = vmul.f32 %v1740_v55, %v1740_v55  ;;  %v1739_v42 = vsub.f32 %v6238_v48, %v1737_v28 }
 0xb40   : > { %v1741_v56 = vmul.f32 %v1739_v42, %v1739_v42  ;;  %1747 = vrot.lane.b32.xlu1 %v1742_v49, %s5491_s5 }
 0xb42   : > { %1745 = vrot.lane.b32.xlu0 %v1741_v56, %s5491_s5 }
 0xbb2   : > { %v1748_v62 = vpop.permute.xlu1 %1747 }
 0xbb3   : > { %v1754_v44 = vsel %vm314_vm0, %v1748_v62, 0.0  ;;  %v6272_v62 = vld [vmem:[#allocation2 + $0xc0] sm:$0xff] }
 0xbb4   : > { %v1746_v40 = vpop.permute.xlu0 %1745  ;;  %1755 = vadd.xlane.f32.xlu0 %v1754_v44  ;;  %7005 = vst [vmem:[#allocation30_spill] sm:$0xff] %v6272_v62  ;;  %4767 = vmatprep.subr.mxu0 %v6272_v62  ;;  %v6276_v44 = vld [vmem:[#allocation2 + $0x38] sm:$0xff] }
 0xbb5   : > { %v1751_v54 = vsel %vm314_vm0, %v1746_v40, 0.0  ;;  %4768 = vmatpush3.msra.mxu0 %v6272_v62  ;;  %v6279_v40 = vld [vmem:[#allocation2 + $0x118] sm:$0xff] }
 0xbb6   : > { %1752 = vadd.xlane.f32.xlu1 %v1751_v54  ;;  %4791 = vmatprep.subr.mxu0 %v6276_v44  ;;  %v6281_v54 = vld [vmem:[#allocation2 + $0x110] sm:$0xff] }
 0xbb7   : > { %7006 = vst [vmem:[#allocation31_spill] sm:$0xff] %v6281_v54  ;;  %4772 = vmatprep.subr.mxu1 %v6279_v40 }
 0xbb8   : > { %4773 = vmatpush3.msra.mxu1 %v6279_v40 }
 0xbb9   : > { %4774 = vmatprep.subr.mxu1 %v6281_v54 }
 0xbba   : > { %4775 = vmatpush3.msra.mxu1 %v6281_v54 }
 0xbc7   : > { %1780 = vrot.lane.b32.xlu1 %v4239_v8, %s5487_s14  ;;  %v6285_v8 = vld [vmem:[#allocation2 + $0x108] sm:$0xff] }
 0xbc8   : > { %4776 = vmatprep.subr.mxu1 %v6285_v8 }
 0xbc9   : > { %4777 = vmatpush3.msra.mxu1 %v6285_v8 }
 0xbca   : > { %1770 = vrot.lane.b32.xlu0 %v4238_v33, %s5487_s14 }
 0xc3d   : > { %v1756_v0 = vpop.xlane.xlu0 %1755 }
 0xc3e   : > { %v1758_v60 = vmul.f32 0.03125, %v1756_v0 }
 0xc3f   : > { %v1753_v5 = vpop.xlane.xlu1 %1752 }
 0xc40   : > { %v1760_v28 = vadd.f32 1e-05, %v1758_v60  ;;  %v1757_v49 = vmul.f32 0.03125, %v1753_v5  ;;  %v6291_v5 = vld [vmem:[#allocation2 + $0x100] sm:$0xff] }
 0xc41   : > { %v6287_v0 = vpop.permute.xlu0 %1770  ;;  %7008 = vst [vmem:[#allocation33_spill] sm:$0xff] %v6291_v5  ;;  %4778 = vmatprep.subr.mxu1 %v6291_v5 }
 0xc42   : > { %5274 = vrsqrt.f32 %v1760_v28  ;;  %v1759_v56 = vadd.f32 1e-05, %v1757_v49  ;;  %7007 = vst [vmem:[#allocation32_spill] sm:$0xff] %v6287_v0  ;;  %4779 = vmatpush3.msra.mxu1 %v6291_v5 }
 0xc43   : > { %v6293_v49 = vpop.permute.xlu1 %1780 }
 0xc44   : > { %5276 = vrsqrt.f32 %v1759_v56  ;;  %7009 = vst [vmem:[#allocation34_spill] sm:$0xff] %v6293_v49 }
 0xc4f   : > { %v5275_v33 = vpop.eup %5274 }
 0xc50   : > { %v1764_v60 = vmul.f32 %v5275_v33, %v1740_v55 }
 0xc51   : > { %v5277_v28 = vpop.eup %5276 }
 0xc52   : > { %v1774_v56 = vmul.f32 %v6287_v0, %v1764_v60  ;;  %v1763_v62 = vmul.f32 %v5277_v28, %v1739_v42  ;;  %v6308_v42 = vld [vmem:[#allocation2 + $0x30] sm:$0xff]  ;;  %v6329_v60 = vld [vmem:[#allocation2 + $0xe8] sm:$0xff]  ;;  %v6333_v28 = vld [vmem:[#allocation2 + $0xe0] sm:$0xff] }
 0xc53   : > { %7010 = vst [vmem:[#allocation35_spill] sm:$0xff] %v6308_v42  ;;  %7015 = vst [vmem:[#allocation40_spill] sm:$0xff] %v6329_v60 }
 0xc54   : > { %v1784_v35 = vadd.f32 %v6293_v49, %v1774_v56  ;;  %v1773_v55 = vmul.f32 %v6287_v0, %v1763_v62  ;;  %v6312_v62 = vld [vmem:[#allocation2 + $0x28] sm:$0xff]  ;;  %7016 = vst [vmem:[#allocation41_spill] sm:$0xff] %v6333_v28  ;;  %v6347_v0 = vld [vmem:[#allocation2 + $0x1d8] sm:$0xff] }
 0xc55   : > { %7011 = vst [vmem:[#allocation36_spill] sm:$0xff] %v6312_v62  ;;  %v6341_v56 = vld [vmem:[%s6911_s3 + $0xa] ss:$0 sm:$0xff] }
 0xc56   : > { %1793 = vrot.lane.b32.xlu0 %v1784_v35, %s5491_s5  ;;  %v1783_v33 = vadd.f32 %v6293_v49, %v1773_v55  ;;  %v6316_v35 = vld [vmem:[#allocation2 + $0x20] sm:$0xff]  ;;  %7017 = vst [vmem:[#allocation42_spill] sm:$0xff] %v6341_v56 }
 0xc57   : > { %7012 = vst [vmem:[#allocation37_spill] sm:$0xff] %v6316_v35 }
 0xc58   : > { %1791 = vrot.lane.b32.xlu1 %v1783_v33, %s5491_s5 }
 0xcc8   : > { %v1794_v59 = vpop.permute.xlu0 %1793 }
 0xcca   : > { %v1792_v54 = vpop.permute.xlu1 %1791 }
 0xccb   : > { %4769 = vmatprep.mubr.msk.f32.mxu0 %vm314_vm0, %v1792_v54  ;;  %v6325_v54 = vld [vmem:[#allocation2 + $0xf0] sm:$0xff] }
 0xccc   : > { %4770 = vmatmul.mubr.msk.f32.vlgmr.msra.gmra.mxu0 %vm314_vm0, %v1794_v59  ;;  %v6321_v59 = vld [vmem:[#allocation2 + $0xf8] sm:$0xff]  ;;  %7014 = vst [vmem:[#allocation39_spill] sm:$0xff] %v6325_v54 }
 0xccd   : > { %4792 = vmatpush3.msra.mxu0 %v6276_v44  ;;  %7013 = vst [vmem:[#allocation38_spill] sm:$0xff] %v6321_v59  ;;  %4780 = vmatprep.subr.mxu1 %v6321_v59 }
 0xcce   : > { %4793 = vmatprep.subr.mxu0 %v6308_v42  ;;  %4781 = vmatpush3.msra.mxu1 %v6321_v59 }
 0xccf   : > { %4794 = vmatpush3.msra.mxu0 %v6308_v42  ;;  %4782 = vmatprep.subr.mxu1 %v6325_v54 }
 0xcd0   : > { %4795 = vmatprep.subr.mxu0 %v6312_v62  ;;  %4783 = vmatpush3.msra.mxu1 %v6325_v54 }
 0xcd1   : > { %4796 = vmatpush3.msra.mxu0 %v6312_v62  ;;  %4784 = vmatprep.subr.mxu1 %v6329_v60 }
 0xcd2   : > { %4797 = vmatprep.subr.mxu0 %v6316_v35  ;;  %4785 = vmatpush3.msra.mxu1 %v6329_v60 }
 0xcd3   : > { %4798 = vmatpush3.msra.mxu0 %v6316_v35  ;;  %4786 = vmatprep.subr.mxu1 %v6333_v28 }
 0xcd4   : > { %4802 = vmatprep.subr.mxu0 %v6984_v7  ;;  %4787 = vmatpush3.msra.mxu1 %v6333_v28  ;;  %v6353_v28 = vld [vmem:[#allocation2 + $0x1d0] sm:$0xff] }
 0xcd5   : > { %4821 = vmatprep.subr.mxu1 %v6984_v7 }
 0xd8c   : > { %v4771_v55 = vpop.f32.mrf.mxu0 }
 0xd8d   : > { %v1871_v33 = vadd.f32 %v4771_v55, %v6341_v56 }
 0xd8e   : > { %v1865_v35 = vpop.f32.mrf.mxu0 }
 0xd8f   : > { %v1866_v62 = vadd.f32 %v6341_v56, %v1865_v35  ;;  %v1875_v49 = vmax.f32 %v1871_v33, 0.0 }
 0xd91   : > { %v1874_v42 = vmax.f32 %v1866_v62, 0.0 }
 0xd93   : > { %4788 = vmatprep.mubr.msk.f32.mxu1 %vm946_vm4, %v1874_v42 }
 0xd94   : > { %4789 = vmatmul.mubr.msk.f32.vlgmr.msra.gmra.mxu1 %vm946_vm4, %v1875_v49 }
 0xd95   : > { %4822 = vmatpush3.msra.mxu1 %v6347_v0  ;;  %4837 = vmatprep.mubr.msk.f32.mxu1 %vm5489_vm1, %v6984_v7 }
 0xd96   : > { %4823 = vmatprep.subr.mxu1 %v6984_v7 }
 0xd97   : > { %4824 = vmatpush3.msra.mxu1 %v6353_v28 }
 0xd98   : > { %4825 = vmatprep.subr.mxu1 %v6984_v7 }
 0xd99   : > { %4826 = vmatpush3.msra.mxu1 %v5870_v13 }
 0xd9a   : > { %4827 = vmatprep.subr.mxu1 %v6984_v7 }
 0xd9b   : > { %4828 = vmatpush3.msra.mxu1 %v5874_v14 }
 0xd9c   : > { %4829 = vmatprep.subr.mxu1 %v6984_v7 }
 0xd9d   : > { %4830 = vmatpush3.msra.mxu1 %v5877_v15  ;;  %v4245_v15 = vld [vmem:[%s6911_s3 + $0xb] ss:$0 sm:$0xff] }
 0xd9e   : > { %4831 = vmatprep.subr.mxu1 %v6984_v7 }
 0xd9f   : > { %4832 = vmatpush3.msra.mxu1 %v5884_v18 }
 0xda0   : > { %4833 = vmatprep.subr.mxu1 %v6984_v7 }
 0xda1   : > { %4834 = vmatpush3.msra.mxu1 %v5887_v19 }
 0xda2   : > { %4835 = vmatprep.subr.mxu1 %v6984_v7 }
 0xda3   : > { %4836 = vmatpush3.msra.mxu1 %v5894_v21 }
 0xda4   : > { %4859 = vmatprep.subr.mxu1 %v6984_v7 }
 0xe54   : > { %v4790_v13 = vpop.f32.mrf.mxu1 }
 0xe55   : > { %1961 = vrot.lane.b32.xlu0 %v4790_v13, %s5487_s14 }
 0xe56   : > { %v1948_v14 = vpop.f32.mrf.mxu1 }
 0xe57   : > { %1959 = vrot.lane.b32.xlu1 %v1948_v14, %s5487_s14 }
 0xe5b   : > { %1972 = vrot.lane.b32.xlu1 %v4245_v15, %s5487_s14 }
 0xec7   : > { %v1962_v18 = vpop.permute.xlu0 %1961 }
 0xec8   : > { %v1966_v49 = vadd.f32 %v1962_v18, %v6236_v63 }
 0xec9   : > { %v1960_v19 = vpop.permute.xlu1 %1959 }
 0xeca   : > { %v1965_v21 = vadd.f32 %v1960_v19, %v6238_v48 }
 0xecd   : > { %v6377_v42 = vpop.permute.xlu1 %1972 }
 0xece   : > { %7018 = vst [vmem:[#allocation43_spill] sm:$0xff] %v6377_v42  ;;  %v6380_v62 = vadd.f32 %v6377_v42, %v1966_v49  ;;  %v6383_v35 = vadd.f32 %v6377_v42, %v1965_v21 }
 0xed0   : > { %1981 = vrot.lane.b32.xlu1 %v6380_v62, %s5491_s5  ;;  %1979 = vrot.lane.b32.xlu0 %v6383_v35, %s5491_s5 }
 0xf42   : > { %v1982_v55 = vpop.permute.xlu1 %1981  ;;  %v1980_v33 = vpop.permute.xlu0 %1979 }
 0xf43   : > { %v1988_v63 = vsel %vm314_vm0, %v1982_v55, 0.0  ;;  %v1985_v48 = vsel %vm314_vm0, %v1980_v33, 0.0 }
 0xf44   : > { %1989 = vadd.xlane.f32.xlu1 %v1988_v63  ;;  %1986 = vadd.xlane.f32.xlu0 %v1985_v48  ;;  %v5348_v48 = vld [vmem:[%s6911_s3 + $0x3] ss:$0 sm:$0xff] }
 0xfcd   : > { %v1990_v13 = vpop.xlane.xlu1 %1989  ;;  %v1987_v14 = vpop.xlane.xlu0 %1986 }
 0xfce   : > { %v1992_v15 = vmul.f32 0.03125, %v1990_v13  ;;  %v1991_v18 = vmul.f32 0.03125, %v1987_v14  ;;  %v5349_v13 = vld [vmem:[%s6911_s3 + $0x2] ss:$0 sm:$0xff] }
 0xfd0   : > { %v1994_v19 = vsub.f32 %v6380_v62, %v1992_v15  ;;  %v1993_v49 = vsub.f32 %v6383_v35, %v1991_v18 }
 0xfd2   : > { %v1996_v21 = vmul.f32 %v1994_v19, %v1994_v19  ;;  %v1995_v42 = vmul.f32 %v1993_v49, %v1993_v49 }
 0xfd4   : > { %2001 = vrot.lane.b32.xlu1 %v1996_v21, %s5491_s5  ;;  %1999 = vrot.lane.b32.xlu0 %v1995_v42, %s5491_s5 }
0x1046   : > { %v2002_v56 = vpop.permute.xlu1 %2001  ;;  %v2000_v55 = vpop.permute.xlu0 %1999 }
0x1047   : > { %v2008_v33 = vsel %vm314_vm0, %v2002_v56, 0.0  ;;  %v2005_v63 = vsel %vm314_vm0, %v2000_v55, 0.0 }
0x1048   : > { %2009 = vadd.xlane.f32.xlu1 %v2008_v33  ;;  %2006 = vadd.xlane.f32.xlu0 %v2005_v63 }
0x1059   : > { %2026 = vrot.lane.b32.xlu1 %v5348_v48, %s5487_s14 }
0x105e   : > { %2020 = vrot.lane.b32.xlu0 %v5349_v13, %s5487_s14 }
0x10d1   : > { %v2010_v42 = vpop.xlane.xlu1 %2009  ;;  %v2007_v14 = vpop.xlane.xlu0 %2006 }
0x10d2   : > { %v2012_v15 = vmul.f32 0.03125, %v2010_v42  ;;  %v2011_v56 = vmul.f32 0.03125, %v2007_v14 }
0x10d4   : > { %v2014_v18 = vadd.f32 1e-05, %v2012_v15  ;;  %v2013_v21 = vadd.f32 1e-05, %v2011_v56 }
0x10d5   : > { %v6405_v33 = vpop.permute.xlu0 %2020  ;;  %v6407_v54 = vpop.permute.xlu1 %2026 }
0x10d6   : > { %5278 = vrsqrt.f32 %v2014_v18 }
0x10d7   : > { %5280 = vrsqrt.f32 %v2013_v21 }
0x10e3   : > { %v5279_v55 = vpop.eup %5278 }
0x10e4   : > { %v5281_v63 = vpop.eup %5280  ;;  %v2018_v60 = vmul.f32 %v5279_v55, %v1994_v19 }
0x10e5   : > { %v2017_v48 = vmul.f32 %v5281_v63, %v1993_v49  ;;  %v6438_v49 = vld [vmem:[%s6911_s3 + $0x7] ss:$0 sm:$0xff] }
0x10e6   : > { %v2024_v59 = vmul.f32 %v6405_v33, %v2018_v60 }
0x10e7   : > { %v2023_v13 = vmul.f32 %v6405_v33, %v2017_v48 }
0x10e8   : > { %v2030_v5 = vadd.f32 %v6407_v54, %v2024_v59  ;;  %v7020_v59 = vld [vmem:[#allocation9_spill] sm:$0xff] }
0x10e9   : > { %v2029_v42 = vadd.f32 %v6407_v54, %v2023_v13 }
0x10ea   : > { %2035 = vrot.lane.b32.xlu1 %v2030_v5, %s5491_s5  ;;  %v7019_v5 = vld [vmem:[#allocation8_spill] sm:$0xff] }
0x10eb   : > { %2033 = vrot.lane.b32.xlu0 %v2029_v42, %s5491_s5 }
0x115c   : > { %v2036_v14 = vpop.permute.xlu1 %2035 }
0x115d   : > { %v2034_v15 = vpop.permute.xlu0 %2033 }
0x115e   : > { %4799 = vmatprep.mubr.msk.f32.mxu0 %vm314_vm0, %v2034_v15 }
0x115f   : > { %4800 = vmatmul.mubr.msk.f32.vlgmr.msra.gmra.mxu0 %vm314_vm0, %v2036_v14 }
0x1160   : > { %4803 = vmatpush3.msra.mxu0 %v5749_v20  ;;  %4818 = vmatprep.mubr.msk.f32.mxu0 %vm5489_vm1, %v6984_v7 }
0x1161   : > { %4804 = vmatprep.subr.mxu0 %v6984_v7 }
0x1162   : > { %4805 = vmatpush3.msra.mxu0 %v5758_v25 }
0x1163   : > { %4806 = vmatprep.subr.mxu0 %v6984_v7 }
0x1164   : > { %4807 = vmatpush3.msra.mxu0 %v5768_v32 }
0x1165   : > { %4808 = vmatprep.subr.mxu0 %v6984_v7 }
0x1166   : > { %4809 = vmatpush3.msra.mxu0 %v5779_v37 }
0x1167   : > { %4810 = vmatprep.subr.mxu0 %v6984_v7 }
0x1168   : > { %4811 = vmatpush3.msra.mxu0 %v5790_v45 }
0x1169   : > { %4812 = vmatprep.subr.mxu0 %v6984_v7 }
0x116a   : > { %4813 = vmatpush3.msra.mxu0 %v5801_v50 }
0x116b   : > { %4814 = vmatprep.subr.mxu0 %v6984_v7 }
0x116c   : > { %4815 = vmatpush3.msra.mxu0 %v7019_v5 }
0x116d   : > { %4816 = vmatprep.subr.mxu0 %v6984_v7 }
0x116e   : > { %4817 = vmatpush3.msra.mxu0 %v7020_v59 }
0x116f   : > { %4840 = vmatprep.subr.mxu0 %v6984_v7 }
0x121f   : > { %v4801_v60 = vpop.f32.mrf.mxu0 }
0x1221   : > { %v2107_v19 = vpop.f32.mrf.mxu0 }
0x1222   : > { %v2108_v56 = vadd.f32 %v6438_v49, %v2107_v19 }
0x1224   : > { %4819 = vmatmul.mubr.msk.f32.vlgmr.msra.gmra.mxu0 %vm946_vm4, %v2108_v56 }
0x1225   : > { %4841 = vmatpush3.msra.mxu0 %v6055_v36  ;;  %4856 = vmatprep.mubr.msk.f32.mxu0 %vm5489_vm1, %v6984_v7 }
0x1226   : > { %4842 = vmatprep.subr.mxu0 %v6984_v7 }
0x1227   : > { %4843 = vmatpush3.msra.mxu0 %v6074_v23 }
0x1228   : > { %4844 = vmatprep.subr.mxu0 %v6984_v7 }
0x1229   : > { %4845 = vmatpush3.msra.mxu0 %v6061_v27 }
0x122a   : > { %4846 = vmatprep.subr.mxu0 %v6984_v7 }
0x122b   : > { %4847 = vmatpush3.msra.mxu0 %v6080_v61 }
0x122c   : > { %4848 = vmatprep.subr.mxu0 %v6984_v7 }
0x122d   : > { %4849 = vmatpush3.msra.mxu0 %v6064_v57 }
0x122e   : > { %4850 = vmatprep.subr.mxu0 %v6984_v7 }
0x122f   : > { %4851 = vmatpush3.msra.mxu0 %v6086_v17 }
0x1230   : > { %4852 = vmatprep.subr.mxu0 %v6984_v7 }
0x1231   : > { %4853 = vmatpush3.msra.mxu0 %v6068_v41 }
0x1232   : > { %4854 = vmatprep.subr.mxu0 %v6984_v7 }
0x1233   : > { %4855 = vmatpush3.msra.mxu0 %v6092_v24 }
0x1234   : > { %4878 = vmatprep.subr.mxu0 %v6984_v7 }
0x12e4   : > { %v2185_v18 = vpop.f32.mrf.mxu0 }
0x12e5   : > { %v2189_v21 = vsel %vm946_vm4, %v2185_v18, -inf }
0x12e6   : > { %v2190_v55 = vrot.slane %v2189_v21, 4  ;;  %v4820_v63 = vpop.f32.mrf.mxu0 }
0x12e8   : > { %v2191_v48 = vmax.f32 %v2189_v21, %v2190_v55  ;;  %v6509_v55 = vld [vmem:[#allocation2 + $0x1c8] sm:$0xff] }
0x12ea   : > { %v2192_v13 = vrot.slane %v2191_v48, 2 }
0x12ec   : > { %v2193_v42 = vmax.f32 %v2191_v48, %v2192_v13  ;;  %v6513_v13 = vld [vmem:[#allocation2 + $0x1c0] sm:$0xff] }
0x12ee   : > { %v2194_v14 = vrot.slane %v2193_v42, 1 }
0x12f0   : > { %v2195_v15 = vmax.f32 %v2193_v42, %v2194_v14  ;;  %v6517_v14 = vld [vmem:[#allocation2 + $0x1b8] sm:$0xff] }
0x12f2   : > { %v2196_v19 = vsub.f32 %v2185_v18, %v2195_v15 }
0x12f4   : > { %v2197_v56 = vmul.f32 1.442695, %v2196_v19  ;;  %v6521_v19 = vld [vmem:[#allocation2 + $0x1b0] sm:$0xff] }
0x12f6   : > { %5282 = vpow2.f32 %v2197_v56 }
0x1303   : > { %v5283_v41 = vpop.eup %5282 }
0x1304   : > { %v2199_v17 = vsel %vm946_vm4, %v5283_v41, 0.0 }
0x1305   : > { %v2200_v57 = vrot.slane %v2199_v17, 4 }
0x1307   : > { %v2201_v24 = vadd.f32 %v2200_v57, %v2199_v17 }
0x1309   : > { %v2202_v61 = vrot.slane %v2201_v24, 2 }
0x130b   : > { %v2203_v27 = vadd.f32 %v2202_v61, %v2201_v24 }
0x130d   : > { %v2204_v23 = vrot.slane %v2203_v27, 1 }
0x130f   : > { %v2205_v36 = vadd.f32 %v2204_v23, %v2203_v27 }
0x1311   : > { %5284 = vrcp.f32 %v2205_v36  ;;  %v2113_v36 = vadd.f32 %v6438_v49, %v4801_v60 }
0x131e   : > { %v5285_v59 = vpop.eup %5284 }
0x131f   : > { %v2207_v63 = vmul.f32 %v5285_v59, %v5283_v41 }
0x1321   : > { %v2208_v21 = vadd.f32 1e-08, %v2207_v63  ;;  %v6525_v63 = vld [vmem:[#allocation2 + $0x1a8] sm:$0xff] }
0x1323   : > { %4838 = vmatmul.mubr.msk.f32.vlgmr.msra.gmra.mxu1 %vm946_vm4, %v2208_v21 }
0x1324   : > { %4860 = vmatpush3.msra.mxu1 %v5978_v9  ;;  %4875 = vmatprep.mubr.msk.f32.mxu1 %vm5489_vm1, %v6984_v7 }
0x1325   : > { %4861 = vmatprep.subr.mxu1 %v6984_v7 }
0x1326   : > { %4862 = vmatpush3.msra.mxu1 %v5984_v31 }
0x1327   : > { %4863 = vmatprep.subr.mxu1 %v6984_v7 }
0x1328   : > { %4864 = vmatpush3.msra.mxu1 %v5992_v10 }
0x1329   : > { %4865 = vmatprep.subr.mxu1 %v6984_v7 }
0x132a   : > { %4866 = vmatpush3.msra.mxu1 %v6001_v39 }
0x132b   : > { %4867 = vmatprep.subr.mxu1 %v6984_v7 }
0x132c   : > { %4868 = vmatpush3.msra.mxu1 %v6010_v1 }
0x132d   : > { %4869 = vmatprep.subr.mxu1 %v6984_v7 }
0x132e   : > { %4870 = vmatpush3.msra.mxu1 %v6017_v43 }
0x132f   : > { %4871 = vmatprep.subr.mxu1 %v6984_v7 }
0x1330   : > { %4872 = vmatpush3.msra.mxu1 %v6022_v51 }
0x1331   : > { %4873 = vmatprep.subr.mxu1 %v6984_v7 }
0x1332   : > { %4874 = vmatpush3.msra.mxu1 %v6033_v38 }
0x1333   : > { %4876 = vmatmul.mubr.msk.f32.vlgmr.msra.gmra.mxu1 %vm946_vm4, %v2113_v36  ;;  %4897 = vmatprep.subr.mxu1 %v6984_v7  ;;  %v6529_v36 = vld [vmem:[#allocation2 + $0x1a0] sm:$0xff] }
0x1334   : > { %4898 = vmatpush3.msra.mxu1 %v6070_v46  ;;  %4913 = vmatprep.mubr.msk.f32.mxu1 %vm5489_vm1, %v6984_v7 }
0x1335   : > { %4899 = vmatprep.subr.mxu1 %v6984_v7 }
0x1336   : > { %4900 = vmatpush3.msra.mxu1 %v6098_v3 }
0x1337   : > { %4901 = vmatprep.subr.mxu1 %v6984_v7 }
0x1338   : > { %4902 = vmatpush3.msra.mxu1 %v6095_v29 }
0x1339   : > { %4903 = vmatprep.subr.mxu1 %v6984_v7 }
0x133a   : > { %4904 = vmatpush3.msra.mxu1 %v6106_v58 }
0x133b   : > { %4905 = vmatprep.subr.mxu1 %v6984_v7 }
0x133c   : > { %4906 = vmatpush3.msra.mxu1 %v6103_v6 }
0x133d   : > { %4907 = vmatprep.subr.mxu1 %v6984_v7 }
0x133e   : > { %4908 = vmatpush3.msra.mxu1 %v6112_v52 }
0x133f   : > { %4909 = vmatprep.subr.mxu1 %v6984_v7 }
0x1340   : > { %4910 = vmatpush3.msra.mxu1 %v6115_v47 }
0x1341   : > { %4911 = vmatprep.subr.mxu1 %v6984_v7 }
0x1342   : > { %4912 = vmatpush3.msra.mxu1 %v6120_v16 }
0x1343   : > { %4935 = vmatprep.subr.mxu1 %v6179_v34 }
0x13e3   : > { %v2278_v27 = vpop.f32.mrf.mxu1 }
0x13e4   : > { %5286 = vrcp.f32 %v2278_v27 }
0x13e5   : > { %v4839_v57 = vpop.f32.mrf.mxu1 }
0x13f1   : > { %v5287_v41 = vpop.eup %5286 }
0x13f2   : > { %v2283_v23 = vmul.f32 %v5287_v41, %v2208_v21 }
0x13f3   : > { %v2426_v61 = vpop.f32.mrf.mxu1 }
0x13f4   : > { %v2430_v17 = vsel %vm946_vm4, %v2426_v61, -inf  ;;  %4857 = vmatmul.mubr.msk.f32.vlgmr.msra.gmra.mxu0 %vm946_vm4, %v2283_v23 }
0x13f5   : > { %v2431_v24 = vrot.slane %v2430_v17, 4  ;;  %v4877_v59 = vpop.f32.mrf.mxu1  ;;  %4879 = vmatpush3.msra.mxu0 %v6347_v0  ;;  %4894 = vmatprep.mubr.msk.f32.mxu0 %vm5489_vm1, %v6984_v7 }
0x13f6   : > { %4880 = vmatprep.subr.mxu0 %v6984_v7 }
0x13f7   : > { %v2432_v60 = vmax.f32 %v2430_v17, %v2431_v24  ;;  %4881 = vmatpush3.msra.mxu0 %v6353_v28 }
0x13f8   : > { %4882 = vmatprep.subr.mxu0 %v6984_v7 }
0x13f9   : > { %v2433_v18 = vrot.slane %v2432_v60, 2  ;;  %4883 = vmatpush3.msra.mxu0 %v6509_v55 }
0x13fa   : > { %4884 = vmatprep.subr.mxu0 %v6984_v7 }
0x13fb   : > { %v2434_v48 = vmax.f32 %v2432_v60, %v2433_v18  ;;  %4885 = vmatpush3.msra.mxu0 %v6513_v13 }
0x13fc   : > { %4886 = vmatprep.subr.mxu0 %v6984_v7 }
0x13fd   : > { %v2435_v42 = vrot.slane %v2434_v48, 1  ;;  %4887 = vmatpush3.msra.mxu0 %v6517_v14 }
0x13fe   : > { %4888 = vmatprep.subr.mxu0 %v6984_v7 }
0x13ff   : > { %v2436_v15 = vmax.f32 %v2434_v48, %v2435_v42  ;;  %4889 = vmatpush3.msra.mxu0 %v6521_v19 }
0x1400   : > { %4890 = vmatprep.subr.mxu0 %v6984_v7 }
0x1401   : > { %v2437_v56 = vsub.f32 %v2426_v61, %v2436_v15  ;;  %4891 = vmatpush3.msra.mxu0 %v6525_v63 }
0x1402   : > { %4892 = vmatprep.subr.mxu0 %v6984_v7 }
0x1403   : > { %v2438_v21 = vmul.f32 1.442695, %v2437_v56  ;;  %4893 = vmatpush3.msra.mxu0 %v6529_v36  ;;  %v7024_v56 = vld [vmem:[#allocation21_spill] sm:$0xff] }
0x1404   : > { %4916 = vmatprep.subr.mxu0 %v6145_v30 }
0x1405   : > { %5288 = vpow2.f32 %v2438_v21  ;;  %v7025_v21 = vld [vmem:[#allocation22_spill] sm:$0xff] }
0x1412   : > { %v5289_v27 = vpop.eup %5288 }
0x1413   : > { %v2440_v57 = vsel %vm946_vm4, %v5289_v27, 0.0 }
0x1414   : > { %v2441_v41 = vrot.slane %v2440_v57, 4 }
0x1416   : > { %v2442_v23 = vadd.f32 %v2441_v41, %v2440_v57  ;;  %v7028_v57 = vld [vmem:[#allocation25_spill] sm:$0xff] }
0x1418   : > { %v2443_v61 = vrot.slane %v2442_v23, 2 }
0x141a   : > { %v2444_v17 = vadd.f32 %v2443_v61, %v2442_v23  ;;  %v7029_v61 = vld [vmem:[#allocation28_spill] sm:$0xff] }
0x141c   : > { %v2445_v24 = vrot.slane %v2444_v17, 1 }
0x141e   : > { %v2446_v59 = vadd.f32 %v2445_v24, %v2444_v17  ;;  %v7030_v17 = vld [vmem:[#allocation29_spill] sm:$0xff]  ;;  %v7031_v24 = vld [vmem:[#allocation30_spill] sm:$0xff] }
0x1420   : > { %5290 = vrcp.f32 %v2446_v59 }
0x142d   : > { %v5291_v60 = vpop.eup %5290 }
0x142e   : > { %v2448_v18 = vmul.f32 %v5291_v60, %v5289_v27  ;;  %v7026_v27 = vld [vmem:[#allocation23_spill] sm:$0xff]  ;;  %v7032_v60 = vld [vmem:[#allocation26_spill] sm:$0xff] }
0x1430   : > { %v2449_v48 = vadd.f32 1e-08, %v2448_v18 }
0x1432   : > { %4895 = vmatmul.mubr.msk.f32.vlgmr.msra.gmra.mxu0 %vm946_vm4, %v2449_v48 }
0x1433   : > { %4917 = vmatpush3.msra.mxu0 %v6145_v30  ;;  %v7021_v30 = vld [vmem:[#allocation18_spill] sm:$0xff] }
0x1434   : > { %4918 = vmatprep.subr.mxu0 %v6147_v2 }
0x1435   : > { %4919 = vmatpush3.msra.mxu0 %v6147_v2 }
0x1436   : > { %4920 = vmatprep.subr.mxu0 %v6151_v22 }
0x1437   : > { %4921 = vmatpush3.msra.mxu0 %v6151_v22 }
0x1438   : > { %4922 = vmatprep.subr.mxu0 %v6155_v53 }
0x1439   : > { %4923 = vmatpush3.msra.mxu0 %v6155_v53 }
0x143a   : > { %4924 = vmatprep.subr.mxu0 %v6159_v26 }
0x143b   : > { %4925 = vmatpush3.msra.mxu0 %v6159_v26 }
0x143c   : > { %4926 = vmatprep.subr.mxu0 %v6163_v11 }
0x143d   : > { %4927 = vmatpush3.msra.mxu0 %v6163_v11  ;;  %v7022_v11 = vld [vmem:[#allocation19_spill] sm:$0xff] }
0x143e   : > { %4928 = vmatprep.subr.mxu0 %v6167_v12 }
0x143f   : > { %4929 = vmatpush3.msra.mxu0 %v6167_v12  ;;  %v7023_v12 = vld [vmem:[#allocation20_spill] sm:$0xff] }
0x1440   : > { %4930 = vmatprep.subr.mxu0 %v7021_v30 }
0x1441   : > { %4931 = vmatpush3.msra.mxu0 %v7021_v30 }
0x1442   : > { %4954 = vmatprep.subr.mxu0 %v6260_v4 }
0x14b4   : > { %v2353_v2 = vpop.f32.mrf.mxu0 }
0x14b5   : > { %4932 = vmatprep.mubr.msk.f32.mxu0 %vm946_vm4, %v2353_v2 }
0x14b6   : > { %v4858_v22 = vpop.f32.mrf.mxu0 }
0x14b7   : > { %v7033_v22 = vld [vmem:[#allocation31_spill] sm:$0xff] }
0x14f2   : > { %v2519_v53 = vpop.f32.mrf.mxu0 }
0x14f3   : > { %5292 = vrcp.f32 %v2519_v53  ;;  %v7034_v53 = vld [vmem:[#allocation33_spill] sm:$0xff] }
0x14f4   : > { %v4896_v26 = vpop.f32.mrf.mxu0 }
0x14f5   : > { %v7035_v26 = vld [vmem:[#allocation38_spill] sm:$0xff] }
0x1500   : > { %v5293_v42 = vpop.eup %5292 }
0x1501   : > { %v2524_v15 = vmul.f32 %v5293_v42, %v2449_v48  ;;  %v7036_v42 = vld [vmem:[#allocation39_spill] sm:$0xff] }
0x1503   : > { %4914 = vmatmul.mubr.msk.f32.vlgmr.msra.gmra.mxu1 %vm946_vm4, %v2524_v15  ;;  %v7038_v15 = vld [vmem:[#allocation41_spill] sm:$0xff] }
0x1504   : > { %4936 = vmatpush3.msra.mxu1 %v6179_v34  ;;  %v7027_v34 = vld [vmem:[#allocation24_spill] sm:$0xff] }
0x1505   : > { %4937 = vmatprep.subr.mxu1 %v7022_v11 }
0x1506   : > { %4938 = vmatpush3.msra.mxu1 %v7022_v11  ;;  %v7039_v11 = vld [vmem:[#allocation27_spill] sm:$0xff] }
0x1507   : > { %4939 = vmatprep.subr.mxu1 %v7023_v12 }
0x1508   : > { %4940 = vmatpush3.msra.mxu1 %v7023_v12 }
0x1509   : > { %4941 = vmatprep.subr.mxu1 %v7024_v56 }
0x150a   : > { %4942 = vmatpush3.msra.mxu1 %v7024_v56 }
0x150b   : > { %4943 = vmatprep.subr.mxu1 %v7025_v21 }
0x150c   : > { %4944 = vmatpush3.msra.mxu1 %v7025_v21 }
0x150d   : > { %4945 = vmatprep.subr.mxu1 %v7026_v27 }
0x150e   : > { %4946 = vmatpush3.msra.mxu1 %v7026_v27 }
0x150f   : > { %4947 = vmatprep.subr.mxu1 %v7027_v34 }
0x1510   : > { %4948 = vmatpush3.msra.mxu1 %v7027_v34 }
0x1511   : > { %4949 = vmatprep.subr.mxu1 %v7028_v57 }
0x1512   : > { %4950 = vmatpush3.msra.mxu1 %v7028_v57 }
0x1513   : > { %4965 = vmatprep.subr.mxu1 %v6279_v40 }
0x15c3   : > { %v2594_v41 = vpop.f32.mrf.mxu1 }
0x15c4   : > { %4933 = vmatmul.mubr.msk.f32.vlgmr.msra.gmra.mxu0 %vm946_vm4, %v2594_v41 }
0x15c5   : > { %v4915_v23 = vpop.f32.mrf.mxu1  ;;  %4955 = vmatpush3.msra.mxu0 %v6260_v4 }
0x15c6   : > { %4956 = vmatprep.subr.mxu0 %v7029_v61 }
0x15c7   : > { %4957 = vmatpush3.msra.mxu0 %v7029_v61 }
0x15c8   : > { %4958 = vmatprep.subr.mxu0 %v7030_v17 }
0x15c9   : > { %4959 = vmatpush3.msra.mxu0 %v7030_v17 }
0x15ca   : > { %4960 = vmatprep.subr.mxu0 %v7031_v24 }
0x15cb   : > { %4961 = vmatpush3.msra.mxu0 %v7031_v24 }
0x15cc   : > { %4984 = vmatprep.subr.mxu0 %v6276_v44 }
0x1684   : > { %v4934_v59 = vpop.f32.mrf.mxu0 }
0x1685   : > { %v2676_v18 = vadd.f32 %v4934_v59, %v7032_v60 }
0x1686   : > { %v2670_v48 = vpop.f32.mrf.mxu0 }
0x1687   : > { %v2671_v4 = vadd.f32 %v7032_v60, %v2670_v48  ;;  %v2680_v2 = vsel %vm314_vm0, %v2676_v18, %v6380_v62 }
0x1689   : > { %v2679_v30 = vsel %vm314_vm0, %v2671_v4, %v6383_v35 }
0x168a   : > { %4951 = vmatprep.mubr.msk.f32.mxu1 %vm946_vm4, %v2679_v30 }
0x168b   : > { %4952 = vmatmul.mubr.msk.f32.vlgmr.msra.gmra.mxu1 %vm946_vm4, %v2680_v2 }
0x168c   : > { %4966 = vmatpush3.msra.mxu1 %v6279_v40  ;;  %v7037_v40 = vld [vmem:[#allocation40_spill] sm:$0xff] }
0x168d   : > { %4967 = vmatprep.subr.mxu1 %v7033_v22 }
0x168e   : > { %4968 = vmatpush3.msra.mxu1 %v7033_v22 }
0x168f   : > { %4969 = vmatprep.subr.mxu1 %v6285_v8 }
0x1690   : > { %4970 = vmatpush3.msra.mxu1 %v6285_v8 }
0x1691   : > { %4971 = vmatprep.subr.mxu1 %v7034_v53 }
0x1692   : > { %4972 = vmatpush3.msra.mxu1 %v7034_v53 }
0x1693   : > { %4973 = vmatprep.subr.mxu1 %v7035_v26 }
0x1694   : > { %4974 = vmatpush3.msra.mxu1 %v7035_v26 }
0x1695   : > { %4975 = vmatprep.subr.mxu1 %v7036_v42 }
0x1696   : > { %4976 = vmatpush3.msra.mxu1 %v7036_v42 }
0x1697   : > { %4977 = vmatprep.subr.mxu1 %v7037_v40 }
0x1698   : > { %4978 = vmatpush3.msra.mxu1 %v7037_v40 }
0x1699   : > { %4979 = vmatprep.subr.mxu1 %v7038_v15 }
0x169a   : > { %4980 = vmatpush3.msra.mxu1 %v7038_v15 }
0x169b   : > { %5014 = vmatprep.subr.mxu1 %v6984_v7 }
0x174b   : > { %v4953_v8 = vpop.f32.mrf.mxu1 }
0x174c   : > { %v2759_v12 = vadd.f32 %v4953_v8, %v7039_v11 }
0x174d   : > { %v2753_v56 = vpop.f32.mrf.mxu1 }
0x174e   : > { %v2754_v21 = vadd.f32 %v7039_v11, %v2753_v56  ;;  %2778 = vrot.lane.b32.xlu1 %v2759_v12, %s5487_s14  ;;  %v4259_v27 = vmul.f32 -1.442695, %v2759_v12 }
0x1750   : > { %2776 = vrot.lane.b32.xlu0 %v2754_v21, %s5487_s14  ;;  %v4258_v34 = vmul.f32 -1.442695, %v2754_v21  ;;  %5294 = vpow2.f32 %v4259_v27 }
0x1752   : > { %5296 = vpow2.f32 %v4258_v34 }
0x175d   : > { %v5295_v57 = vpop.eup %5294 }
0x175e   : > { %v2769_v23 = vadd.f32 1.0, %v5295_v57 }
0x175f   : > { %v5297_v41 = vpop.eup %5296 }
0x1760   : > { %v2768_v61 = vadd.f32 1.0, %v5297_v41  ;;  %5298 = vrcp.f32 %v2769_v23 }
0x1762   : > { %5300 = vrcp.f32 %v2768_v61 }
0x176d   : > { %v5299_v17 = vpop.eup %5298 }
0x176e   : > { %v2797_v42 = vsub.f32 1.0, %v5299_v17  ;;  %v2809_v15 = vmul.f32 %v5299_v17, %v6380_v62 }
0x176f   : > { %v5301_v60 = vpop.eup %5300 }
0x1770   : > { %v2796_v11 = vsub.f32 1.0, %v5301_v60 }
0x17c0   : > { %v2779_v24 = vpop.permute.xlu1 %2778 }
0x17c1   : > { %v2783_v59 = vmul.f32 %v5299_v17, %v2779_v24 }
0x17c2   : > { %v2777_v18 = vpop.permute.xlu0 %2776 }
0x17c3   : > { %v2782_v48 = vmul.f32 %v5301_v60, %v2777_v18  ;;  %2788 = vrot.lane.b32.xlu1 %v2783_v59, %s5490_s23 }
0x17c5   : > { %2786 = vrot.lane.b32.xlu0 %v2782_v48, %s5490_s23 }
0x1835   : > { %v2789_v4 = vpop.permute.xlu1 %2788 }
0x1836   : > { %v2793_v30 = vadd.f32 %v2789_v4, %v2759_v12  ;;  %v2808_v12 = vmul.f32 %v5301_v60, %v6383_v35 }
0x1837   : > { %v2787_v2 = vpop.permute.xlu0 %2786 }
0x1838   : > { %5302 = vtanh.f32 %v2793_v30  ;;  %v2792_v22 = vadd.f32 %v2787_v2, %v2754_v21 }
0x183a   : > { %5304 = vtanh.f32 %v2792_v22 }
0x1845   : > { %v5303_v53 = vpop.eup %5302 }
0x1846   : > { %2802 = vrot.lane.b32.xlu1 %v5303_v53, %s5491_s5 }
0x1847   : > { %v5305_v26 = vpop.eup %5304 }
0x1848   : > { %2800 = vrot.lane.b32.xlu0 %v5305_v26, %s5491_s5 }
0x18b8   : > { %v2803_v40 = vpop.permute.xlu1 %2802 }
0x18b9   : > { %v2807_v8 = vmul.f32 %v2803_v40, %v2797_v42 }
0x18ba   : > { %v2801_v56 = vpop.permute.xlu0 %2800 }
0x18bb   : > { %v6611_v27 = vadd.f32 %v2809_v15, %v2807_v8  ;;  %v2806_v34 = vmul.f32 %v2801_v56, %v2796_v11 }
0x18bd   : > { %v6614_v21 = vadd.f32 %v2808_v12, %v2806_v34  ;;  %2816 = vrot.lane.b32.xlu1 %v6611_v27, %s5491_s5  ;;  %v7040_v34 = vld [vmem:[#allocation32_spill] sm:$0xff] }
0x18bf   : > { %2814 = vrot.lane.b32.xlu0 %v6614_v21, %s5491_s5 }
0x192f   : > { %v2817_v57 = vpop.permute.xlu1 %2816 }
0x1930   : > { %v2823_v41 = vsel %vm314_vm0, %v2817_v57, 0.0 }
0x1931   : > { %2824 = vadd.xlane.f32.xlu1 %v2823_v41  ;;  %v2815_v62 = vpop.permute.xlu0 %2814 }
0x1932   : > { %v2820_v23 = vsel %vm314_vm0, %v2815_v62, 0.0  ;;  %v7041_v62 = vld [vmem:[#allocation34_spill] sm:$0xff] }
0x1933   : > { %2821 = vadd.xlane.f32.xlu0 %v2820_v23 }
0x19ba   : > { %v2825_v61 = vpop.xlane.xlu1 %2824 }
0x19bb   : > { %v2827_v17 = vmul.f32 0.03125, %v2825_v61 }
0x19bc   : > { %v2822_v35 = vpop.xlane.xlu0 %2821 }
0x19bd   : > { %v2829_v24 = vsub.f32 %v6611_v27, %v2827_v17  ;;  %v2826_v59 = vmul.f32 0.03125, %v2822_v35 }
0x19bf   : > { %v2831_v60 = vmul.f32 %v2829_v24, %v2829_v24  ;;  %v2828_v18 = vsub.f32 %v6614_v21, %v2826_v59 }
0x19c1   : > { %v2830_v48 = vmul.f32 %v2828_v18, %v2828_v18  ;;  %2836 = vrot.lane.b32.xlu1 %v2831_v60, %s5491_s5  ;;  %v7043_v60 = vld [vmem:[#allocation36_spill] sm:$0xff] }
0x19c3   : > { %2834 = vrot.lane.b32.xlu0 %v2830_v48, %s5491_s5 }
0x1a33   : > { %v2837_v4 = vpop.permute.xlu1 %2836 }
0x1a34   : > { %v2843_v30 = vsel %vm314_vm0, %v2837_v4, 0.0  ;;  %v7045_v4 = vld [vmem:[#allocation42_spill] sm:$0xff] }
0x1a35   : > { %2844 = vadd.xlane.f32.xlu1 %v2843_v30  ;;  %v2835_v2 = vpop.permute.xlu0 %2834 }
0x1a36   : > { %v2840_v22 = vsel %vm314_vm0, %v2835_v2, 0.0 }
0x1a37   : > { %2841 = vadd.xlane.f32.xlu0 %v2840_v22 }
0x1abe   : > { %v2845_v53 = vpop.xlane.xlu1 %2844 }
0x1abf   : > { %v2847_v26 = vmul.f32 0.03125, %v2845_v53 }
0x1ac0   : > { %v2842_v42 = vpop.xlane.xlu0 %2841 }
0x1ac1   : > { %v2849_v40 = vadd.f32 1e-05, %v2847_v26  ;;  %v2846_v15 = vmul.f32 0.03125, %v2842_v42 }
0x1ac3   : > { %5306 = vrsqrt.f32 %v2849_v40  ;;  %v2848_v8 = vadd.f32 1e-05, %v2846_v15  ;;  %v7046_v15 = vld [vmem:[#allocation43_spill] sm:$0xff] }
0x1ac5   : > { %5308 = vrsqrt.f32 %v2848_v8 }
0x1ad0   : > { %v5307_v11 = vpop.eup %5306 }
0x1ad1   : > { %v2853_v56 = vmul.f32 %v5307_v11, %v2829_v24  ;;  %v7042_v24 = vld [vmem:[#allocation35_spill] sm:$0xff] }
0x1ad2   : > { %v5309_v12 = vpop.eup %5308 }
0x1ad3   : > { %v2855_v57 = vmul.f32 %v2853_v56, %v7040_v34  ;;  %v2852_v41 = vmul.f32 %v5309_v12, %v2828_v18  ;;  %v7044_v18 = vld [vmem:[#allocation37_spill] sm:$0xff] }
0x1ad5   : > { %v2857_v23 = vadd.f32 %v2855_v57, %v7041_v62  ;;  %v2854_v61 = vmul.f32 %v2852_v41, %v7040_v34 }
0x1ad7   : > { %2862 = vrot.lane.b32.xlu1 %v2857_v23, %s5491_s5  ;;  %v2856_v17 = vadd.f32 %v2854_v61, %v7041_v62 }
0x1ad9   : > { %2860 = vrot.lane.b32.xlu0 %v2856_v17, %s5491_s5 }
0x1b49   : > { %v2863_v59 = vpop.permute.xlu1 %2862 }
0x1b4b   : > { %v2861_v35 = vpop.permute.xlu0 %2860 }
0x1b4c   : > { %4962 = vmatprep.mubr.msk.f32.mxu0 %vm314_vm0, %v2861_v35 }
0x1b4d   : > { %4963 = vmatmul.mubr.msk.f32.vlgmr.msra.gmra.mxu0 %vm314_vm0, %v2863_v59 }
0x1b4e   : > { %4985 = vmatpush3.msra.mxu0 %v6276_v44 }
0x1b4f   : > { %4986 = vmatprep.subr.mxu0 %v7042_v24 }
0x1b50   : > { %4987 = vmatpush3.msra.mxu0 %v7042_v24 }
0x1b51   : > { %4988 = vmatprep.subr.mxu0 %v7043_v60 }
0x1b52   : > { %4989 = vmatpush3.msra.mxu0 %v7043_v60 }
0x1b53   : > { %4990 = vmatprep.subr.mxu0 %v7044_v18 }
0x1b54   : > { %4991 = vmatpush3.msra.mxu0 %v7044_v18 }
0x1b55   : > { %4995 = vmatprep.subr.mxu0 %v6984_v7 }
0x1c0d   : > { %v4964_v48 = vpop.f32.mrf.mxu0 }
0x1c0e   : > { %v2940_v30 = vadd.f32 %v4964_v48, %v7045_v4 }
0x1c0f   : > { %v2934_v2 = vpop.f32.mrf.mxu0 }
0x1c10   : > { %v2935_v44 = vadd.f32 %v7045_v4, %v2934_v2  ;;  %v2944_v53 = vmax.f32 %v2940_v30, 0.0 }
0x1c12   : > { %v2943_v22 = vmax.f32 %v2935_v44, 0.0 }
0x1c14   : > { %4981 = vmatprep.mubr.msk.f32.mxu1 %vm946_vm4, %v2943_v22 }
0x1c15   : > { %4982 = vmatmul.mubr.msk.f32.vlgmr.msra.gmra.mxu1 %vm946_vm4, %v2944_v53 }
0x1c16   : > { %5015 = vmatpush3.msra.mxu1 %v6347_v0  ;;  %5030 = vmatprep.mubr.msk.f32.mxu1 %vm5489_vm1, %v6984_v7 }
0x1c17   : > { %5016 = vmatprep.subr.mxu1 %v6984_v7 }
0x1c18   : > { %5017 = vmatpush3.msra.mxu1 %v6353_v28 }
0x1c19   : > { %5018 = vmatprep.subr.mxu1 %v6984_v7 }
0x1c1a   : > { %5019 = vmatpush3.msra.mxu1 %v6509_v55 }
0x1c1b   : > { %5020 = vmatprep.subr.mxu1 %v6984_v7 }
0x1c1c   : > { %5021 = vmatpush3.msra.mxu1 %v6513_v13 }
0x1c1d   : > { %5022 = vmatprep.subr.mxu1 %v6984_v7 }
0x1c1e   : > { %5023 = vmatpush3.msra.mxu1 %v6517_v14 }
0x1c1f   : > { %5024 = vmatprep.subr.mxu1 %v6984_v7 }
0x1c20   : > { %5025 = vmatpush3.msra.mxu1 %v6521_v19 }
0x1c21   : > { %5026 = vmatprep.subr.mxu1 %v6984_v7 }
0x1c22   : > { %5027 = vmatpush3.msra.mxu1 %v6525_v63 }
0x1c23   : > { %5028 = vmatprep.subr.mxu1 %v6984_v7 }
0x1c24   : > { %5029 = vmatpush3.msra.mxu1 %v6529_v36 }
0x1c25   : > { %5052 = vmatprep.subr.mxu1 %v6984_v7 }
0x1cd5   : > { %v4983_v0 = vpop.f32.mrf.mxu1 }
0x1cd6   : > { %3030 = vrot.lane.b32.xlu1 %v4983_v0, %s5487_s14 }
0x1cd7   : > { %v3017_v28 = vpop.f32.mrf.mxu1 }
0x1cd8   : > { %3028 = vrot.lane.b32.xlu0 %v3017_v28, %s5487_s14 }
0x1d48   : > { %v3031_v26 = vpop.permute.xlu1 %3030 }
0x1d49   : > { %v3035_v42 = vadd.f32 %v3031_v26, %v6611_v27 }
0x1d4a   : > { %v3029_v40 = vpop.permute.xlu0 %3028 }
0x1d4b   : > { %v6670_v8 = vadd.f32 %v3035_v42, %v7046_v15  ;;  %v3034_v11 = vadd.f32 %v3029_v40, %v6614_v21 }
0x1d4d   : > { %v6674_v56 = vadd.f32 %v3034_v11, %v7046_v15  ;;  %3042 = vrot.lane.b32.xlu1 %v6670_v8, %s5491_s5 }
0x1d4f   : > { %3040 = vrot.lane.b32.xlu0 %v6674_v56, %s5491_s5 }
0x1dbf   : > { %v3043_v12 = vpop.permute.xlu1 %3042 }
0x1dc0   : > { %v3049_v57 = vsel %vm314_vm0, %v3043_v12, 0.0 }
0x1dc1   : > { %3050 = vadd.xlane.f32.xlu1 %v3049_v57  ;;  %v3041_v27 = vpop.permute.xlu0 %3040 }
0x1dc2   : > { %v3046_v41 = vsel %vm314_vm0, %v3041_v27, 0.0 }
0x1dc3   : > { %3047 = vadd.xlane.f32.xlu0 %v3046_v41 }
0x1e4a   : > { %v3051_v23 = vpop.xlane.xlu1 %3050 }
0x1e4b   : > { %v3053_v61 = vmul.f32 0.03125, %v3051_v23 }
0x1e4c   : > { %v3048_v21 = vpop.xlane.xlu0 %3047 }
0x1e4d   : > { %v3055_v17 = vsub.f32 %v6670_v8, %v3053_v61  ;;  %v3052_v35 = vmul.f32 0.03125, %v3048_v21  ;;  %v7053_v21 = vld [vmem:[#allocation16_spill] sm:$0xff] }
0x1e4f   : > { %v3057_v59 = vmul.f32 %v3055_v17, %v3055_v17  ;;  %v3054_v24 = vsub.f32 %v6674_v56, %v3052_v35  ;;  %v7055_v35 = vld [vmem:[#allocation17_spill] sm:$0xff] }
0x1e51   : > { %v3056_v60 = vmul.f32 %v3054_v24, %v3054_v24  ;;  %3062 = vrot.lane.b32.xlu1 %v3057_v59, %s5491_s5 }
0x1e53   : > { %3060 = vrot.lane.b32.xlu0 %v3056_v60, %s5491_s5 }
0x1ec3   : > { %v3063_v18 = vpop.permute.xlu1 %3062 }
0x1ec4   : > { %v3069_v48 = vsel %vm314_vm0, %v3063_v18, 0.0 }
0x1ec5   : > { %3070 = vadd.xlane.f32.xlu1 %v3069_v48  ;;  %v3061_v4 = vpop.permute.xlu0 %3060 }
0x1ec6   : > { %v3066_v30 = vsel %vm314_vm0, %v3061_v4, 0.0 }
0x1ec7   : > { %3067 = vadd.xlane.f32.xlu0 %v3066_v30 }
0x1f4e   : > { %v3071_v2 = vpop.xlane.xlu1 %3070 }
0x1f4f   : > { %v3073_v44 = vmul.f32 0.03125, %v3071_v2 }
0x1f50   : > { %v3068_v22 = vpop.xlane.xlu0 %3067 }
0x1f51   : > { %v3075_v53 = vadd.f32 1e-05, %v3073_v44  ;;  %v3072_v0 = vmul.f32 0.03125, %v3068_v22 }
0x1f53   : > { %5310 = vrsqrt.f32 %v3075_v53  ;;  %v3074_v28 = vadd.f32 1e-05, %v3072_v0 }
0x1f55   : > { %5312 = vrsqrt.f32 %v3074_v28 }
0x1f60   : > { %v5311_v26 = vpop.eup %5310 }
0x1f61   : > { %v3079_v42 = vmul.f32 %v5311_v26, %v3055_v17  ;;  %v7054_v17 = vld [vmem:[#allocation13_spill] sm:$0xff] }
0x1f62   : > { %v5313_v40 = vpop.eup %5312 }
0x1f63   : > { %v3081_v11 = vmul.f32 %v3079_v42, %v6405_v33  ;;  %v3078_v12 = vmul.f32 %v5313_v40, %v3054_v24 }
0x1f65   : > { %v3083_v57 = vadd.f32 %v3081_v11, %v6407_v54  ;;  %v3080_v27 = vmul.f32 %v3078_v12, %v6405_v33  ;;  %v7051_v33 = vld [vmem:[#allocation15_spill] sm:$0xff] }
0x1f67   : > { %3088 = vrot.lane.b32.xlu1 %v3083_v57, %s5491_s5  ;;  %v3082_v41 = vadd.f32 %v3080_v27, %v6407_v54  ;;  %v7050_v54 = vld [vmem:[#allocation11_spill] sm:$0xff] }
0x1f69   : > { %3086 = vrot.lane.b32.xlu0 %v3082_v41, %s5491_s5 }
0x1fd9   : > { %v3089_v61 = vpop.permute.xlu1 %3088 }
0x1fdb   : > { %v3087_v23 = vpop.permute.xlu0 %3086 }
0x1fdc   : > { %4992 = vmatprep.mubr.msk.f32.mxu0 %vm314_vm0, %v3087_v23 }
0x1fdd   : > { %4993 = vmatmul.mubr.msk.f32.vlgmr.msra.gmra.mxu0 %vm314_vm0, %v3089_v61 }
0x1fde   : > { %4996 = vmatpush3.msra.mxu0 %v5749_v20  ;;  %5011 = vmatprep.mubr.msk.f32.mxu0 %vm5489_vm1, %v6984_v7  ;;  %v7047_v20 = vld [vmem:[#allocation9_spill] sm:$0xff] }
0x1fdf   : > { %4997 = vmatprep.subr.mxu0 %v6984_v7 }
0x1fe0   : > { %4998 = vmatpush3.msra.mxu0 %v5758_v25 }
0x1fe1   : > { %4999 = vmatprep.subr.mxu0 %v6984_v7 }
0x1fe2   : > { %5000 = vmatpush3.msra.mxu0 %v5768_v32 }
0x1fe3   : > { %5001 = vmatprep.subr.mxu0 %v6984_v7 }
0x1fe4   : > { %5002 = vmatpush3.msra.mxu0 %v5779_v37 }
0x1fe5   : > { %5003 = vmatprep.subr.mxu0 %v6984_v7 }
0x1fe6   : > { %5004 = vmatpush3.msra.mxu0 %v5790_v45  ;;  %v7048_v45 = vld [vmem:[#allocation10_spill] sm:$0xff] }
0x1fe7   : > { %5005 = vmatprep.subr.mxu0 %v6984_v7 }
0x1fe8   : > { %5006 = vmatpush3.msra.mxu0 %v5801_v50  ;;  %v7049_v50 = vld [vmem:[#allocation14_spill] sm:$0xff] }
0x1fe9   : > { %5007 = vmatprep.subr.mxu0 %v6984_v7 }
0x1fea   : > { %5008 = vmatpush3.msra.mxu0 %v7019_v5  ;;  %v7052_v5 = vld [vmem:[#allocation12_spill] sm:$0xff] }
0x1feb   : > { %5009 = vmatprep.subr.mxu0 %v6984_v7 }
0x1fec   : > { %5010 = vmatpush3.msra.mxu0 %v7047_v20 }
0x1fed   : > { %5033 = vmatprep.subr.mxu0 %v6984_v7 }
0x209d   : > { %v4994_v25 = vpop.f32.mrf.mxu0 }
0x209f   : > { %v3160_v32 = vpop.f32.mrf.mxu0 }
0x20a0   : > { %v3161_v37 = vadd.f32 %v6438_v49, %v3160_v32 }
0x20a2   : > { %5012 = vmatmul.mubr.msk.f32.vlgmr.msra.gmra.mxu0 %vm946_vm4, %v3161_v37 }
0x20a3   : > { %5034 = vmatpush3.msra.mxu0 %v7048_v45  ;;  %5049 = vmatprep.mubr.msk.f32.mxu0 %vm5489_vm1, %v6984_v7 }
0x20a4   : > { %5035 = vmatprep.subr.mxu0 %v6984_v7 }
0x20a5   : > { %5036 = vmatpush3.msra.mxu0 %v7049_v50 }
0x20a6   : > { %5037 = vmatprep.subr.mxu0 %v6984_v7 }
0x20a7   : > { %5038 = vmatpush3.msra.mxu0 %v7050_v54 }
0x20a8   : > { %5039 = vmatprep.subr.mxu0 %v6984_v7 }
0x20a9   : > { %5040 = vmatpush3.msra.mxu0 %v7051_v33 }
0x20aa   : > { %5041 = vmatprep.subr.mxu0 %v6984_v7 }
0x20ab   : > { %5042 = vmatpush3.msra.mxu0 %v7052_v5  ;;  %v5363_v5 = vld [vmem:[#allocation2 + $0x60] sm:$0xff] }
0x20ac   : > { %5043 = vmatprep.subr.mxu0 %v6984_v7 }
0x20ad   : > { %5044 = vmatpush3.msra.mxu0 %v7053_v21  ;;  %v5364_v21 = vld [vmem:[#allocation2 + $0x58] sm:$0xff] }
0x20ae   : > { %5045 = vmatprep.subr.mxu0 %v6984_v7 }
0x20af   : > { %5046 = vmatpush3.msra.mxu0 %v7054_v17  ;;  %v5365_v17 = vld [vmem:[#allocation2 + $0x50] sm:$0xff] }
0x20b0   : > { %5047 = vmatprep.subr.mxu0 %v6984_v7 }
0x20b1   : > { %5048 = vmatpush3.msra.mxu0 %v7055_v35  ;;  %v5366_v35 = vld [vmem:[#allocation2 + $0x48] sm:$0xff] }
0x20b2   : > { %5071 = vmatprep.subr.mxu0 %v6984_v7 }
0x2162   : > { %v3238_v59 = vpop.f32.mrf.mxu0 }
0x2163   : > { %v3242_v24 = vsel %vm946_vm4, %v3238_v59, -inf }
0x2164   : > { %v3243_v60 = vrot.slane %v3242_v24, 4  ;;  %v5013_v18 = vpop.f32.mrf.mxu0 }
0x2166   : > { %v3244_v48 = vmax.f32 %v3242_v24, %v3243_v60  ;;  %v5368_v24 = vld [vmem:[#allocation2 + $0xd8] sm:$0xff] }
0x2168   : > { %v3245_v4 = vrot.slane %v3244_v48, 2 }
0x216a   : > { %v3246_v30 = vmax.f32 %v3244_v48, %v3245_v4 }
0x216c   : > { %v3247_v2 = vrot.slane %v3246_v30, 1 }
0x216e   : > { %v3248_v44 = vmax.f32 %v3246_v30, %v3247_v2 }
0x2170   : > { %v3249_v22 = vsub.f32 %v3238_v59, %v3248_v44  ;;  %v5367_v59 = vld [vmem:[#allocation2 + $0x40] sm:$0xff]  ;;  %v5369_v44 = vld [vmem:[#allocation2 + $0xb0] sm:$0xff] }
0x2172   : > { %v3250_v53 = vmul.f32 1.442695, %v3249_v22  ;;  %v5370_v22 = vld [vmem:[#allocation2 + $0xa8] sm:$0xff] }
0x2174   : > { %5314 = vpow2.f32 %v3250_v53  ;;  %v5371_v53 = vld [vmem:[#allocation2 + $0xa0] sm:$0xff] }
0x2181   : > { %v5315_v0 = vpop.eup %5314 }
0x2182   : > { %v3252_v28 = vsel %vm946_vm4, %v5315_v0, 0.0 }
0x2183   : > { %v3253_v26 = vrot.slane %v3252_v28, 4 }
0x2185   : > { %v3254_v42 = vadd.f32 %v3253_v26, %v3252_v28  ;;  %v5373_v28 = vld [vmem:[#allocation2 + $0x90] sm:$0xff]  ;;  %v5374_v26 = vld [vmem:[#allocation2 + $0x88] sm:$0xff] }
0x2187   : > { %v3255_v40 = vrot.slane %v3254_v42, 2 }
0x2189   : > { %v3256_v11 = vadd.f32 %v3255_v40, %v3254_v42  ;;  %v5375_v42 = vld [vmem:[#allocation2 + $0x80] sm:$0xff]  ;;  %v5376_v40 = vld [vmem:[#allocation2 + $0x118] sm:$0xff] }
0x218b   : > { %v3257_v12 = vrot.slane %v3256_v11, 1 }
0x218d   : > { %v3258_v57 = vadd.f32 %v3257_v12, %v3256_v11 }
0x218f   : > { %5316 = vrcp.f32 %v3258_v57  ;;  %v5377_v57 = vld [vmem:[#allocation2 + $0xd0] sm:$0xff] }
0x219c   : > { %v5317_v27 = vpop.eup %5316 }
0x219d   : > { %v3260_v41 = vmul.f32 %v5317_v27, %v5315_v0  ;;  %v5372_v0 = vld [vmem:[#allocation2 + $0x98] sm:$0xff]  ;;  %v5378_v27 = vld [vmem:[#allocation2 + $0xc8] sm:$0xff] }
0x219f   : > { %v3261_v23 = vadd.f32 1e-08, %v3260_v41  ;;  %v5379_v41 = vld [vmem:[#allocation2 + $0xc0] sm:$0xff] }
0x21a1   : > { %5031 = vmatmul.mubr.msk.f32.vlgmr.msra.gmra.mxu1 %vm946_vm4, %v3261_v23 }
0x21a2   : > { %5053 = vmatpush3.msra.mxu1 %v5978_v9  ;;  %5068 = vmatprep.mubr.msk.f32.mxu1 %vm5489_vm1, %v6984_v7  ;;  %v3166_v9 = vadd.f32 %v6438_v49, %v4994_v25 }
0x21a3   : > { %5054 = vmatprep.subr.mxu1 %v6984_v7 }
0x21a4   : > { %5055 = vmatpush3.msra.mxu1 %v5984_v31  ;;  %v6774_v31 = vld [vmem:[#allocation2 + $0xb8] sm:$0xff] }
0x21a5   : > { %5056 = vmatprep.subr.mxu1 %v6984_v7 }
0x21a6   : > { %5057 = vmatpush3.msra.mxu1 %v5992_v10 }
0x21a7   : > { %5058 = vmatprep.subr.mxu1 %v6984_v7 }
0x21a8   : > { %5059 = vmatpush3.msra.mxu1 %v6001_v39 }
0x21a9   : > { %5060 = vmatprep.subr.mxu1 %v6984_v7 }
0x21aa   : > { %5061 = vmatpush3.msra.mxu1 %v6010_v1 }
0x21ab   : > { %5062 = vmatprep.subr.mxu1 %v6984_v7 }
0x21ac   : > { %5063 = vmatpush3.msra.mxu1 %v6017_v43 }
0x21ad   : > { %5064 = vmatprep.subr.mxu1 %v6984_v7 }
0x21ae   : > { %5065 = vmatpush3.msra.mxu1 %v6022_v51 }
0x21af   : > { %5066 = vmatprep.subr.mxu1 %v6984_v7 }
0x21b0   : > { %5067 = vmatpush3.msra.mxu1 %v6033_v38 }
0x21b1   : > { %5069 = vmatmul.mubr.msk.f32.vlgmr.msra.gmra.mxu1 %vm946_vm4, %v3166_v9  ;;  %5090 = vmatprep.subr.mxu1 %v6984_v7  ;;  %v5380_v9 = vld [vmem:[%s6911_s3 + $0x8] ss:$0 sm:$0xff] }
0x21b2   : > { %5091 = vmatpush3.msra.mxu1 %v6070_v46  ;;  %5106 = vmatprep.mubr.msk.f32.mxu1 %vm5489_vm1, %v6984_v7 }
0x21b3   : > { %5092 = vmatprep.subr.mxu1 %v6984_v7 }
0x21b4   : > { %5093 = vmatpush3.msra.mxu1 %v6098_v3  ;;  %v5358_v3 = vld [vmem:[#allocation2 + $0x1d8] sm:$0xff] }
0x21b5   : > { %5094 = vmatprep.subr.mxu1 %v6984_v7 }
0x21b6   : > { %5095 = vmatpush3.msra.mxu1 %v6095_v29 }
0x21b7   : > { %5096 = vmatprep.subr.mxu1 %v6984_v7 }
0x21b8   : > { %5097 = vmatpush3.msra.mxu1 %v6106_v58  ;;  %v5359_v58 = vld [vmem:[#allocation2 + $0x1d0] sm:$0xff] }
0x21b9   : > { %5098 = vmatprep.subr.mxu1 %v6984_v7 }
0x21ba   : > { %5099 = vmatpush3.msra.mxu1 %v6103_v6 }
0x21bb   : > { %5100 = vmatprep.subr.mxu1 %v6984_v7 }
0x21bc   : > { %5101 = vmatpush3.msra.mxu1 %v6112_v52 }
0x21bd   : > { %5102 = vmatprep.subr.mxu1 %v6984_v7 }
0x21be   : > { %5103 = vmatpush3.msra.mxu1 %v6115_v47 }
0x21bf   : > { %5104 = vmatprep.subr.mxu1 %v6984_v7 }
0x21c0   : > { %5105 = vmatpush3.msra.mxu1 %v6120_v16 }
0x21c1   : > { %5128 = vmatprep.subr.mxu1 %v6774_v31 }
0x2261   : > { %v3331_v10 = vpop.f32.mrf.mxu1 }
0x2262   : > { %5318 = vrcp.f32 %v3331_v10 }
0x2263   : > { %v5032_v39 = vpop.f32.mrf.mxu1 }
0x226f   : > { %v5319_v1 = vpop.eup %5318 }
0x2270   : > { %v3336_v43 = vmul.f32 %v5319_v1, %v3261_v23 }
0x2271   : > { %v3479_v51 = vpop.f32.mrf.mxu1 }
0x2272   : > { %v3483_v38 = vsel %vm946_vm4, %v3479_v51, -inf  ;;  %5050 = vmatmul.mubr.msk.f32.vlgmr.msra.gmra.mxu0 %vm946_vm4, %v3336_v43 }
0x2273   : > { %v3484_v46 = vrot.slane %v3483_v38, 4  ;;  %v5070_v29 = vpop.f32.mrf.mxu1  ;;  %5072 = vmatpush3.msra.mxu0 %v5358_v3  ;;  %5087 = vmatprep.mubr.msk.f32.mxu0 %vm5489_vm1, %v6984_v7  ;;  %v5385_v3 = vld [vmem:[#allocation2 + $0xf0] sm:$0xff] }
0x2274   : > { %5073 = vmatprep.subr.mxu0 %v6984_v7  ;;  %v5384_v29 = vld [vmem:[#allocation2 + $0xf8] sm:$0xff] }
0x2275   : > { %v3485_v6 = vmax.f32 %v3483_v38, %v3484_v46  ;;  %5074 = vmatpush3.msra.mxu0 %v5359_v58  ;;  %v5382_v38 = vld [vmem:[#allocation2 + $0x108] sm:$0xff]  ;;  %v5383_v46 = vld [vmem:[#allocation2 + $0x100] sm:$0xff] }
0x2276   : > { %5075 = vmatprep.subr.mxu0 %v6984_v7  ;;  %v5387_v58 = vld [vmem:[#allocation2 + $0xe0] sm:$0xff] }
0x2277   : > { %v3486_v52 = vrot.slane %v3485_v6, 2  ;;  %5076 = vmatpush3.msra.mxu0 %v6509_v55 }
0x2278   : > { %5077 = vmatprep.subr.mxu0 %v6984_v7 }
0x2279   : > { %v3487_v47 = vmax.f32 %v3485_v6, %v3486_v52  ;;  %5078 = vmatpush3.msra.mxu0 %v6513_v13  ;;  %v5360_v13 = vld [vmem:[#allocation2 + $0x78] sm:$0xff]  ;;  %v5386_v6 = vld [vmem:[#allocation2 + $0xe8] sm:$0xff] }
0x227a   : > { %5079 = vmatprep.subr.mxu0 %v6984_v7 }
0x227b   : > { %v3488_v16 = vrot.slane %v3487_v47, 1  ;;  %5080 = vmatpush3.msra.mxu0 %v6517_v14 }
0x227c   : > { %5081 = vmatprep.subr.mxu0 %v6984_v7 }
0x227d   : > { %v3489_v49 = vmax.f32 %v3487_v47, %v3488_v16  ;;  %5082 = vmatpush3.msra.mxu0 %v6521_v19  ;;  %v5388_v47 = vld [vmem:[%s6911_s3 + $0x9] ss:$0 sm:$0xff] }
0x227e   : > { %5083 = vmatprep.subr.mxu0 %v6984_v7 }
0x227f   : > { %v3490_v61 = vsub.f32 %v3479_v51, %v3489_v49  ;;  %5084 = vmatpush3.msra.mxu0 %v6525_v63  ;;  %v5381_v51 = vld [vmem:[#allocation2 + $0x110] sm:$0xff] }
0x2280   : > { %5085 = vmatprep.subr.mxu0 %v6984_v7  ;;  %v5361_v7 = vld [vmem:[#allocation2 + $0x70] sm:$0xff] }
0x2281   : > { %v3491_v55 = vmul.f32 1.442695, %v3490_v61  ;;  %5086 = vmatpush3.msra.mxu0 %v6529_v36  ;;  %v5362_v36 = vld [vmem:[#allocation2 + $0x68] sm:$0xff] }
0x2282   : > { %5109 = vmatprep.subr.mxu0 %v5360_v13 }
0x2283   : > { %5320 = vpow2.f32 %v3491_v55 }
0x2290   : > { %v5321_v20 = vpop.eup %5320 }
0x2291   : > { %v3493_v14 = vsel %vm946_vm4, %v5321_v20, 0.0 }
0x2292   : > { %v3494_v25 = vrot.slane %v3493_v14, 4 }
0x2294   : > { %v3495_v32 = vadd.f32 %v3494_v25, %v3493_v14 }
0x2296   : > { %v3496_v37 = vrot.slane %v3495_v32, 2 }
0x2298   : > { %v3497_v19 = vadd.f32 %v3496_v37, %v3495_v32 }
0x229a   : > { %v3498_v45 = vrot.slane %v3497_v19, 1 }
0x229c   : > { %v3499_v50 = vadd.f32 %v3498_v45, %v3497_v19 }
0x229e   : > { %5322 = vrcp.f32 %v3499_v50 }
0x22ab   : > { %v5323_v54 = vpop.eup %5322 }
0x22ac   : > { %v3501_v63 = vmul.f32 %v5323_v54, %v5321_v20 }
0x22ae   : > { %v3502_v33 = vadd.f32 1e-08, %v3501_v63 }
0x22b0   : > { %5088 = vmatmul.mubr.msk.f32.vlgmr.msra.gmra.mxu0 %vm946_vm4, %v3502_v33 }
0x22b1   : > { %5110 = vmatpush3.msra.mxu0 %v5360_v13 }
0x22b2   : > { %5111 = vmatprep.subr.mxu0 %v5361_v7 }
0x22b3   : > { %5112 = vmatpush3.msra.mxu0 %v5361_v7 }
0x22b4   : > { %5113 = vmatprep.subr.mxu0 %v5362_v36 }
0x22b5   : > { %5114 = vmatpush3.msra.mxu0 %v5362_v36 }
0x22b6   : > { %5115 = vmatprep.subr.mxu0 %v5363_v5 }
0x22b7   : > { %5116 = vmatpush3.msra.mxu0 %v5363_v5 }
0x22b8   : > { %5117 = vmatprep.subr.mxu0 %v5364_v21 }
0x22b9   : > { %5118 = vmatpush3.msra.mxu0 %v5364_v21 }
0x22ba   : > { %5119 = vmatprep.subr.mxu0 %v5365_v17 }
0x22bb   : > { %5120 = vmatpush3.msra.mxu0 %v5365_v17 }
0x22bc   : > { %5121 = vmatprep.subr.mxu0 %v5366_v35 }
0x22bd   : > { %5122 = vmatpush3.msra.mxu0 %v5366_v35 }
0x22be   : > { %5123 = vmatprep.subr.mxu0 %v5367_v59 }
0x22bf   : > { %5124 = vmatpush3.msra.mxu0 %v5367_v59 }
0x22c0   : > { %5147 = vmatprep.subr.mxu0 %v5368_v24 }
0x2332   : > { %v3406_v60 = vpop.f32.mrf.mxu0 }
0x2333   : > { %5125 = vmatprep.mubr.msk.f32.mxu0 %vm946_vm4, %v3406_v60 }
0x2334   : > { %v5051_v18 = vpop.f32.mrf.mxu0 }
0x2370   : > { %v3572_v48 = vpop.f32.mrf.mxu0 }
0x2371   : > { %5324 = vrcp.f32 %v3572_v48 }
0x2372   : > { %v5089_v4 = vpop.f32.mrf.mxu0 }
0x237e   : > { %v5325_v30 = vpop.eup %5324 }
0x237f   : > { %v3577_v2 = vmul.f32 %v5325_v30, %v3502_v33 }
0x2381   : > { %5107 = vmatmul.mubr.msk.f32.vlgmr.msra.gmra.mxu1 %vm946_vm4, %v3577_v2 }
0x2382   : > { %5129 = vmatpush3.msra.mxu1 %v6774_v31 }
0x2383   : > { %5130 = vmatprep.subr.mxu1 %v5369_v44 }
0x2384   : > { %5131 = vmatpush3.msra.mxu1 %v5369_v44 }
0x2385   : > { %5132 = vmatprep.subr.mxu1 %v5370_v22 }
0x2386   : > { %5133 = vmatpush3.msra.mxu1 %v5370_v22 }
0x2387   : > { %5134 = vmatprep.subr.mxu1 %v5371_v53 }
0x2388   : > { %5135 = vmatpush3.msra.mxu1 %v5371_v53 }
0x2389   : > { %5136 = vmatprep.subr.mxu1 %v5372_v0 }
0x238a   : > { %5137 = vmatpush3.msra.mxu1 %v5372_v0 }
0x238b   : > { %5138 = vmatprep.subr.mxu1 %v5373_v28 }
0x238c   : > { %5139 = vmatpush3.msra.mxu1 %v5373_v28 }
0x238d   : > { %5140 = vmatprep.subr.mxu1 %v5374_v26 }
0x238e   : > { %5141 = vmatpush3.msra.mxu1 %v5374_v26 }
0x238f   : > { %5142 = vmatprep.subr.mxu1 %v5375_v42 }
0x2390   : > { %5143 = vmatpush3.msra.mxu1 %v5375_v42 }
0x2391   : > { %5158 = vmatprep.subr.mxu1 %v5376_v40 }
0x2441   : > { %v3647_v11 = vpop.f32.mrf.mxu1 }
0x2442   : > { %5126 = vmatmul.mubr.msk.f32.vlgmr.msra.gmra.mxu0 %vm946_vm4, %v3647_v11 }
0x2443   : > { %v5108_v12 = vpop.f32.mrf.mxu1  ;;  %5148 = vmatpush3.msra.mxu0 %v5368_v24 }
0x2444   : > { %5149 = vmatprep.subr.mxu0 %v5377_v57 }
0x2445   : > { %5150 = vmatpush3.msra.mxu0 %v5377_v57 }
0x2446   : > { %5151 = vmatprep.subr.mxu0 %v5378_v27 }
0x2447   : > { %5152 = vmatpush3.msra.mxu0 %v5378_v27 }
0x2448   : > { %5153 = vmatprep.subr.mxu0 %v5379_v41 }
0x2449   : > { %5154 = vmatpush3.msra.mxu0 %v5379_v41 }
0x2502   : > { %v5127_v23 = vpop.f32.mrf.mxu0 }
0x2503   : > { %v3729_v31 = vadd.f32 %v5380_v9, %v5127_v23 }
0x2504   : > { %v3723_v10 = vpop.f32.mrf.mxu0 }
0x2505   : > { %v3724_v39 = vadd.f32 %v5380_v9, %v3723_v10  ;;  %v3733_v43 = vsel %vm314_vm0, %v3729_v31, %v6670_v8 }
0x2507   : > { %v3732_v1 = vsel %vm314_vm0, %v3724_v39, %v6674_v56 }
0x2508   : > { %5144 = vmatprep.mubr.msk.f32.mxu1 %vm946_vm4, %v3732_v1 }
0x2509   : > { %5145 = vmatmul.mubr.msk.f32.vlgmr.msra.gmra.mxu1 %vm946_vm4, %v3733_v43 }
0x250a   : > { %5159 = vmatpush3.msra.mxu1 %v5376_v40 }
0x250b   : > { %5160 = vmatprep.subr.mxu1 %v5381_v51 }
0x250c   : > { %5161 = vmatpush3.msra.mxu1 %v5381_v51 }
0x250d   : > { %5162 = vmatprep.subr.mxu1 %v5382_v38 }
0x250e   : > { %5163 = vmatpush3.msra.mxu1 %v5382_v38 }
0x250f   : > { %5164 = vmatprep.subr.mxu1 %v5383_v46 }
0x2510   : > { %5165 = vmatpush3.msra.mxu1 %v5383_v46 }
0x2511   : > { %5166 = vmatprep.subr.mxu1 %v5384_v29 }
0x2512   : > { %5167 = vmatpush3.msra.mxu1 %v5384_v29 }
0x2513   : > { %5168 = vmatprep.subr.mxu1 %v5385_v3 }
0x2514   : > { %5169 = vmatpush3.msra.mxu1 %v5385_v3 }
0x2515   : > { %5170 = vmatprep.subr.mxu1 %v5386_v6 }
0x2516   : > { %5171 = vmatpush3.msra.mxu1 %v5386_v6 }
0x2517   : > { %5172 = vmatprep.subr.mxu1 %v5387_v58 }
0x2518   : > { %5173 = vmatpush3.msra.mxu1 %v5387_v58 }
0x25c9   : > { %v5146_v52 = vpop.f32.mrf.mxu1 }
0x25ca   : > { %v3812_v16 = vadd.f32 %v5388_v47, %v5146_v52 }
0x25cb   : > { %v3806_v49 = vpop.f32.mrf.mxu1 }
0x25cc   : > { %v3807_v61 = vadd.f32 %v5388_v47, %v3806_v49  ;;  %3831 = vrot.lane.b32.xlu1 %v3812_v16, %s5487_s14  ;;  %v4277_v55 = vmul.f32 -1.442695, %v3812_v16 }
0x25ce   : > { %3829 = vrot.lane.b32.xlu0 %v3807_v61, %s5487_s14  ;;  %v4276_v13 = vmul.f32 -1.442695, %v3807_v61  ;;  %5326 = vpow2.f32 %v4277_v55  ;;  %v5389_v55 = vld [vmem:[%s6911_s3 + $0xa] ss:$0 sm:$0xff] }
0x25d0   : > { %5328 = vpow2.f32 %v4276_v13 }
0x25db   : > { %v5327_v20 = vpop.eup %5326 }
0x25dc   : > { %v3822_v25 = vadd.f32 1.0, %v5327_v20 }
0x25dd   : > { %v5329_v14 = vpop.eup %5328 }
0x25de   : > { %v3821_v32 = vadd.f32 1.0, %v5329_v14  ;;  %5330 = vrcp.f32 %v3822_v25 }
0x25e0   : > { %5332 = vrcp.f32 %v3821_v32 }
0x25eb   : > { %v5331_v37 = vpop.eup %5330 }
0x25ec   : > { %v3850_v35 = vsub.f32 1.0, %v5331_v37  ;;  %v3862_v24 = vmul.f32 %v5331_v37, %v6670_v8 }
0x25ed   : > { %v5333_v50 = vpop.eup %5332 }
0x25ee   : > { %v3849_v18 = vsub.f32 1.0, %v5333_v50  ;;  %v3861_v30 = vmul.f32 %v5333_v50, %v6674_v56 }
0x263e   : > { %v3832_v19 = vpop.permute.xlu1 %3831 }
0x263f   : > { %v3836_v45 = vmul.f32 %v5331_v37, %v3832_v19 }
0x2640   : > { %v3830_v54 = vpop.permute.xlu0 %3829 }
0x2641   : > { %v3835_v63 = vmul.f32 %v5333_v50, %v3830_v54  ;;  %3841 = vrot.lane.b32.xlu1 %v3836_v45, %s5490_s23 }
0x2643   : > { %3839 = vrot.lane.b32.xlu0 %v3835_v63, %s5490_s23 }
0x26b3   : > { %v3842_v33 = vpop.permute.xlu1 %3841 }
0x26b4   : > { %v3846_v7 = vadd.f32 %v3842_v33, %v3812_v16 }
0x26b5   : > { %v3840_v36 = vpop.permute.xlu0 %3839 }
0x26b6   : > { %5334 = vtanh.f32 %v3846_v7  ;;  %v3845_v5 = vadd.f32 %v3840_v36, %v3807_v61 }
0x26b8   : > { %5336 = vtanh.f32 %v3845_v5 }
0x26c3   : > { %v5335_v21 = vpop.eup %5334 }
0x26c4   : > { %3855 = vrot.lane.b32.xlu1 %v5335_v21, %s5491_s5 }
0x26c5   : > { %v5337_v17 = vpop.eup %5336 }
0x26c6   : > { %3853 = vrot.lane.b32.xlu0 %v5337_v17, %s5491_s5 }
0x2736   : > { %v3856_v59 = vpop.permute.xlu1 %3855 }
0x2737   : > { %v3860_v60 = vmul.f32 %v3856_v59, %v3850_v35 }
0x2738   : > { %v3854_v48 = vpop.permute.xlu0 %3853 }
0x2739   : > { %v6819_v4 = vadd.f32 %v3862_v24, %v3860_v60  ;;  %v3859_v2 = vmul.f32 %v3854_v48, %v3849_v18 }
0x273b   : > { %v6822_v44 = vadd.f32 %v3861_v30, %v3859_v2  ;;  %3869 = vrot.lane.b32.xlu1 %v6819_v4, %s5491_s5 }
0x273d   : > { %3867 = vrot.lane.b32.xlu0 %v6822_v44, %s5491_s5 }
0x27ad   : > { %v3870_v22 = vpop.permute.xlu1 %3869 }
0x27ae   : > { %v3876_v53 = vsel %vm314_vm0, %v3870_v22, 0.0 }
0x27af   : > { %3877 = vadd.xlane.f32.xlu1 %v3876_v53  ;;  %v3868_v8 = vpop.permute.xlu0 %3867 }
0x27b0   : > { %v3873_v0 = vsel %vm314_vm0, %v3868_v8, 0.0 }
0x27b1   : > { %3874 = vadd.xlane.f32.xlu0 %v3873_v0 }
0x2838   : > { %v3878_v28 = vpop.xlane.xlu1 %3877 }
0x2839   : > { %v3880_v26 = vmul.f32 0.03125, %v3878_v28 }
0x283a   : > { %v3875_v56 = vpop.xlane.xlu0 %3874 }
0x283b   : > { %v3882_v42 = vsub.f32 %v6819_v4, %v3880_v26  ;;  %v3879_v40 = vmul.f32 0.03125, %v3875_v56 }
0x283d   : > { %v3884_v11 = vmul.f32 %v3882_v42, %v3882_v42  ;;  %v3881_v12 = vsub.f32 %v6822_v44, %v3879_v40 }
0x283f   : > { %v3883_v57 = vmul.f32 %v3881_v12, %v3881_v12  ;;  %3889 = vrot.lane.b32.xlu1 %v3884_v11, %s5491_s5 }
0x2841   : > { %3887 = vrot.lane.b32.xlu0 %v3883_v57, %s5491_s5 }
0x28b1   : > { %v3890_v27 = vpop.permute.xlu1 %3889 }
0x28b2   : > { %v3896_v41 = vsel %vm314_vm0, %v3890_v27, 0.0 }
0x28b3   : > { %3897 = vadd.xlane.f32.xlu1 %v3896_v41  ;;  %v3888_v23 = vpop.permute.xlu0 %3887 }
0x28b4   : > { %v3893_v9 = vsel %vm314_vm0, %v3888_v23, 0.0 }
0x28b5   : > { %3894 = vadd.xlane.f32.xlu0 %v3893_v9 }
0x293c   : > { %v3898_v31 = vpop.xlane.xlu1 %3897 }
0x293d   : > { %v3900_v10 = vmul.f32 0.03125, %v3898_v31 }
0x293e   : > { %v3895_v39 = vpop.xlane.xlu0 %3894 }
0x293f   : > { %v3902_v1 = vadd.f32 1e-05, %v3900_v10  ;;  %v3899_v43 = vmul.f32 0.03125, %v3895_v39 }
0x2941   : > { %5338 = vrsqrt.f32 %v3902_v1  ;;  %v3901_v51 = vadd.f32 1e-05, %v3899_v43 }
0x2943   : > { %5340 = vrsqrt.f32 %v3901_v51 }
0x294e   : > { %v5339_v38 = vpop.eup %5338 }
0x294f   : > { %v3906_v46 = vmul.f32 %v5339_v38, %v3882_v42 }
0x2950   : > { %v5341_v29 = vpop.eup %5340 }
0x2951   : > { %v3908_v3 = vmul.f32 %v3906_v46, %v7040_v34  ;;  %v3905_v6 = vmul.f32 %v5341_v29, %v3881_v12 }
0x2953   : > { %v3910_v58 = vadd.f32 %v3908_v3, %v7041_v62  ;;  %v3907_v52 = vmul.f32 %v3905_v6, %v7040_v34 }
0x2955   : > { %3915 = vrot.lane.b32.xlu1 %v3910_v58, %s5491_s5  ;;  %v3909_v47 = vadd.f32 %v3907_v52, %v7041_v62 }
0x2957   : > { %3913 = vrot.lane.b32.xlu0 %v3909_v47, %s5491_s5 }
0x29c7   : > { %v3916_v49 = vpop.permute.xlu1 %3915 }
0x29c9   : > { %v3914_v16 = vpop.permute.xlu0 %3913 }
0x29ca   : > { %5155 = vmatprep.mubr.msk.f32.mxu0 %vm314_vm0, %v3914_v16 }
0x29cb   : > { %5156 = vmatmul.mubr.msk.f32.vlgmr.msra.gmra.mxu0 %vm314_vm0, %v3916_v49 }
0x2a8b   : > { %v5157_v61 = vpop.f32.mrf.mxu0 }
0x2a8c   : > { %v3993_v13 = vadd.f32 %v5389_v55, %v5157_v61 }
0x2a8d   : > { %v3987_v20 = vpop.f32.mrf.mxu0 }
0x2a8e   : > { %v3988_v34 = vadd.f32 %v5389_v55, %v3987_v20  ;;  %v3997_v25 = vmax.f32 %v3993_v13, 0.0 }
0x2a90   : > { %v3996_v14 = vmax.f32 %v3988_v34, 0.0 }
0x2a92   : > { %5174 = vmatprep.mubr.msk.f32.mxu1 %vm946_vm4, %v3996_v14 }
0x2a93   : > { %5175 = vmatmul.mubr.msk.f32.vlgmr.msra.gmra.mxu1 %vm946_vm4, %v3997_v25 }
0x2b53   : > { %v5176_v62 = vpop.f32.mrf.mxu1 }
0x2b54   : > { %4083 = vrot.lane.b32.xlu1 %v5176_v62, %s5487_s14 }
0x2b55   : > { %v4070_v32 = vpop.f32.mrf.mxu1 }
0x2b56   : > { %4081 = vrot.lane.b32.xlu0 %v4070_v32, %s5487_s14  ;;  %s4287_s14 = sshll.u32 %s5541_s19, 8  ;;  %s5492_s19 = smov [#allocation5]  }
0x2b57   : > { %s6864_s28 = scalar_lea.hbm %s6912_s4, %s4287_s14  ;;  %s5420_s30 = sshll.u32 %s5492_s19, 4  ;;  %s5421_s30 = int_to_ptr.vmem [resolvable:$false] %s5420_s30 }
0x2b58   : > { %s5422_s6 = scalar_lea.vmem %s5421_s30, 512  ;;  %p5423_p12 = scmp.lt.s32.totalorder %s6859_s20, %s5421_s30 }
0x2b59   : > { %p5424_p13 = scmp.lt.s32.totalorder %s5422_s6, %s5416_s29 }
0x2b5b   : > { %p5425_p0 = por %p5424_p13, %p5423_p12 }
0x2b5d   : > { %p5426_p1 = pnand %p5425_p0, %p5419_p11 }
0x2bc6   : > { %v4084_v37 = vpop.permute.xlu1 %4083 }
0x2bc7   : > { %v4088_v19 = vadd.f32 %v4084_v37, %v6819_v4 }
0x2bc8   : > { %v4082_v45 = vpop.permute.xlu0 %4081 }
0x2bc9   : > { %v4090_v50 = vadd.f32 %v4088_v19, %v7046_v15  ;;  %v4087_v54 = vadd.f32 %v4082_v45, %v6822_v44 }
0x2bcb   : > { %v4089_v63 = vadd.f32 %v4087_v54, %v7046_v15  ;;  %4095 = vrot.lane.b32.xlu1 %v4090_v50, %s5491_s5 }
0x2bcd   : > { %4093 = vrot.lane.b32.xlu0 %v4089_v63, %s5491_s5  ;;  %s6868_s5 = scalar_lea.sflag [#allocation4], %s220_s11 }
0x2c3d   : > { %v4096_v33 = vpop.permute.xlu1 %4095 }
0x2c3e   : > { %4100 = vst.msk [vmem:[%s222_s13 + $0x8] sm:$0xff] %vm314_vm0, %v4096_v33 }
0x2c3f   : > { %v4094_v15 = vpop.permute.xlu0 %4093 }
0x2c40   : > { %4099 = vst.msk [vmem:[%s222_s13] sm:$0xff] %vm314_vm0, %v4094_v15 }
0x2c41   : > { %5429 = shalt.err (!%p5426_p1)
}
0x2c42   : > { %s5430_s7 = scalar_lea.hbm %s6864_s28, 256  ;;  %s5434_s23 = scalar_lea.hbm %s6912_s4, 512 }
0x2c43   : > { %p5431_p2 = scmp.ne.s32.totalorder %s6864_s28, %s5430_s7  ;;  %p5435_p7 = scmp.lt.s32.totalorder %s6864_s28, %s6912_s4 }
0x2c44   : > { %p5436_p6 = scmp.lt.s32.totalorder %s5434_s23, %s5430_s7 }
0x2c45   : > { %p5432_p3 = pnand %p5431_p2, %p5558_p5 }
0x2c46   : > { %p5437_p8 = por %p5436_p6, %p5435_p7 }
0x2c47   : > { %p5433_p4 = pneg %p5432_p3 }
0x2c49   : > { %p5438_p9 = pnand %p5437_p8, %p5433_p4 }
0x2c4b   : > { %5441 = shalt.err (!%p5438_p9)
}
0x2c4c   : > { %s5493_s12 = smov 128   ;;  %s5494_s13 = smov 8  }
0x2c4d   : > { %5181 = dma.vmem_to_hbm [thread:$0]  (%p5558_p5), %s6859_s20, 256, %s6864_s28, %s6868_s5, %s5493_s12, %s5493_s12, %s5494_s13  }
0x2c4e PF: > { %p5193_p10 = scmp.ge.s32.totalorder %s5480_s18, 2  ;;  %s4130_s14 = sand.u32 1, %s5468_s15  }
0x2c4f   : > { %p7056_p11 = scmp.ne.s32.totalorder %s6980_s26, 0  ;;  %s4131_s22 = scalar_lea.sflag [#allocation4], %s4130_s14 }
0x2c51   : > { %p5188_p12 = pnand %p5193_p10, %p7056_p11 }
0x2c53   : > { %p5189_p13 = pneg %p5188_p12 }
0x2c55   : > { %5463 = dma.done.wait (%p5189_p13), %s4131_s22, 256  }
0x2c56   : > { %5465 = vsyncadd (%p5189_p13), %s4131_s22, 4294967040  ;;  %p15_p0 = scmp.ge.s32.totalorder %s5545_s21, 4   ;;  %s7057_s15 = smov %s5472_s16 }
0x2c57   : > { %s7058_s16 = smov %s5476_s17  ;;  %s7059_s17 = smov %s5556_s24 }
0x2c58   : > { %s7060_s18 = smov %s5545_s21  ;;  %17 = sbr.rel (!%p15_p0) target bundleno = 4 (0x4), region = 79 }
0x2c5d   :  { %4136 = vsyncpa [#allocation3], 1 }
0x2c5e   :  { %4138 = vsyncpa [#allocation3 + $0x1], 1 }
0x2c5f   :  { %4139 = vsyncpa [#allocation4], 1 }
0x2c60   :  { %4141 = vsyncpa [#allocation4 + $0x1], 1 }

</bundles_post_ra>
